<compile_context>
chip_gen: v7x
topology: tpu7x:2x2x1
jax: 0.10.0
libtpu: 0.0.40
codegen_flags: <defaults>
</compile_context>

<pallas_src>
import functools

import jax
import jax.numpy as jnp
from jax.experimental import pallas as pl
from jax.experimental.pallas import tpu as pltpu

LN_EPS = 1e-5
LEAKY_SLOPE = 0.01   # PyTorch nn.LeakyReLU default negative_slope

# Trunk layer output dims (fixed by the module definition).
_TRUNK_OUT_DIMS = (256, 512, 512, 512, 256, 256, 256)
# Packed vector layout: for each trunk linear -> [bias, ln_gamma, ln_beta].
_VEC_DIMS = tuple(d for dim in _TRUNK_OUT_DIMS for d in (dim, dim, dim))
_VEC_OFFS = []
_o = 0
for _d in _VEC_DIMS:
    _VEC_OFFS.append(_o)
    _o += _d
_VEC_OFFS = tuple(_VEC_OFFS)
_VEC_TOTAL = _o          # 7680 (multiple of 128 -> lane aligned slices)


def _round_up(n, m):
    return (n + m - 1) // m * m


def _cdiv(a, b):
    return -(-a // b)


def _head_layout(total_cells):
    """Padded fused-head width and head N-tile."""
    raw = 3 * total_cells + 4
    if raw <= 2048:
        hp = _round_up(raw, 128)
        return hp, hp
    tile_n = 1024
    return _round_up(raw, tile_n), tile_n


def _device_caps():
    """Best-effort generation detection for tile sizing (safe defaults)."""
    try:
        kind = jax.devices()[0].device_kind.lower()
    except Exception:
        kind = ""
    is_v5e = ("v5e" in kind) or ("v5 lite" in kind) or ("v5lite" in kind)
    max_tile = 128 if is_v5e else 256                      # 256 fills v6e/v7x MXU
    multi_core = any(t in kind for t in ("v7", "v4", "v5p"))  # 2 TC per chip
    return max_tile, multi_core


def _select_batch_tile(batch):
    max_tile, multi_core = _device_caps()
    b8 = _round_up(max(batch, 1), 8)
    n_steps = _cdiv(b8, max_tile)
    if multi_core and n_steps < 2 and b8 >= 16:
        n_steps = 2                                        # engage both TensorCores
    tile_b = _round_up(_cdiv(b8, n_steps), 8)
    return tile_b, tile_b * n_steps


# ---------------------------------------------------------------------------
# Kernel: trunk (computed once per batch tile, j == 0) + fused-head N tile.
# ---------------------------------------------------------------------------
def hybrid_policy_kernel(x_ref, w0, w1, w2, w3, w4, w5, w6,
                         vec_ref, hw_ref, hb_ref, out_ref, h_sc):
    def vec(i):
        off = _VEC_OFFS[i]
        return vec_ref[:, off:off + _VEC_DIMS[i]]          # (1, dim) f32

    def linear(h, w_ref, b):
        return jnp.dot(h.astype(jnp.bfloat16), w_ref[...],
                       preferred_element_type=jnp.float32) + b

    def layernorm(h, g, beta):
        mu = jnp.mean(h, axis=-1, keepdims=True)
        d = h - mu
        var = jnp.mean(d * d, axis=-1, keepdims=True)      # two-pass (stable)
        return d * jax.lax.rsqrt(var + LN_EPS) * g + beta

    def silu(h):
        return h * jax.lax.logistic(h)

    def leaky(h):
        return jnp.where(h >= 0.0, h, LEAKY_SLOPE * h)

    @pl.when(pl.program_id(1) == 0)
    def _compute_trunk():
        h = x_ref[...]                                     # bf16 activations
        # Linear(din,256) -> LN -> SiLU
        h = jnp.dot(h, w0[...], preferred_element_type=jnp.float32) + vec(0)
        h = silu(layernorm(h, vec(1), vec(2)))
        # Linear(256,512) -> LN -> SiLU
        h = silu(layernorm(linear(h, w1, vec(3)), vec(4), vec(5)))
        # ResidualBlock(512)
        y = leaky(layernorm(linear(h, w2, vec(6)), vec(7), vec(8)))
        y = layernorm(linear(y, w3, vec(9)), vec(10), vec(11))
        h = h + y
        # Linear(512,256) -> LN -> SiLU
        h = silu(layernorm(linear(h, w4, vec(12)), vec(13), vec(14)))
        # ResidualBlock(256)
        y = leaky(layernorm(linear(h, w5, vec(15)), vec(16), vec(17)))
        y = layernorm(linear(y, w6, vec(18)), vec(19), vec(20))
        h_sc[...] = h + y

    # Fused heads [water | fertilizer | crop_mask | crop_select | pad], N tile j.
    out_ref[...] = (jnp.dot(h_sc[...].astype(jnp.bfloat16), hw_ref[...],
                            preferred_element_type=jnp.float32) + hb_ref[...])


# ---------------------------------------------------------------------------
# Parameter construction (PyTorch-shaped semantics, deterministic)
# ---------------------------------------------------------------------------
def _linear_params(key, fan_in, fan_out):
    kw, kb = jax.random.split(key)
    bound = 1.0 / jnp.sqrt(jnp.float32(fan_in))
    w = jax.random.uniform(kw, (fan_in, fan_out), jnp.float32, -bound, bound)
    b = jax.random.uniform(kb, (1, fan_out), jnp.float32, -bound, bound)
    return w, b


def init_params(key, input_dim, total_cells):
    keys = iter(jax.random.split(key, 16))
    hp, _ = _head_layout(total_cells)

    trunk_dims = [(input_dim, 256), (256, 512), (512, 512), (512, 512),
                  (512, 256), (256, 256), (256, 256)]
    trunk_ws = []
    vec_parts = []
    for fi, fo in trunk_dims:
        w, b = _linear_params(next(keys), fi, fo)
        trunk_ws.append(w.astype(jnp.bfloat16))
        vec_parts += [b, jnp.ones((1, fo), jnp.float32), jnp.zeros((1, fo), jnp.float32)]
    vec = jnp.concatenate(vec_parts, axis=1)
    assert vec.shape == (1, _VEC_TOTAL)

    # Fused heads: water | fertilizer | crop_mask | crop_select, lane padded.
    ww, wb = _linear_params(next(keys), 256, total_cells)
    fw, fb = _linear_params(next(keys), 256, total_cells)
    cw, cb = _linear_params(next(keys), 256, total_cells)
    sw, sb = _linear_params(next(keys), 256, 4)
    raw = 3 * total_cells + 4
    head_w = jnp.concatenate([ww, fw, cw, sw], axis=1)
    head_b = jnp.concatenate([wb, fb, cb, sb], axis=1)
    head_w = jnp.zeros((256, hp), jnp.float32).at[:, :raw].set(head_w).astype(jnp.bfloat16)
    head_b = jnp.zeros((1, hp), jnp.float32).at[:, :raw].set(head_b)

    return {
        "trunk_w": tuple(trunk_ws),
        "vec": vec,
        "head_w": head_w,
        "head_b": head_b,
        "water_log_std": jnp.zeros((total_cells,), jnp.float32),
        "fertilizer_log_std": jnp.zeros((total_cells,), jnp.float32),
    }


# ---------------------------------------------------------------------------
# Wrapper
# ---------------------------------------------------------------------------
@functools.partial(jax.jit, static_argnames=("total_cells",))
def hybrid_policy_forward(x, params, *, total_cells):
    trunk_ws = params["trunk_w"]
    vec = params["vec"]
    head_w = params["head_w"]
    head_b = params["head_b"]

    batch, din = x.shape
    hp, tile_n = _head_layout(total_cells)
    tile_b, b_pad = _select_batch_tile(batch)

    # bf16 x, padded only along the batch (sublane) axis; feature dim stays true.
    x_proc = x.astype(jnp.bfloat16)
    if b_pad != batch:
        x_proc = jnp.pad(x_proc, ((0, b_pad - batch), (0, 0)))

    grid = (b_pad // tile_b, hp // tile_n)

    in_specs = (
        [pl.BlockSpec((tile_b, din), lambda i, j: (i, 0))]
        + [pl.BlockSpec(w.shape, lambda i, j: (0, 0)) for w in trunk_ws]   # VMEM resident
        + [pl.BlockSpec(vec.shape, lambda i, j: (0, 0)),
           pl.BlockSpec((256, tile_n), lambda i, j: (0, j)),               # head weight N tile
           pl.BlockSpec((1, tile_n), lambda i, j: (0, j))])                # head bias N tile
    out_spec = pl.BlockSpec((tile_b, tile_n), lambda i, j: (i, j))

    # Cost estimate + explicit VMEM budget (v5e default scoped limit is 16 MiB).
    weight_bytes = sum(int(w.size) * 2 for w in trunk_ws) + 256 * hp * 2
    flops = 2 * b_pad * (din * 256 + 256 * 512 + 2 * 512 * 512
                         + 512 * 256 + 2 * 256 * 256 + 256 * hp)
    bytes_accessed = (b_pad * din * 2 + weight_bytes + _VEC_TOTAL * 4
                      + hp * 4 + b_pad * hp * 4)
    transcendentals = b_pad * (256 + 512 + 256 + 7)

    est = (weight_bytes * 2 + _VEC_TOTAL * 4 * 2
           + tile_b * din * 2 * 2 + tile_b * tile_n * 4 * 2
           + 256 * tile_n * 2 * 2 + tile_n * 4 * 2
           + tile_b * 512 * 4 * 6 + tile_b * 256 * 4)
    vmem_limit = int(min(max(est + (4 << 20), 24 << 20), 60 << 20))

    fused = pl.pallas_call(
        hybrid_policy_kernel,
        out_shape=jax.ShapeDtypeStruct((b_pad, hp), jnp.float32),
        grid=grid,
        in_specs=in_specs,
        out_specs=out_spec,
        scratch_shapes=[pltpu.VMEM((tile_b, 256), jnp.float32)],
        compiler_params=pltpu.CompilerParams(
            dimension_semantics=("parallel", "arbitrary"),
            vmem_limit_bytes=vmem_limit),
        cost_estimate=pl.CostEstimate(
            flops=int(flops), transcendentals=int(transcendentals),
            bytes_accessed=int(bytes_accessed)),
    )(x_proc, *trunk_ws, vec, head_w, head_b)

    tc = total_cells
    water_mean = jax.nn.sigmoid(fused[:batch, 0:tc])
    fert_mean = jax.nn.sigmoid(fused[:batch, tc:2 * tc])
    crop_mask_logits = fused[:batch, 2 * tc:3 * tc]
    crop_select_logits = fused[:batch, 3 * tc:3 * tc + 4]
    water_std = jnp.exp(params["water_log_std"])
    fert_std = jnp.exp(params["fertilizer_log_std"])
    return (water_mean, water_std, fert_mean, fert_std,
            crop_mask_logits, crop_select_logits)


# ---------------------------------------------------------------------------
if __name__ == "__main__":
    key = jax.random.PRNGKey(0)
    k_param, k_x = jax.random.split(key)

    batch = 4
    input_dim = 32
    total_cells = 16

    params = init_params(k_param, input_dim, total_cells)
    x = jax.random.normal(k_x, (batch, input_dim), jnp.float32)

    outs = hybrid_policy_forward(x, params, total_cells=total_cells)
    outs = jax.block_until_ready(outs)

    water_mean, water_std, fert_mean, fert_std, crop_mask, crop_sel = outs
    assert water_mean.shape == (batch, total_cells)
    assert water_std.shape == (total_cells,)
    assert fert_mean.shape == (batch, total_cells)
    assert fert_std.shape == (total_cells,)
    assert crop_mask.shape == (batch, total_cells)
    assert crop_sel.shape == (batch, 4)
    assert bool(jnp.all(jnp.isfinite(water_mean)))
    assert bool(jnp.all((water_mean >= 0.0) & (water_mean <= 1.0)))
    assert bool(jnp.all((fert_mean >= 0.0) & (fert_mean <= 1.0)))
    assert bool(jnp.all(jnp.isfinite(crop_mask)))
    assert bool(jnp.all(jnp.isfinite(crop_sel)))

    print("KERNEL_OK")
</pallas_src>

<mosaic_0001>
module attributes {stable_mosaic.version = 11 : i64} {
  func.func @hybrid_policy_kernel(%arg0: i32, %arg1: i32, %arg2: memref<8x32xbf16, #tpu.memory_space<vmem>>, %arg3: memref<32x256xbf16, #tpu.memory_space<vmem>>, %arg4: memref<256x512xbf16, #tpu.memory_space<vmem>>, %arg5: memref<512x512xbf16, #tpu.memory_space<vmem>>, %arg6: memref<512x512xbf16, #tpu.memory_space<vmem>>, %arg7: memref<512x256xbf16, #tpu.memory_space<vmem>>, %arg8: memref<256x256xbf16, #tpu.memory_space<vmem>>, %arg9: memref<256x256xbf16, #tpu.memory_space<vmem>>, %arg10: memref<1x7680xf32, #tpu.memory_space<vmem>>, %arg11: memref<256x128xbf16, #tpu.memory_space<vmem>>, %arg12: memref<1x128xf32, #tpu.memory_space<vmem>>, %arg13: memref<8x128xf32, #tpu.memory_space<vmem>>, %arg14: memref<8x256xf32, #tpu.memory_space<vmem>>) attributes {dimension_semantics = [#tpu.dimension_semantics<parallel>, #tpu.dimension_semantics<arbitrary>], iteration_bounds = array<i64: 1, 1>, scalar_prefetch = 0 : i64, scratch_operands = 1 : i64, tpu.core_type = #tpu.core_type<tc>, window_params = [{transform_indices = @transform_0, window_bounds = array<i64: 8, 32>}, {pipeline_mode = #tpu.pipeline_mode<synchronous>, transform_indices = @transform_1, window_bounds = array<i64: 32, 256>}, {pipeline_mode = #tpu.pipeline_mode<synchronous>, transform_indices = @transform_2, window_bounds = array<i64: 256, 512>}, {pipeline_mode = #tpu.pipeline_mode<synchronous>, transform_indices = @transform_3, window_bounds = array<i64: 512, 512>}, {pipeline_mode = #tpu.pipeline_mode<synchronous>, transform_indices = @transform_4, window_bounds = array<i64: 512, 512>}, {pipeline_mode = #tpu.pipeline_mode<synchronous>, transform_indices = @transform_5, window_bounds = array<i64: 512, 256>}, {pipeline_mode = #tpu.pipeline_mode<synchronous>, transform_indices = @transform_6, window_bounds = array<i64: 256, 256>}, {pipeline_mode = #tpu.pipeline_mode<synchronous>, transform_indices = @transform_7, window_bounds = array<i64: 256, 256>}, {pipeline_mode = #tpu.pipeline_mode<synchronous>, transform_indices = @transform_8, window_bounds = array<i64: 1, 7680>}, {transform_indices = @transform_9, window_bounds = array<i64: 256, 128>}, {transform_indices = @transform_10, window_bounds = array<i64: 1, 128>}, {transform_indices = @transform_11, window_bounds = array<i64: 8, 128>}]} {
    %c0_i32 = arith.constant 0 : i32
    %0 = arith.cmpi eq, %arg1, %c0_i32 : i32
    %1 = arith.extui %0 : i1 to i32
    %c0_i32_0 = arith.constant 0 : i32
    %2 = arith.cmpi ne, %1, %c0_i32_0 : i32
    scf.if %2 {
      %c0_8 = arith.constant 0 : index
      %c0_9 = arith.constant 0 : index
      %11 = vector.load %arg2[%c0_8, %c0_9] : memref<8x32xbf16, #tpu.memory_space<vmem>>, vector<8x32xbf16>
      %c0_10 = arith.constant 0 : index
      %c0_11 = arith.constant 0 : index
      %12 = vector.load %arg3[%c0_10, %c0_11] : memref<32x256xbf16, #tpu.memory_space<vmem>>, vector<32x256xbf16>
      %cst_12 = arith.constant dense<0.000000e+00> : vector<8x256xf32>
      %13 = tpu.matmul %11, %12, %cst_12 {dimension_numbers = #tpu.dot_dimension_numbers<[1], [0], [0], [1], [0, 0, 1, 1], [], []>} : vector<8x32xbf16>, vector<32x256xbf16>, vector<8x256xf32> -> vector<8x256xf32>
      %c0_13 = arith.constant 0 : index
      %c0_14 = arith.constant 0 : index
      %14 = vector.load %arg10[%c0_13, %c0_14] : memref<1x7680xf32, #tpu.memory_space<vmem>>, vector<1x256xf32>
      %15 = vector.broadcast %14 : vector<1x256xf32> to vector<8x256xf32>
      %16 = arith.addf %13, %15 : vector<8x256xf32>
      %c0_15 = arith.constant 0 : index
      %c256 = arith.constant 256 : index
      %17 = vector.load %arg10[%c0_15, %c256] : memref<1x7680xf32, #tpu.memory_space<vmem>>, vector<1x256xf32>
      %c0_16 = arith.constant 0 : index
      %c512 = arith.constant 512 : index
      %18 = vector.load %arg10[%c0_16, %c512] : memref<1x7680xf32, #tpu.memory_space<vmem>>, vector<1x256xf32>
      %cst_17 = arith.constant dense<0.000000e+00> : vector<8xf32>
      %19 = vector.multi_reduction <add>, %16, %cst_17 [1] : vector<8x256xf32> to vector<8xf32>
      %20 = vector.shape_cast %19 : vector<8xf32> to vector<8x1xf32>
      %cst_18 = arith.constant 2.560000e+02 : f32
      %21 = vector.broadcast %cst_18 : f32 to vector<8x1xf32>
      %22 = arith.divf %20, %21 : vector<8x1xf32>
      %23 = vector.broadcast %22 : vector<8x1xf32> to vector<8x256xf32>
      %24 = arith.subf %16, %23 : vector<8x256xf32>
      %25 = arith.mulf %24, %24 : vector<8x256xf32>
      %cst_19 = arith.constant dense<0.000000e+00> : vector<8xf32>
      %26 = vector.multi_reduction <add>, %25, %cst_19 [1] : vector<8x256xf32> to vector<8xf32>
      %27 = vector.shape_cast %26 : vector<8xf32> to vector<8x1xf32>
      %cst_20 = arith.constant 2.560000e+02 : f32
      %28 = vector.broadcast %cst_20 : f32 to vector<8x1xf32>
      %29 = arith.divf %27, %28 : vector<8x1xf32>
      %cst_21 = arith.constant 9.99999974E-6 : f32
      %30 = vector.broadcast %cst_21 : f32 to vector<8x1xf32>
      %31 = arith.addf %29, %30 : vector<8x1xf32>
      %32 = math.rsqrt %31 : vector<8x1xf32>
      %33 = vector.broadcast %32 : vector<8x1xf32> to vector<8x256xf32>
      %34 = arith.mulf %24, %33 : vector<8x256xf32>
      %35 = vector.broadcast %17 : vector<1x256xf32> to vector<8x256xf32>
      %36 = arith.mulf %34, %35 : vector<8x256xf32>
      %37 = vector.broadcast %18 : vector<1x256xf32> to vector<8x256xf32>
      %38 = arith.addf %36, %37 : vector<8x256xf32>
      %39 = arith.negf %38 : vector<8x256xf32>
      %40 = math.exp %39 : vector<8x256xf32>
      %cst_22 = arith.constant 1.000000e+00 : f32
      %41 = vector.broadcast %cst_22 : f32 to vector<8x256xf32>
      %42 = arith.addf %41, %40 : vector<8x256xf32>
      %43 = arith.divf %41, %42 : vector<8x256xf32>
      %44 = arith.mulf %38, %43 : vector<8x256xf32>
      %c0_23 = arith.constant 0 : index
      %c768 = arith.constant 768 : index
      %45 = vector.load %arg10[%c0_23, %c768] : memref<1x7680xf32, #tpu.memory_space<vmem>>, vector<1x512xf32>
      %46 = arith.truncf %44 : vector<8x256xf32> to vector<8x256xbf16>
      %c0_24 = arith.constant 0 : index
      %c0_25 = arith.constant 0 : index
      %47 = vector.load %arg4[%c0_24, %c0_25] : memref<256x512xbf16, #tpu.memory_space<vmem>>, vector<256x512xbf16>
      %cst_26 = arith.constant dense<0.000000e+00> : vector<8x512xf32>
      %48 = tpu.matmul %46, %47, %cst_26 {dimension_numbers = #tpu.dot_dimension_numbers<[1], [0], [0], [1], [0, 0, 1, 1], [], []>} : vector<8x256xbf16>, vector<256x512xbf16>, vector<8x512xf32> -> vector<8x512xf32>
      %49 = vector.broadcast %45 : vector<1x512xf32> to vector<8x512xf32>
      %50 = arith.addf %48, %49 : vector<8x512xf32>
      %c0_27 = arith.constant 0 : index
      %c1280 = arith.constant 1280 : index
      %51 = vector.load %arg10[%c0_27, %c1280] : memref<1x7680xf32, #tpu.memory_space<vmem>>, vector<1x512xf32>
      %c0_28 = arith.constant 0 : index
      %c1792 = arith.constant 1792 : index
      %52 = vector.load %arg10[%c0_28, %c1792] : memref<1x7680xf32, #tpu.memory_space<vmem>>, vector<1x512xf32>
      %cst_29 = arith.constant dense<0.000000e+00> : vector<8xf32>
      %53 = vector.multi_reduction <add>, %50, %cst_29 [1] : vector<8x512xf32> to vector<8xf32>
      %54 = vector.shape_cast %53 : vector<8xf32> to vector<8x1xf32>
      %cst_30 = arith.constant 5.120000e+02 : f32
      %55 = vector.broadcast %cst_30 : f32 to vector<8x1xf32>
      %56 = arith.divf %54, %55 : vector<8x1xf32>
      %57 = vector.broadcast %56 : vector<8x1xf32> to vector<8x512xf32>
      %58 = arith.subf %50, %57 : vector<8x512xf32>
      %59 = arith.mulf %58, %58 : vector<8x512xf32>
      %cst_31 = arith.constant dense<0.000000e+00> : vector<8xf32>
      %60 = vector.multi_reduction <add>, %59, %cst_31 [1] : vector<8x512xf32> to vector<8xf32>
      %61 = vector.shape_cast %60 : vector<8xf32> to vector<8x1xf32>
      %cst_32 = arith.constant 5.120000e+02 : f32
      %62 = vector.broadcast %cst_32 : f32 to vector<8x1xf32>
      %63 = arith.divf %61, %62 : vector<8x1xf32>
      %cst_33 = arith.constant 9.99999974E-6 : f32
      %64 = vector.broadcast %cst_33 : f32 to vector<8x1xf32>
      %65 = arith.addf %63, %64 : vector<8x1xf32>
      %66 = math.rsqrt %65 : vector<8x1xf32>
      %67 = vector.broadcast %66 : vector<8x1xf32> to vector<8x512xf32>
      %68 = arith.mulf %58, %67 : vector<8x512xf32>
      %69 = vector.broadcast %51 : vector<1x512xf32> to vector<8x512xf32>
      %70 = arith.mulf %68, %69 : vector<8x512xf32>
      %71 = vector.broadcast %52 : vector<1x512xf32> to vector<8x512xf32>
      %72 = arith.addf %70, %71 : vector<8x512xf32>
      %73 = arith.negf %72 : vector<8x512xf32>
      %74 = math.exp %73 : vector<8x512xf32>
      %cst_34 = arith.constant 1.000000e+00 : f32
      %75 = vector.broadcast %cst_34 : f32 to vector<8x512xf32>
      %76 = arith.addf %75, %74 : vector<8x512xf32>
      %77 = arith.divf %75, %76 : vector<8x512xf32>
      %78 = arith.mulf %72, %77 : vector<8x512xf32>
      %c0_35 = arith.constant 0 : index
      %c2304 = arith.constant 2304 : index
      %79 = vector.load %arg10[%c0_35, %c2304] : memref<1x7680xf32, #tpu.memory_space<vmem>>, vector<1x512xf32>
      %80 = arith.truncf %78 : vector<8x512xf32> to vector<8x512xbf16>
      %c0_36 = arith.constant 0 : index
      %c0_37 = arith.constant 0 : index
      %81 = vector.load %arg5[%c0_36, %c0_37] : memref<512x512xbf16, #tpu.memory_space<vmem>>, vector<512x512xbf16>
      %cst_38 = arith.constant dense<0.000000e+00> : vector<8x512xf32>
      %82 = tpu.matmul %80, %81, %cst_38 {dimension_numbers = #tpu.dot_dimension_numbers<[1], [0], [0], [1], [0, 0, 1, 1], [], []>} : vector<8x512xbf16>, vector<512x512xbf16>, vector<8x512xf32> -> vector<8x512xf32>
      %83 = vector.broadcast %79 : vector<1x512xf32> to vector<8x512xf32>
      %84 = arith.addf %82, %83 : vector<8x512xf32>
      %c0_39 = arith.constant 0 : index
      %c2816 = arith.constant 2816 : index
      %85 = vector.load %arg10[%c0_39, %c2816] : memref<1x7680xf32, #tpu.memory_space<vmem>>, vector<1x512xf32>
      %c0_40 = arith.constant 0 : index
      %c3328 = arith.constant 3328 : index
      %86 = vector.load %arg10[%c0_40, %c3328] : memref<1x7680xf32, #tpu.memory_space<vmem>>, vector<1x512xf32>
      %cst_41 = arith.constant dense<0.000000e+00> : vector<8xf32>
      %87 = vector.multi_reduction <add>, %84, %cst_41 [1] : vector<8x512xf32> to vector<8xf32>
      %88 = vector.shape_cast %87 : vector<8xf32> to vector<8x1xf32>
      %cst_42 = arith.constant 5.120000e+02 : f32
      %89 = vector.broadcast %cst_42 : f32 to vector<8x1xf32>
      %90 = arith.divf %88, %89 : vector<8x1xf32>
      %91 = vector.broadcast %90 : vector<8x1xf32> to vector<8x512xf32>
      %92 = arith.subf %84, %91 : vector<8x512xf32>
      %93 = arith.mulf %92, %92 : vector<8x512xf32>
      %cst_43 = arith.constant dense<0.000000e+00> : vector<8xf32>
      %94 = vector.multi_reduction <add>, %93, %cst_43 [1] : vector<8x512xf32> to vector<8xf32>
      %95 = vector.shape_cast %94 : vector<8xf32> to vector<8x1xf32>
      %cst_44 = arith.constant 5.120000e+02 : f32
      %96 = vector.broadcast %cst_44 : f32 to vector<8x1xf32>
      %97 = arith.divf %95, %96 : vector<8x1xf32>
      %cst_45 = arith.constant 9.99999974E-6 : f32
      %98 = vector.broadcast %cst_45 : f32 to vector<8x1xf32>
      %99 = arith.addf %97, %98 : vector<8x1xf32>
      %100 = math.rsqrt %99 : vector<8x1xf32>
      %101 = vector.broadcast %100 : vector<8x1xf32> to vector<8x512xf32>
      %102 = arith.mulf %92, %101 : vector<8x512xf32>
      %103 = vector.broadcast %85 : vector<1x512xf32> to vector<8x512xf32>
      %104 = arith.mulf %102, %103 : vector<8x512xf32>
      %105 = vector.broadcast %86 : vector<1x512xf32> to vector<8x512xf32>
      %106 = arith.addf %104, %105 : vector<8x512xf32>
      %cst_46 = arith.constant 0.000000e+00 : f32
      %107 = vector.broadcast %cst_46 : f32 to vector<8x512xf32>
      %108 = arith.cmpf oge, %106, %107 : vector<8x512xf32>
      %cst_47 = arith.constant 0.00999999977 : f32
      %109 = vector.broadcast %cst_47 : f32 to vector<8x512xf32>
      %110 = arith.mulf %109, %106 : vector<8x512xf32>
      %111 = arith.select %108, %106, %110 : vector<8x512xi1>, vector<8x512xf32>
      %c0_48 = arith.constant 0 : index
      %c3840 = arith.constant 3840 : index
      %112 = vector.load %arg10[%c0_48, %c3840] : memref<1x7680xf32, #tpu.memory_space<vmem>>, vector<1x512xf32>
      %113 = arith.truncf %111 : vector<8x512xf32> to vector<8x512xbf16>
      %c0_49 = arith.constant 0 : index
      %c0_50 = arith.constant 0 : index
      %114 = vector.load %arg6[%c0_49, %c0_50] : memref<512x512xbf16, #tpu.memory_space<vmem>>, vector<512x512xbf16>
      %cst_51 = arith.constant dense<0.000000e+00> : vector<8x512xf32>
      %115 = tpu.matmul %113, %114, %cst_51 {dimension_numbers = #tpu.dot_dimension_numbers<[1], [0], [0], [1], [0, 0, 1, 1], [], []>} : vector<8x512xbf16>, vector<512x512xbf16>, vector<8x512xf32> -> vector<8x512xf32>
      %116 = vector.broadcast %112 : vector<1x512xf32> to vector<8x512xf32>
      %117 = arith.addf %115, %116 : vector<8x512xf32>
      %c0_52 = arith.constant 0 : index
      %c4352 = arith.constant 4352 : index
      %118 = vector.load %arg10[%c0_52, %c4352] : memref<1x7680xf32, #tpu.memory_space<vmem>>, vector<1x512xf32>
      %c0_53 = arith.constant 0 : index
      %c4864 = arith.constant 4864 : index
      %119 = vector.load %arg10[%c0_53, %c4864] : memref<1x7680xf32, #tpu.memory_space<vmem>>, vector<1x512xf32>
      %cst_54 = arith.constant dense<0.000000e+00> : vector<8xf32>
      %120 = vector.multi_reduction <add>, %117, %cst_54 [1] : vector<8x512xf32> to vector<8xf32>
      %121 = vector.shape_cast %120 : vector<8xf32> to vector<8x1xf32>
      %cst_55 = arith.constant 5.120000e+02 : f32
      %122 = vector.broadcast %cst_55 : f32 to vector<8x1xf32>
      %123 = arith.divf %121, %122 : vector<8x1xf32>
      %124 = vector.broadcast %123 : vector<8x1xf32> to vector<8x512xf32>
      %125 = arith.subf %117, %124 : vector<8x512xf32>
      %126 = arith.mulf %125, %125 : vector<8x512xf32>
      %cst_56 = arith.constant dense<0.000000e+00> : vector<8xf32>
      %127 = vector.multi_reduction <add>, %126, %cst_56 [1] : vector<8x512xf32> to vector<8xf32>
      %128 = vector.shape_cast %127 : vector<8xf32> to vector<8x1xf32>
      %cst_57 = arith.constant 5.120000e+02 : f32
      %129 = vector.broadcast %cst_57 : f32 to vector<8x1xf32>
      %130 = arith.divf %128, %129 : vector<8x1xf32>
      %cst_58 = arith.constant 9.99999974E-6 : f32
      %131 = vector.broadcast %cst_58 : f32 to vector<8x1xf32>
      %132 = arith.addf %130, %131 : vector<8x1xf32>
      %133 = math.rsqrt %132 : vector<8x1xf32>
      %134 = vector.broadcast %133 : vector<8x1xf32> to vector<8x512xf32>
      %135 = arith.mulf %125, %134 : vector<8x512xf32>
      %136 = vector.broadcast %118 : vector<1x512xf32> to vector<8x512xf32>
      %137 = arith.mulf %135, %136 : vector<8x512xf32>
      %138 = vector.broadcast %119 : vector<1x512xf32> to vector<8x512xf32>
      %139 = arith.addf %137, %138 : vector<8x512xf32>
      %140 = arith.addf %78, %139 : vector<8x512xf32>
      %c0_59 = arith.constant 0 : index
      %c5376 = arith.constant 5376 : index
      %141 = vector.load %arg10[%c0_59, %c5376] : memref<1x7680xf32, #tpu.memory_space<vmem>>, vector<1x256xf32>
      %142 = arith.truncf %140 : vector<8x512xf32> to vector<8x512xbf16>
      %c0_60 = arith.constant 0 : index
      %c0_61 = arith.constant 0 : index
      %143 = vector.load %arg7[%c0_60, %c0_61] : memref<512x256xbf16, #tpu.memory_space<vmem>>, vector<512x256xbf16>
      %cst_62 = arith.constant dense<0.000000e+00> : vector<8x256xf32>
      %144 = tpu.matmul %142, %143, %cst_62 {dimension_numbers = #tpu.dot_dimension_numbers<[1], [0], [0], [1], [0, 0, 1, 1], [], []>} : vector<8x512xbf16>, vector<512x256xbf16>, vector<8x256xf32> -> vector<8x256xf32>
      %145 = vector.broadcast %141 : vector<1x256xf32> to vector<8x256xf32>
      %146 = arith.addf %144, %145 : vector<8x256xf32>
      %c0_63 = arith.constant 0 : index
      %c5632 = arith.constant 5632 : index
      %147 = vector.load %arg10[%c0_63, %c5632] : memref<1x7680xf32, #tpu.memory_space<vmem>>, vector<1x256xf32>
      %c0_64 = arith.constant 0 : index
      %c5888 = arith.constant 5888 : index
      %148 = vector.load %arg10[%c0_64, %c5888] : memref<1x7680xf32, #tpu.memory_space<vmem>>, vector<1x256xf32>
      %cst_65 = arith.constant dense<0.000000e+00> : vector<8xf32>
      %149 = vector.multi_reduction <add>, %146, %cst_65 [1] : vector<8x256xf32> to vector<8xf32>
      %150 = vector.shape_cast %149 : vector<8xf32> to vector<8x1xf32>
      %cst_66 = arith.constant 2.560000e+02 : f32
      %151 = vector.broadcast %cst_66 : f32 to vector<8x1xf32>
      %152 = arith.divf %150, %151 : vector<8x1xf32>
      %153 = vector.broadcast %152 : vector<8x1xf32> to vector<8x256xf32>
      %154 = arith.subf %146, %153 : vector<8x256xf32>
      %155 = arith.mulf %154, %154 : vector<8x256xf32>
      %cst_67 = arith.constant dense<0.000000e+00> : vector<8xf32>
      %156 = vector.multi_reduction <add>, %155, %cst_67 [1] : vector<8x256xf32> to vector<8xf32>
      %157 = vector.shape_cast %156 : vector<8xf32> to vector<8x1xf32>
      %cst_68 = arith.constant 2.560000e+02 : f32
      %158 = vector.broadcast %cst_68 : f32 to vector<8x1xf32>
      %159 = arith.divf %157, %158 : vector<8x1xf32>
      %cst_69 = arith.constant 9.99999974E-6 : f32
      %160 = vector.broadcast %cst_69 : f32 to vector<8x1xf32>
      %161 = arith.addf %159, %160 : vector<8x1xf32>
      %162 = math.rsqrt %161 : vector<8x1xf32>
      %163 = vector.broadcast %162 : vector<8x1xf32> to vector<8x256xf32>
      %164 = arith.mulf %154, %163 : vector<8x256xf32>
      %165 = vector.broadcast %147 : vector<1x256xf32> to vector<8x256xf32>
      %166 = arith.mulf %164, %165 : vector<8x256xf32>
      %167 = vector.broadcast %148 : vector<1x256xf32> to vector<8x256xf32>
      %168 = arith.addf %166, %167 : vector<8x256xf32>
      %169 = arith.negf %168 : vector<8x256xf32>
      %170 = math.exp %169 : vector<8x256xf32>
      %cst_70 = arith.constant 1.000000e+00 : f32
      %171 = vector.broadcast %cst_70 : f32 to vector<8x256xf32>
      %172 = arith.addf %171, %170 : vector<8x256xf32>
      %173 = arith.divf %171, %172 : vector<8x256xf32>
      %174 = arith.mulf %168, %173 : vector<8x256xf32>
      %c0_71 = arith.constant 0 : index
      %c6144 = arith.constant 6144 : index
      %175 = vector.load %arg10[%c0_71, %c6144] : memref<1x7680xf32, #tpu.memory_space<vmem>>, vector<1x256xf32>
      %176 = arith.truncf %174 : vector<8x256xf32> to vector<8x256xbf16>
      %c0_72 = arith.constant 0 : index
      %c0_73 = arith.constant 0 : index
      %177 = vector.load %arg8[%c0_72, %c0_73] : memref<256x256xbf16, #tpu.memory_space<vmem>>, vector<256x256xbf16>
      %cst_74 = arith.constant dense<0.000000e+00> : vector<8x256xf32>
      %178 = tpu.matmul %176, %177, %cst_74 {dimension_numbers = #tpu.dot_dimension_numbers<[1], [0], [0], [1], [0, 0, 1, 1], [], []>} : vector<8x256xbf16>, vector<256x256xbf16>, vector<8x256xf32> -> vector<8x256xf32>
      %179 = vector.broadcast %175 : vector<1x256xf32> to vector<8x256xf32>
      %180 = arith.addf %178, %179 : vector<8x256xf32>
      %c0_75 = arith.constant 0 : index
      %c6400 = arith.constant 6400 : index
      %181 = vector.load %arg10[%c0_75, %c6400] : memref<1x7680xf32, #tpu.memory_space<vmem>>, vector<1x256xf32>
      %c0_76 = arith.constant 0 : index
      %c6656 = arith.constant 6656 : index
      %182 = vector.load %arg10[%c0_76, %c6656] : memref<1x7680xf32, #tpu.memory_space<vmem>>, vector<1x256xf32>
      %cst_77 = arith.constant dense<0.000000e+00> : vector<8xf32>
      %183 = vector.multi_reduction <add>, %180, %cst_77 [1] : vector<8x256xf32> to vector<8xf32>
      %184 = vector.shape_cast %183 : vector<8xf32> to vector<8x1xf32>
      %cst_78 = arith.constant 2.560000e+02 : f32
      %185 = vector.broadcast %cst_78 : f32 to vector<8x1xf32>
      %186 = arith.divf %184, %185 : vector<8x1xf32>
      %187 = vector.broadcast %186 : vector<8x1xf32> to vector<8x256xf32>
      %188 = arith.subf %180, %187 : vector<8x256xf32>
      %189 = arith.mulf %188, %188 : vector<8x256xf32>
      %cst_79 = arith.constant dense<0.000000e+00> : vector<8xf32>
      %190 = vector.multi_reduction <add>, %189, %cst_79 [1] : vector<8x256xf32> to vector<8xf32>
      %191 = vector.shape_cast %190 : vector<8xf32> to vector<8x1xf32>
      %cst_80 = arith.constant 2.560000e+02 : f32
      %192 = vector.broadcast %cst_80 : f32 to vector<8x1xf32>
      %193 = arith.divf %191, %192 : vector<8x1xf32>
      %cst_81 = arith.constant 9.99999974E-6 : f32
      %194 = vector.broadcast %cst_81 : f32 to vector<8x1xf32>
      %195 = arith.addf %193, %194 : vector<8x1xf32>
      %196 = math.rsqrt %195 : vector<8x1xf32>
      %197 = vector.broadcast %196 : vector<8x1xf32> to vector<8x256xf32>
      %198 = arith.mulf %188, %197 : vector<8x256xf32>
      %199 = vector.broadcast %181 : vector<1x256xf32> to vector<8x256xf32>
      %200 = arith.mulf %198, %199 : vector<8x256xf32>
      %201 = vector.broadcast %182 : vector<1x256xf32> to vector<8x256xf32>
      %202 = arith.addf %200, %201 : vector<8x256xf32>
      %cst_82 = arith.constant 0.000000e+00 : f32
      %203 = vector.broadcast %cst_82 : f32 to vector<8x256xf32>
      %204 = arith.cmpf oge, %202, %203 : vector<8x256xf32>
      %cst_83 = arith.constant 0.00999999977 : f32
      %205 = vector.broadcast %cst_83 : f32 to vector<8x256xf32>
      %206 = arith.mulf %205, %202 : vector<8x256xf32>
      %207 = arith.select %204, %202, %206 : vector<8x256xi1>, vector<8x256xf32>
      %c0_84 = arith.constant 0 : index
      %c6912 = arith.constant 6912 : index
      %208 = vector.load %arg10[%c0_84, %c6912] : memref<1x7680xf32, #tpu.memory_space<vmem>>, vector<1x256xf32>
      %209 = arith.truncf %207 : vector<8x256xf32> to vector<8x256xbf16>
      %c0_85 = arith.constant 0 : index
      %c0_86 = arith.constant 0 : index
      %210 = vector.load %arg9[%c0_85, %c0_86] : memref<256x256xbf16, #tpu.memory_space<vmem>>, vector<256x256xbf16>
      %cst_87 = arith.constant dense<0.000000e+00> : vector<8x256xf32>
      %211 = tpu.matmul %209, %210, %cst_87 {dimension_numbers = #tpu.dot_dimension_numbers<[1], [0], [0], [1], [0, 0, 1, 1], [], []>} : vector<8x256xbf16>, vector<256x256xbf16>, vector<8x256xf32> -> vector<8x256xf32>
      %212 = vector.broadcast %208 : vector<1x256xf32> to vector<8x256xf32>
      %213 = arith.addf %211, %212 : vector<8x256xf32>
      %c0_88 = arith.constant 0 : index
      %c7168 = arith.constant 7168 : index
      %214 = vector.load %arg10[%c0_88, %c7168] : memref<1x7680xf32, #tpu.memory_space<vmem>>, vector<1x256xf32>
      %c0_89 = arith.constant 0 : index
      %c7424 = arith.constant 7424 : index
      %215 = vector.load %arg10[%c0_89, %c7424] : memref<1x7680xf32, #tpu.memory_space<vmem>>, vector<1x256xf32>
      %cst_90 = arith.constant dense<0.000000e+00> : vector<8xf32>
      %216 = vector.multi_reduction <add>, %213, %cst_90 [1] : vector<8x256xf32> to vector<8xf32>
      %217 = vector.shape_cast %216 : vector<8xf32> to vector<8x1xf32>
      %cst_91 = arith.constant 2.560000e+02 : f32
      %218 = vector.broadcast %cst_91 : f32 to vector<8x1xf32>
      %219 = arith.divf %217, %218 : vector<8x1xf32>
      %220 = vector.broadcast %219 : vector<8x1xf32> to vector<8x256xf32>
      %221 = arith.subf %213, %220 : vector<8x256xf32>
      %222 = arith.mulf %221, %221 : vector<8x256xf32>
      %cst_92 = arith.constant dense<0.000000e+00> : vector<8xf32>
      %223 = vector.multi_reduction <add>, %222, %cst_92 [1] : vector<8x256xf32> to vector<8xf32>
      %224 = vector.shape_cast %223 : vector<8xf32> to vector<8x1xf32>
      %cst_93 = arith.constant 2.560000e+02 : f32
      %225 = vector.broadcast %cst_93 : f32 to vector<8x1xf32>
      %226 = arith.divf %224, %225 : vector<8x1xf32>
      %cst_94 = arith.constant 9.99999974E-6 : f32
      %227 = vector.broadcast %cst_94 : f32 to vector<8x1xf32>
      %228 = arith.addf %226, %227 : vector<8x1xf32>
      %229 = math.rsqrt %228 : vector<8x1xf32>
      %230 = vector.broadcast %229 : vector<8x1xf32> to vector<8x256xf32>
      %231 = arith.mulf %221, %230 : vector<8x256xf32>
      %232 = vector.broadcast %214 : vector<1x256xf32> to vector<8x256xf32>
      %233 = arith.mulf %231, %232 : vector<8x256xf32>
      %234 = vector.broadcast %215 : vector<1x256xf32> to vector<8x256xf32>
      %235 = arith.addf %233, %234 : vector<8x256xf32>
      %236 = arith.addf %174, %235 : vector<8x256xf32>
      %c0_95 = arith.constant 0 : index
      %c0_96 = arith.constant 0 : index
      %237 = vector.load %arg14[%c0_95, %c0_96] : memref<8x256xf32, #tpu.memory_space<vmem>>, vector<8x256xf32>
      tpu.vector_store %arg14[%c0_95, %c0_96], %236 {strides = array<i32>} : memref<8x256xf32, #tpu.memory_space<vmem>>, vector<8x256xf32>,
    } else {
    }
    %c0 = arith.constant 0 : index
    %c0_1 = arith.constant 0 : index
    %3 = vector.load %arg14[%c0, %c0_1] : memref<8x256xf32, #tpu.memory_space<vmem>>, vector<8x256xf32>
    %4 = arith.truncf %3 : vector<8x256xf32> to vector<8x256xbf16>
    %c0_2 = arith.constant 0 : index
    %c0_3 = arith.constant 0 : index
    %5 = vector.load %arg11[%c0_2, %c0_3] : memref<256x128xbf16, #tpu.memory_space<vmem>>, vector<256x128xbf16>
    %cst = arith.constant dense<0.000000e+00> : vector<8x128xf32>
    %6 = tpu.matmul %4, %5, %cst {dimension_numbers = #tpu.dot_dimension_numbers<[1], [0], [0], [1], [0, 0, 1, 1], [], []>} : vector<8x256xbf16>, vector<256x128xbf16>, vector<8x128xf32> -> vector<8x128xf32>
    %c0_4 = arith.constant 0 : index
    %c0_5 = arith.constant 0 : index
    %7 = vector.load %arg12[%c0_4, %c0_5] : memref<1x128xf32, #tpu.memory_space<vmem>>, vector<1x128xf32>
    %8 = vector.broadcast %7 : vector<1x128xf32> to vector<8x128xf32>
    %9 = arith.addf %6, %8 : vector<8x128xf32>
    %c0_6 = arith.constant 0 : index
    %c0_7 = arith.constant 0 : index
    %10 = vector.load %arg13[%c0_6, %c0_7] : memref<8x128xf32, #tpu.memory_space<vmem>>, vector<8x128xf32>
    tpu.vector_store %arg13[%c0_6, %c0_7], %9 {strides = array<i32>} : memref<8x128xf32, #tpu.memory_space<vmem>>, vector<8x128xf32>,
    return
  }
  func.func @transform_0(%arg0: i32, %arg1: i32) -> (i32, i32) {
    %c0_i32 = arith.constant 0 : i32
    %c0_i32_0 = arith.constant 0 : i32
    return %arg0, %c0_i32 : i32, i32
  }
  func.func @transform_1(%arg0: i32, %arg1: i32) -> (i32, i32) {
    %c0_i32 = arith.constant 0 : i32
    %c0_i32_0 = arith.constant 0 : i32
    %c0_i32_1 = arith.constant 0 : i32
    return %c0_i32, %c0_i32_0 : i32, i32
  }
  func.func @transform_2(%arg0: i32, %arg1: i32) -> (i32, i32) {
    %c0_i32 = arith.constant 0 : i32
    %c0_i32_0 = arith.constant 0 : i32
    %c0_i32_1 = arith.constant 0 : i32
    return %c0_i32, %c0_i32_0 : i32, i32
  }
  func.func @transform_3(%arg0: i32, %arg1: i32) -> (i32, i32) {
    %c0_i32 = arith.constant 0 : i32
    %c0_i32_0 = arith.constant 0 : i32
    %c0_i32_1 = arith.constant 0 : i32
    return %c0_i32, %c0_i32_0 : i32, i32
  }
  func.func @transform_4(%arg0: i32, %arg1: i32) -> (i32, i32) {
    %c0_i32 = arith.constant 0 : i32
    %c0_i32_0 = arith.constant 0 : i32
    %c0_i32_1 = arith.constant 0 : i32
    return %c0_i32, %c0_i32_0 : i32, i32
  }
  func.func @transform_5(%arg0: i32, %arg1: i32) -> (i32, i32) {
    %c0_i32 = arith.constant 0 : i32
    %c0_i32_0 = arith.constant 0 : i32
    %c0_i32_1 = arith.constant 0 : i32
    return %c0_i32, %c0_i32_0 : i32, i32
  }
  func.func @transform_6(%arg0: i32, %arg1: i32) -> (i32, i32) {
    %c0_i32 = arith.constant 0 : i32
    %c0_i32_0 = arith.constant 0 : i32
    %c0_i32_1 = arith.constant 0 : i32
    return %c0_i32, %c0_i32_0 : i32, i32
  }
  func.func @transform_7(%arg0: i32, %arg1: i32) -> (i32, i32) {
    %c0_i32 = arith.constant 0 : i32
    %c0_i32_0 = arith.constant 0 : i32
    %c0_i32_1 = arith.constant 0 : i32
    return %c0_i32, %c0_i32_0 : i32, i32
  }
  func.func @transform_8(%arg0: i32, %arg1: i32) -> (i32, i32) {
    %c0_i32 = arith.constant 0 : i32
    %c0_i32_0 = arith.constant 0 : i32
    %c0_i32_1 = arith.constant 0 : i32
    return %c0_i32, %c0_i32_0 : i32, i32
  }
  func.func @transform_9(%arg0: i32, %arg1: i32) -> (i32, i32) {
    %c0_i32 = arith.constant 0 : i32
    %c0_i32_0 = arith.constant 0 : i32
    return %c0_i32, %arg1 : i32, i32
  }
  func.func @transform_10(%arg0: i32, %arg1: i32) -> (i32, i32) {
    %c0_i32 = arith.constant 0 : i32
    %c0_i32_0 = arith.constant 0 : i32
    return %c0_i32, %arg1 : i32, i32
  }
  func.func @transform_11(%arg0: i32, %arg1: i32) -> (i32, i32) {
    %c0_i32 = arith.constant 0 : i32
    return %arg0, %arg1 : i32, i32
  }
}

</mosaic_0001>

<bundles_post_ra>
// kernel: hybrid_policy_forward.1
= control target key start
LH: loop header
LB: loop body
LE: loop exit
PB: predicated region body
PF: predicated region fallthrough
CT: control target
= control target key end

     0   :  { %16 = vsyncpa [#allocation4], 0  ;;  %s6198_s0 = inlined_call_operand.vmem [shape: bf16[8,32], index: 0, kind: input, shape index: {}]   ;;  %s6199_s1 = inlined_call_operand.vmem [shape: bf16[32,256], index: 1, kind: input, shape index: {}]   ;;  %s6200_s2 = inlined_call_operand.hbm [shape: bf16[256,512], index: 2, kind: input, shape index: {}]   ;;  %s6201_s3 = inlined_call_operand.hbm [shape: bf16[512,512], index: 3, kind: input, shape index: {}]   ;;  %s6202_s4 = inlined_call_operand.hbm [shape: bf16[512,512], index: 4, kind: input, shape index: {}]   ;;  %s6203_s5 = inlined_call_operand.hbm [shape: bf16[512,256], index: 5, kind: input, shape index: {}]   ;;  %s6204_s6 = inlined_call_operand.hbm [shape: bf16[256,256], index: 6, kind: input, shape index: {}]   ;;  %s6205_s7 = inlined_call_operand.hbm [shape: bf16[256,256], index: 7, kind: input, shape index: {}]   ;;  %s6206_s8 = inlined_call_operand.hbm [shape: f32[1,7680], index: 8, kind: input, shape index: {}]   ;;  %s6207_s9 = inlined_call_operand.hbm [shape: bf16[256,128], index: 9, kind: input, shape index: {}]   ;;  %s6208_s10 = inlined_call_operand.vmem [shape: f32[1,128], index: 10, kind: input, shape index: {}]   ;;  %s6209_s11 = inlined_call_operand.vmem [shape: f32[8,128], index: 11, kind: output, shape index: {}]  }
   0x1   :  { %17 = vsyncpa [#allocation6], 0 }
   0x2   :  { %18 = vsyncpa [#allocation9], 0 }
   0x3   :  { %19 = vsyncpa [#allocation12], 0 }
   0x4   :  { %20 = vsyncpa [#allocation15], 0  ;;  %s5768_s17 = smov [#allocation5]   ;;  %s5769_s19 = smov [#allocation8]  }
   0x5   :  { %s42_s18 = sshll.u32 %s5768_s17, 4  ;;  %s66_s20 = sshll.u32 %s5769_s19, 4  ;;  %s43_s18 = int_to_ptr.vmem [resolvable:$true] %s42_s18  ;;  %s5843_s20 = int_to_ptr.vmem [resolvable:$true] %s66_s20 }
   0x6   :  { %s5582_s23 = scalar_lea.hbm %s6201_s3, 16384 }
   0x7   :  { %p5583_p0 = scmp.ne.s32.totalorder %s6201_s3, %s5582_s23  ;;  %p5586_p1 = scmp.lt.u32.totalorder %s5582_s23, %s6201_s3 }
   0x9   :  { %p5588_p2 = pnand %p5586_p1, %p5583_p0 }
   0xb   :  { %5591 = shalt.err (!%p5588_p2)
}
   0xc   :  { %s5592_s28 = scalar_lea.vmem %s43_s18, 16384  ;;  %p5597_p4 = scmp.lt.s32.totalorder %s43_s18, %s43_s18 }
   0xd   :  { %p5593_p3 = scmp.ne.s32.totalorder %s43_s18, %s5592_s28  ;;  %p5598_p5 = scmp.lt.s32.totalorder %s5592_s28, %s5592_s28 }
   0xf   :  { %p5599_p6 = por %p5598_p5, %p5597_p4 }
  0x11   :  { %p5600_p7 = pnand %p5599_p6, %p5593_p3 }
  0x13   :  { %5603 = shalt.err (!%p5600_p7)
}
  0x14   :  { %s5770_s29 = smov 256   ;;  %s5771_s30 = smov 16  }
  0x15   :  { %48 = dma.hbm_to_vmem [thread:$0]  %s6201_s3, 16384, %s43_s18, [#allocation6], %s5770_s29, %s5770_s29, %s5771_s30  }
  0x16   :  { %s5604_s16 = scalar_lea.hbm %s6203_s5, 8192 }
  0x17   :  { %p5605_p8 = scmp.ne.s32.totalorder %s6203_s5, %s5604_s16  ;;  %p5608_p9 = scmp.lt.u32.totalorder %s5604_s16, %s6203_s5 }
  0x19   :  { %p5610_p10 = pnand %p5608_p9, %p5605_p8 }
  0x1b   :  { %5613 = shalt.err (!%p5610_p10)
}
  0x1c   :  { %s5614_s23 = scalar_lea.vmem %s5843_s20, 8192  ;;  %p5619_p12 = scmp.lt.s32.totalorder %s5843_s20, %s5843_s20 }
  0x1d   :  { %p5615_p11 = scmp.ne.s32.totalorder %s5843_s20, %s5614_s23  ;;  %p5620_p13 = scmp.lt.s32.totalorder %s5614_s23, %s5614_s23 }
  0x1f   :  { %p5621_p0 = por %p5620_p13, %p5619_p12 }
  0x21   :  { %p5622_p1 = pnand %p5621_p0, %p5615_p11 }
  0x23   :  { %5625 = shalt.err (!%p5622_p1)
}
  0x24   :  { %s5772_s3 = smov 128   ;;  %s5773_s18 = smov 8  }
  0x25   :  { %72 = dma.hbm_to_vmem [thread:$0]  %s6203_s5, 8192, %s5843_s20, [#allocation9], %s5772_s3, %s5772_s3, %s5773_s18  }
  0x26   :  { %s5774_s26 = smov [#allocation11]   ;;  %s5775_s28 = smov [#allocation3]  }
  0x27   :  { %s90_s27 = sshll.u32 %s5774_s26, 4  ;;  %s30_s12 = sshll.u32 %s5775_s28, 4  ;;  %s91_s27 = int_to_ptr.vmem [resolvable:$true] %s90_s27  ;;  %s5880_s12 = int_to_ptr.vmem [resolvable:$true] %s30_s12 }
  0x28   :  { %s5626_s15 = scalar_lea.hbm %s6205_s7, 4096 }
  0x29   :  { %p5627_p2 = scmp.ne.s32.totalorder %s6205_s7, %s5626_s15  ;;  %p5630_p3 = scmp.lt.u32.totalorder %s5626_s15, %s6205_s7 }
  0x2b   :  { %p5632_p4 = pnand %p5630_p3, %p5627_p2 }
  0x2d   :  { %5635 = shalt.err (!%p5632_p4)
}
  0x2e   :  { %s5636_s5 = scalar_lea.vmem %s91_s27, 4096  ;;  %p5641_p6 = scmp.lt.s32.totalorder %s91_s27, %s91_s27 }
  0x2f   :  { %p5637_p5 = scmp.ne.s32.totalorder %s91_s27, %s5636_s5  ;;  %p5642_p7 = scmp.lt.s32.totalorder %s5636_s5, %s5636_s5 }
  0x31   :  { %p5643_p8 = por %p5642_p7, %p5641_p6 }
  0x33   :  { %p5644_p9 = pnand %p5643_p8, %p5637_p5 }
  0x35   :  { %5647 = shalt.err (!%p5644_p9)
}
  0x36   :  { %96 = dma.hbm_to_vmem [thread:$0]  %s6205_s7, 4096, %s91_s27, [#allocation12], %s5772_s3, %s5772_s3, %s5773_s18  }
  0x37   :  { %s5648_s25 = scalar_lea.hbm %s6200_s2, 8192 }
  0x38   :  { %p5649_p10 = scmp.ne.s32.totalorder %s6200_s2, %s5648_s25  ;;  %p5652_p11 = scmp.lt.u32.totalorder %s5648_s25, %s6200_s2 }
  0x3a   :  { %p5654_p12 = pnand %p5652_p11, %p5649_p10 }
  0x3c   :  { %5657 = shalt.err (!%p5654_p12)
}
  0x3d   :  { %s5658_s15 = scalar_lea.vmem %s5880_s12, 8192  ;;  %p5663_p0 = scmp.lt.s32.totalorder %s5880_s12, %s5880_s12 }
  0x3e   :  { %p5659_p13 = scmp.ne.s32.totalorder %s5880_s12, %s5658_s15  ;;  %p5664_p1 = scmp.lt.s32.totalorder %s5658_s15, %s5658_s15 }
  0x40   :  { %p5665_p2 = por %p5664_p1, %p5663_p0 }
  0x42   :  { %p5666_p3 = pnand %p5665_p2, %p5659_p13 }
  0x44   :  { %5669 = shalt.err (!%p5666_p3)
}
  0x45   :  { %36 = dma.hbm_to_vmem [thread:$0]  %s6200_s2, 8192, %s5880_s12, [#allocation4], %s5770_s29, %s5770_s29, %s5771_s30  }
  0x46   :  { %s5776_s16 = smov [#allocation7]   ;;  %s5777_s19 = smov [#allocation10]  }
  0x47   :  { %s54_s17 = sshll.u32 %s5776_s16, 4  ;;  %s78_s21 = sshll.u32 %s5777_s19, 4  ;;  %s55_s17 = int_to_ptr.vmem [resolvable:$true] %s54_s17  ;;  %s5917_s21 = int_to_ptr.vmem [resolvable:$true] %s78_s21 }
  0x48   :  { %s5670_s22 = scalar_lea.hbm %s6202_s4, 16384 }
  0x49   :  { %p5671_p4 = scmp.ne.s32.totalorder %s6202_s4, %s5670_s22  ;;  %p5674_p5 = scmp.lt.u32.totalorder %s5670_s22, %s6202_s4 }
  0x4b   :  { %p5676_p6 = pnand %p5674_p5, %p5671_p4 }
  0x4d   :  { %5679 = shalt.err (!%p5676_p6)
}
  0x4e   :  { %s5680_s2 = scalar_lea.vmem %s55_s17, 16384  ;;  %p5685_p8 = scmp.lt.s32.totalorder %s55_s17, %s55_s17 }
  0x4f   :  { %p5681_p7 = scmp.ne.s32.totalorder %s55_s17, %s5680_s2  ;;  %p5686_p9 = scmp.lt.s32.totalorder %s5680_s2, %s5680_s2 }
  0x51   :  { %p5687_p10 = por %p5686_p9, %p5685_p8 }
  0x53   :  { %p5688_p11 = pnand %p5687_p10, %p5681_p7 }
  0x55   :  { %5691 = shalt.err (!%p5688_p11)
}
  0x56   :  { %60 = dma.hbm_to_vmem [thread:$0]  %s6202_s4, 16384, %s55_s17, [#allocation6], %s5770_s29, %s5770_s29, %s5771_s30  }
  0x57   :  { %s5692_s15 = scalar_lea.hbm %s6204_s6, 4096 }
  0x58   :  { %p5693_p12 = scmp.ne.s32.totalorder %s6204_s6, %s5692_s15  ;;  %p5696_p13 = scmp.lt.u32.totalorder %s5692_s15, %s6204_s6 }
  0x5a   :  { %p5698_p0 = pnand %p5696_p13, %p5693_p12 }
  0x5c   :  { %5701 = shalt.err (!%p5698_p0)
}
  0x5d   :  { %s5702_s5 = scalar_lea.vmem %s5917_s21, 4096  ;;  %p5707_p2 = scmp.lt.s32.totalorder %s5917_s21, %s5917_s21 }
  0x5e   :  { %p5703_p1 = scmp.ne.s32.totalorder %s5917_s21, %s5702_s5  ;;  %p5708_p3 = scmp.lt.s32.totalorder %s5702_s5, %s5702_s5 }
  0x60   :  { %p5709_p4 = por %p5708_p3, %p5707_p2 }
  0x62   :  { %p5710_p5 = pnand %p5709_p4, %p5703_p1 }
  0x64   :  { %5713 = shalt.err (!%p5710_p5)
}
  0x65   :  { %84 = dma.hbm_to_vmem [thread:$0]  %s6204_s6, 4096, %s5917_s21, [#allocation9], %s5772_s3, %s5772_s3, %s5773_s18  }
  0x66   :  { %s5778_s30 = smov [#allocation13]   ;;  %s5779_s20 = smov [#allocation14]  }
  0x67   :  { %s103_s17 = sshll.u32 %s5778_s30, 4  ;;  %s112_s22 = sshll.u32 %s5779_s20, 4  ;;  %s104_s17 = int_to_ptr.vmem [resolvable:$true] %s103_s17  ;;  %s5954_s22 = int_to_ptr.vmem [resolvable:$true] %s112_s22 }
  0x68   :  { %s5714_s25 = scalar_lea.hbm %s6206_s8, 960 }
  0x69   :  { %p5715_p6 = scmp.ne.s32.totalorder %s6206_s8, %s5714_s25  ;;  %p5718_p7 = scmp.lt.u32.totalorder %s5714_s25, %s6206_s8 }
  0x6b   :  { %p5720_p8 = pnand %p5718_p7, %p5715_p6 }
  0x6d   :  { %5723 = shalt.err (!%p5720_p8)
}
  0x6e   :  { %s5724_s6 = scalar_lea.vmem %s104_s17, 960  ;;  %p5729_p10 = scmp.lt.s32.totalorder %s104_s17, %s104_s17 }
  0x6f   :  { %p5725_p9 = scmp.ne.s32.totalorder %s104_s17, %s5724_s6  ;;  %p5730_p11 = scmp.lt.s32.totalorder %s5724_s6, %s5724_s6 }
  0x71   :  { %p5731_p12 = por %p5730_p11, %p5729_p10 }
  0x73   :  { %p5732_p13 = pnand %p5731_p12, %p5725_p9 }
  0x75   :  { %5735 = shalt.err (!%p5732_p13)
}
  0x76   :  { %106 = dma.hbm_to_vmem [thread:$0]  %s6206_s8, 960, %s104_s17, [#allocation12]  }
  0x77   :  { %s5736_s14 = scalar_lea.hbm %s6207_s9, 2048 }
  0x78   :  { %p5737_p0 = scmp.ne.s32.totalorder %s6207_s9, %s5736_s14  ;;  %p5740_p1 = scmp.lt.u32.totalorder %s5736_s14, %s6207_s9 }
  0x7a   :  { %p5742_p2 = pnand %p5740_p1, %p5737_p0 }
  0x7c   :  { %5745 = shalt.err (!%p5742_p2)
}
  0x7d   :  { %s5746_s19 = scalar_lea.vmem %s5954_s22, 2048  ;;  %p5751_p4 = scmp.lt.s32.totalorder %s5954_s22, %s5954_s22 }
  0x7e   :  { %p5747_p3 = scmp.ne.s32.totalorder %s5954_s22, %s5746_s19  ;;  %p5752_p5 = scmp.lt.s32.totalorder %s5746_s19, %s5746_s19 }
  0x80   :  { %p5753_p6 = por %p5752_p5, %p5751_p4 }
  0x82   :  { %p5754_p7 = pnand %p5753_p6, %p5747_p3 }
  0x84   :  { %5757 = shalt.err (!%p5754_p7)
}
  0x85   :  { %s5780_s8 = smov 64   ;;  %s5781_s5 = smov 4  }
  0x86   :  { %118 = dma.hbm_to_vmem [thread:$0]  %s6207_s9, 2048, %s5954_s22, [#allocation15], %s5780_s8, %s5780_s8, %s5781_s5  }
  0x87   :  { %5758 = dma.done.wait [#allocation4], 8192  }
  0x88   :  { %5759 = vsyncadd [#allocation4], 4294959104 }
  0x89   :  { %5760 = dma.done.wait [#allocation6], 32768  }
  0x8a   :  { %5761 = vsyncadd [#allocation6], 4294934528 }
  0x8b   :  { %5762 = dma.done.wait [#allocation9], 12288  }
  0x8c   :  { %5763 = vsyncadd [#allocation9], 4294955008 }
  0x8d   :  { %5764 = dma.done.wait [#allocation12], 5056  }
  0x8e   :  { %5765 = vsyncadd [#allocation12], 4294962240 }
  0x8f   :  { %5766 = dma.done.wait [#allocation15], 2048  }
  0x90   :  { %5767 = vsyncadd [#allocation15], 4294965248  ;;  %v5782_v0 = vmov 0   ;;  %v4842_v1 = vld [vmem:[%s6199_s1 + $0x4] ss:$8 sps:$4 sm:$0xff]   ;;  %vm187_vm0 = vcmask 261120   ;;  %v157_v6 = vlaneseq }
  0x91   :  { %223 = vmatprep.mubr.bf16.mxu0 %v5782_v0  ;;  %v4844_v2 = vld [vmem:[%s6199_s1] ss:$8 sps:$4 sm:$0xff]   ;;  %191 = vmatprep.subr.bf16.mxu0 %v4842_v1  ;;  %v4845_v3 = vld [vmem:[%s6199_s1 + $0x14] ss:$8 sps:$4 sm:$0xff]   ;;  %v4847_v4 = vld [vmem:[%s6199_s1 + $0x10] ss:$8 sps:$4 sm:$0xff]  }
  0x92   :  { %192 = vmatpush1.bf16.msra.mxu0 %v4844_v2  ;;  %v150_v5 = vld [vmem:[%s6198_s0] sm:$0xf]  ;;  %v6000_v7 = vshrl.u32 %v157_v6, 7  ;;  %v4848_v20 = vld [vmem:[#allocation3 + $0x4] ss:$16 sps:$4 sm:$0xff]  }
  0x93   :  { %193 = vmatprep.subr.bf16.mxu0 %v4845_v3  ;;  %v155_v9 = vld [vmem:[#allocation13] sm:$0x3]  ;;  %v4850_v21 = vld [vmem:[#allocation3 + $0x8] ss:$16 sps:$4 sm:$0xff]   ;;  %v4852_v22 = vld [vmem:[#allocation3 + $0xc] ss:$16 sps:$4 sm:$0xff]   ;;  %699 = vmatprep.subr.bf16.mxu1 %v4848_v20 }
  0x94   :  { %v6003_v8 = vsub.s32 0, %v6000_v7  ;;  %v6006_v10 = vsub.s32 1, %v6000_v7  ;;  %v4853_v23 = vld [vmem:[#allocation3] ss:$16 sps:$4 sm:$0xff]   ;;  %v4854_v24 = vld [vmem:[#allocation3 + $0x24] ss:$16 sps:$4 sm:$0xff]  }
  0x95   :  { %v4858_v25 = vld [vmem:[#allocation3 + $0x2c] ss:$16 sps:$4 sm:$0xff]   ;;  %700 = vmatpush1.bf16.msra.mxu1 %v4853_v23  ;;  %v4856_v26 = vld [vmem:[#allocation3 + $0x28] ss:$16 sps:$4 sm:$0xff]   ;;  %v4859_v27 = vld [vmem:[#allocation3 + $0x20] ss:$16 sps:$4 sm:$0xff]  }
  0x96   :  { %194 = vmatpush1.bf16.msra.mxu0 %v4847_v4  ;;  %v160_v11 = vrot.slane %v155_v9, %v6003_v8  ;;  %v164_v12 = vrot.slane %v155_v9, %v6006_v10  ;;  %701 = vmatprep.subr.bf16.mxu1 %v4854_v24  ;;  %v4860_v28 = vld [vmem:[#allocation3 + $0x44] ss:$16 sps:$4 sm:$0xff]   ;;  %v4864_v29 = vld [vmem:[#allocation3 + $0x4c] ss:$16 sps:$4 sm:$0xff]   ;;  %v4862_v30 = vld [vmem:[#allocation3 + $0x48] ss:$16 sps:$4 sm:$0xff]  }
  0x97   :  { %740 = vmatprep.subr.bf16.mxu0 %v4852_v22  ;;  %v4865_v31 = vld [vmem:[#allocation3 + $0x40] ss:$16 sps:$4 sm:$0xff]   ;;  %v4866_v39 = vld [vmem:[#allocation3 + $0x64] ss:$16 sps:$4 sm:$0xff]   ;;  %v4870_v40 = vld [vmem:[#allocation3 + $0x6c] ss:$16 sps:$4 sm:$0xff]  }
  0x98   :  { %v4868_v41 = vld [vmem:[#allocation3 + $0x68] ss:$16 sps:$4 sm:$0xff]   ;;  %v4871_v42 = vld [vmem:[#allocation3 + $0x60] ss:$16 sps:$4 sm:$0xff]   ;;  %v4872_v43 = vld [vmem:[#allocation3 + $0x84] ss:$16 sps:$4 sm:$0xff]  }
  0x99   :  { %4301 = vmatmul.mubr.msk.bf16.vlgmr.msra.gmra.mrb[0].mxu0 %vm187_vm0, %v150_v5  ;;  %702 = vmatpush1.bf16.msra.mxu1 %v4859_v27  ;;  %v4876_v44 = vld [vmem:[#allocation3 + $0x8c] ss:$16 sps:$4 sm:$0xff]   ;;  %v4874_v45 = vld [vmem:[#allocation3 + $0x88] ss:$16 sps:$4 sm:$0xff]   ;;  %v4877_v46 = vld [vmem:[#allocation3 + $0x80] ss:$16 sps:$4 sm:$0xff]  }
  0x9a   :  { %741 = vmatpush1.bf16.msra.mxu0 %v4850_v21  ;;  %703 = vmatprep.subr.bf16.mxu1 %v4860_v28  ;;  %v4878_v47 = vld [vmem:[#allocation3 + $0xa4] ss:$16 sps:$4 sm:$0xff]   ;;  %v4882_v48 = vld [vmem:[#allocation3 + $0xac] ss:$16 sps:$4 sm:$0xff]   ;;  %v4880_v49 = vld [vmem:[#allocation3 + $0xa8] ss:$16 sps:$4 sm:$0xff]  }
  0x9b   :  { %742 = vmatprep.subr.bf16.mxu0 %v4858_v25  ;;  %v4883_v50 = vld [vmem:[#allocation3 + $0xa0] ss:$16 sps:$4 sm:$0xff]   ;;  %v4884_v51 = vld [vmem:[#allocation3 + $0xc4] ss:$16 sps:$4 sm:$0xff]   ;;  %v4888_v52 = vld [vmem:[#allocation3 + $0xcc] ss:$16 sps:$4 sm:$0xff]  }
  0x9c   :  { %v4886_v53 = vld [vmem:[#allocation3 + $0xc8] ss:$16 sps:$4 sm:$0xff]   ;;  %v4889_v54 = vld [vmem:[#allocation3 + $0xc0] ss:$16 sps:$4 sm:$0xff]   ;;  %v4890_v55 = vld [vmem:[#allocation3 + $0xe4] ss:$16 sps:$4 sm:$0xff]  }
  0x9d   :  { %704 = vmatpush1.bf16.msra.mxu1 %v4865_v31  ;;  %v4894_v56 = vld [vmem:[#allocation3 + $0xec] ss:$16 sps:$4 sm:$0xff]   ;;  %v4892_v57 = vld [vmem:[#allocation3 + $0xe8] ss:$16 sps:$4 sm:$0xff]   ;;  %v4895_v58 = vld [vmem:[#allocation3 + $0xe0] ss:$16 sps:$4 sm:$0xff]  }
  0x9e   :  { %743 = vmatpush1.bf16.msra.mxu0 %v4856_v26  ;;  %705 = vmatprep.subr.bf16.mxu1 %v4866_v39  ;;  %v4896_v59 = vld [vmem:[#allocation3 + $0x104] ss:$16 sps:$4 sm:$0xff]   ;;  %v4900_v60 = vld [vmem:[#allocation3 + $0x10c] ss:$16 sps:$4 sm:$0xff]   ;;  %v4898_v61 = vld [vmem:[#allocation3 + $0x108] ss:$16 sps:$4 sm:$0xff]  }
  0x9f   :  { %744 = vmatprep.subr.bf16.mxu0 %v4864_v29  ;;  %v4901_v62 = vld [vmem:[#allocation3 + $0x100] ss:$16 sps:$4 sm:$0xff]   ;;  %v4902_v63 = vld [vmem:[#allocation3 + $0x124] ss:$16 sps:$4 sm:$0xff]   ;;  %v4906_v0 = vld [vmem:[#allocation3 + $0x12c] ss:$16 sps:$4 sm:$0xff]  }
  0xa0   :  { %v4904_v1 = vld [vmem:[#allocation3 + $0x128] ss:$16 sps:$4 sm:$0xff]   ;;  %v4907_v2 = vld [vmem:[#allocation3 + $0x120] ss:$16 sps:$4 sm:$0xff]   ;;  %v4908_v3 = vld [vmem:[#allocation3 + $0x144] ss:$16 sps:$4 sm:$0xff]  }
  0xa1   :  { %706 = vmatpush1.bf16.msra.mxu1 %v4871_v42  ;;  %v4912_v4 = vld [vmem:[#allocation3 + $0x14c] ss:$16 sps:$4 sm:$0xff]   ;;  %v4910_v5 = vld [vmem:[#allocation3 + $0x148] ss:$16 sps:$4 sm:$0xff]   ;;  %v4913_v6 = vld [vmem:[#allocation3 + $0x140] ss:$16 sps:$4 sm:$0xff]  }
  0xa2   :  { %745 = vmatpush1.bf16.msra.mxu0 %v4862_v30  ;;  %707 = vmatprep.subr.bf16.mxu1 %v4872_v43  ;;  %v4914_v9 = vld [vmem:[#allocation3 + $0x164] ss:$16 sps:$4 sm:$0xff]   ;;  %v4928_v20 = vld [vmem:[#allocation3 + $0x1a8] ss:$16 sps:$4 sm:$0xff]   ;;  %v4931_v21 = vld [vmem:[#allocation3 + $0x1a0] ss:$16 sps:$4 sm:$0xff]  }
  0xa3   :  { %746 = vmatprep.subr.bf16.mxu0 %v4870_v40  ;;  %v4932_v22 = vld [vmem:[#allocation3 + $0x1c4] ss:$16 sps:$4 sm:$0xff]   ;;  %v4936_v23 = vld [vmem:[#allocation3 + $0x1cc] ss:$16 sps:$4 sm:$0xff]   ;;  %v4934_v24 = vld [vmem:[#allocation3 + $0x1c8] ss:$16 sps:$4 sm:$0xff]  }
  0xa4   :  { %v4937_v25 = vld [vmem:[#allocation3 + $0x1c0] ss:$16 sps:$4 sm:$0xff]   ;;  %v4938_v26 = vld [vmem:[#allocation3 + $0x1e4] ss:$16 sps:$4 sm:$0xff]   ;;  %v4942_v27 = vld [vmem:[#allocation3 + $0x1ec] ss:$16 sps:$4 sm:$0xff]  }
  0xa5   :  { %708 = vmatpush1.bf16.msra.mxu1 %v4877_v46  ;;  %v4940_v28 = vld [vmem:[#allocation3 + $0x1e8] ss:$16 sps:$4 sm:$0xff]   ;;  %v4943_v29 = vld [vmem:[#allocation3 + $0x1e0] ss:$16 sps:$4 sm:$0xff]  }
  0xa6   :  { %747 = vmatpush1.bf16.msra.mxu0 %v4868_v41  ;;  %709 = vmatprep.subr.bf16.mxu1 %v4878_v47 }
  0xa7   :  { %748 = vmatprep.subr.bf16.mxu0 %v4876_v44 }
  0xa9   :  { %710 = vmatpush1.bf16.msra.mxu1 %v4883_v50 }
  0xaa   :  { %749 = vmatpush1.bf16.msra.mxu0 %v4874_v45  ;;  %711 = vmatprep.subr.bf16.mxu1 %v4884_v51 }
  0xab   :  { %750 = vmatprep.subr.bf16.mxu0 %v4882_v48 }
  0xad   :  { %712 = vmatpush1.bf16.msra.mxu1 %v4889_v54 }
  0xae   :  { %751 = vmatpush1.bf16.msra.mxu0 %v4880_v49  ;;  %713 = vmatprep.subr.bf16.mxu1 %v4890_v55 }
  0xaf   :  { %752 = vmatprep.subr.bf16.mxu0 %v4888_v52 }
  0xb1   :  { %714 = vmatpush1.bf16.msra.mxu1 %v4895_v58  ;;  %v291_v58 = vld [vmem:[#allocation13 + $0x6] sm:$0xf] }
  0xb2   :  { %753 = vmatpush1.bf16.msra.mxu0 %v4886_v53  ;;  %715 = vmatprep.subr.bf16.mxu1 %v4896_v59  ;;  %v6025_v59 = vsub.s32 2, %v6000_v7 }
  0xb3   :  { %754 = vmatprep.subr.bf16.mxu0 %v4894_v56 }
  0xb5   :  { %716 = vmatpush1.bf16.msra.mxu1 %v4901_v62  ;;  %v6030_v62 = vsub.s32 3, %v6000_v7 }
  0xb6   :  { %755 = vmatpush1.bf16.msra.mxu0 %v4892_v57  ;;  %717 = vmatprep.subr.bf16.mxu1 %v4902_v63 }
  0xb7   :  { %756 = vmatprep.subr.bf16.mxu0 %v4900_v60  ;;  %v362_v60 = vrot.slane %v291_v58, %v6003_v8 }
  0xb9   :  { %718 = vmatpush1.bf16.msra.mxu1 %v4907_v2 }
  0xba   :  { %757 = vmatpush1.bf16.msra.mxu0 %v4898_v61  ;;  %719 = vmatprep.subr.bf16.mxu1 %v4908_v3  ;;  %v366_v61 = vrot.slane %v291_v58, %v6006_v10 }
  0xbb   :  { %758 = vmatprep.subr.bf16.mxu0 %v4906_v0  ;;  %v370_v0 = vrot.slane %v291_v58, %v6025_v59 }
  0xbd   :  { %720 = vmatpush1.bf16.msra.mxu1 %v4913_v6  ;;  %v374_v6 = vrot.slane %v291_v58, %v6030_v62  ;;  %v4983_v58 = vld [vmem:[#allocation5 + $0xc8] ss:$16 sps:$4 sm:$0xff]  }
  0xbe   :  { %759 = vmatpush1.bf16.msra.mxu0 %v4904_v1  ;;  %721 = vmatprep.subr.bf16.mxu1 %v4914_v9 }
  0xbf   :  { %760 = vmatprep.subr.bf16.mxu0 %v4912_v4 }
  0xc2   :  { %761 = vmatpush1.bf16.msra.mxu0 %v4910_v5 }
 0x16c   :  { %v225_v13 = vpop.f32.mrb[0].mxu0 }
 0x16d   :  { %v226_v14 = vadd.f32 %v225_v13, %v160_v11  ;;  %v227_v15 = vpop.f32.mrb[1].mxu0  ;;  %v4918_v11 = vld [vmem:[#allocation3 + $0x16c] ss:$16 sps:$4 sm:$0xff]   ;;  %v4919_v13 = vld [vmem:[#allocation3 + $0x160] ss:$16 sps:$4 sm:$0xff]  }
 0x16e   :  { %v228_v16 = vadd.f32 %v227_v15, %v164_v12  ;;  %v229_v17 = vpop.f32.mrb[2].mxu0  ;;  %v4916_v12 = vld [vmem:[#allocation3 + $0x168] ss:$16 sps:$4 sm:$0xff]   ;;  %762 = vmatprep.subr.bf16.mxu0 %v4918_v11  ;;  %v4924_v15 = vld [vmem:[#allocation3 + $0x18c] ss:$16 sps:$4 sm:$0xff]   ;;  %722 = vmatpush1.bf16.msra.mxu1 %v4919_v13 }
 0x16f   :  { %v230_v18 = vpop.f32.mrb[3].mxu0  ;;  %763 = vmatpush1.bf16.msra.mxu0 %v4916_v12  ;;  %v4925_v17 = vld [vmem:[#allocation3 + $0x180] ss:$16 sps:$4 sm:$0xff]  }
 0x170   :  { %v234_v19 = vadd.f32 %v228_v16, %v226_v14  ;;  %764 = vmatprep.subr.bf16.mxu0 %v4924_v15  ;;  %v4926_v18 = vld [vmem:[#allocation3 + $0x1a4] ss:$16 sps:$4 sm:$0xff]  }
 0x172   :  { %235 = vadd.xlane.f32.xlu0 %v234_v19  ;;  %v4930_v19 = vld [vmem:[#allocation3 + $0x1ac] ss:$16 sps:$4 sm:$0xff]  }
 0x1ff   :  { %v236_v32 = vpop.xlane.xlu0 %235 }
 0x200   :  { %v238_v33 = vmul.f32 0.00390625, %v236_v32 }
 0x202   :  { %v6010_v34 = vsub.f32 %v226_v14, %v238_v33  ;;  %v6012_v35 = vsub.f32 %v228_v16, %v238_v33  ;;  %v4920_v14 = vld [vmem:[#allocation3 + $0x184] ss:$16 sps:$4 sm:$0xff]   ;;  %v4922_v16 = vld [vmem:[#allocation3 + $0x188] ss:$16 sps:$4 sm:$0xff]   ;;  %v232_v33 = vld [vmem:[#allocation13 + $0x2] sm:$0x3] }
 0x203   :  { %723 = vmatprep.subr.bf16.mxu1 %v4920_v14  ;;  %765 = vmatpush1.bf16.msra.mxu0 %v4922_v16 }
 0x204   :  { %v241_v36 = vmul.f32 %v6010_v34, %v6010_v34  ;;  %v242_v37 = vmul.f32 %v6012_v35, %v6012_v35  ;;  %724 = vmatpush1.bf16.msra.mxu1 %v4925_v17  ;;  %766 = vmatprep.subr.bf16.mxu0 %v4930_v19  ;;  %v4946_v19 = vld [vmem:[#allocation5 + $0x4] ss:$16 sps:$4 sm:$0xff]  }
 0x205   :  { %725 = vmatprep.subr.bf16.mxu1 %v4926_v18  ;;  %v4944_v18 = vld [vmem:[#allocation5] ss:$16 sps:$4 sm:$0xff]  }
 0x206   :  { %v243_v38 = vadd.f32 %v242_v37, %v241_v36  ;;  %v233_v36 = vld [vmem:[#allocation13 + $0x4] sm:$0x3]  ;;  %v255_v37 = vrot.slane %v232_v33, %v6003_v8 }
 0x207   :  { %767 = vmatpush1.bf16.msra.mxu0 %v4928_v20  ;;  %v268_v41 = vrot.slane %v233_v36, %v6003_v8  ;;  %v272_v42 = vrot.slane %v233_v36, %v6006_v10  ;;  %v4947_v20 = vld [vmem:[#allocation5 + $0x8] ss:$16 sps:$4 sm:$0xff]  }
 0x208   :  { %244 = vadd.xlane.f32.xlu0 %v243_v38  ;;  %726 = vmatpush1.bf16.msra.mxu1 %v4931_v21  ;;  %v259_v38 = vrot.slane %v232_v33, %v6006_v10  ;;  %v4949_v21 = vld [vmem:[#allocation5 + $0xc] ss:$16 sps:$4 sm:$0xff]   ;;  %v4965_v33 = vld [vmem:[#allocation5 + $0x68] ss:$16 sps:$4 sm:$0xff]  }
 0x209   :  { %727 = vmatprep.subr.bf16.mxu1 %v4932_v22  ;;  %768 = vmatprep.subr.bf16.mxu0 %v4936_v23  ;;  %v4952_v22 = vld [vmem:[#allocation5 + $0x24] ss:$16 sps:$4 sm:$0xff]   ;;  %v4955_v23 = vld [vmem:[#allocation5 + $0x2c] ss:$16 sps:$4 sm:$0xff]  }
 0x20b   :  { %769 = vmatpush1.bf16.msra.mxu0 %v4934_v24  ;;  %v4950_v24 = vld [vmem:[#allocation5 + $0x20] ss:$16 sps:$4 sm:$0xff]  }
 0x20c   :  { %728 = vmatpush1.bf16.msra.mxu1 %v4937_v25  ;;  %770 = vmatprep.subr.bf16.mxu0 %v4942_v27  ;;  %v4953_v25 = vld [vmem:[#allocation5 + $0x28] ss:$16 sps:$4 sm:$0xff]   ;;  %v4961_v27 = vld [vmem:[#allocation5 + $0x4c] ss:$16 sps:$4 sm:$0xff]  }
 0x20d   :  { %729 = vmatprep.subr.bf16.mxu1 %v4938_v26  ;;  %v4958_v26 = vld [vmem:[#allocation5 + $0x44] ss:$16 sps:$4 sm:$0xff]  }
 0x20f   :  { %771 = vmatpush1.bf16.msra.mxu0 %v4940_v28  ;;  %v4956_v28 = vld [vmem:[#allocation5 + $0x40] ss:$16 sps:$4 sm:$0xff]  }
 0x210   :  { %730 = vmatpush1.bf16.msra.mxu1 %v4943_v29  ;;  %1764 = vmatprep.subr.bf16.mxu0 %v4949_v21  ;;  %v4959_v29 = vld [vmem:[#allocation5 + $0x48] ss:$16 sps:$4 sm:$0xff]   ;;  %v5016_v21 = vld [vmem:[#allocation5 + $0x180] ss:$16 sps:$4 sm:$0xff]  }
 0x211   :  { %1682 = vmatprep.subr.bf16.mxu1 %v4946_v19  ;;  %v5018_v19 = vld [vmem:[#allocation5 + $0x184] ss:$16 sps:$4 sm:$0xff]  }
 0x295   :  { %v245_v30 = vpop.xlane.xlu0 %244 }
 0x296   :  { %v246_v31 = vmul.f32 0.00390625, %v245_v30  ;;  %v4964_v30 = vld [vmem:[#allocation5 + $0x64] ss:$16 sps:$4 sm:$0xff]  }
 0x298   :  { %v247_v32 = vadd.f32 1e-05, %v246_v31  ;;  %v4967_v31 = vld [vmem:[#allocation5 + $0x6c] ss:$16 sps:$4 sm:$0xff]  }
 0x29a   :  { %5536 = vrsqrt.f32 %v247_v32  ;;  %v4962_v32 = vld [vmem:[#allocation5 + $0x60] ss:$16 sps:$4 sm:$0xff]  }
 0x2a4   :  { %v5537_v39 = vpop.eup %5536 }
 0x2a5   :  { %v250_v40 = vmul.f32 %v5537_v39, %v6012_v35  ;;  %v249_v43 = vmul.f32 %v5537_v39, %v6010_v34 }
 0x2a7   :  { %v263_v44 = vmul.f32 %v259_v38, %v250_v40  ;;  %v262_v45 = vmul.f32 %v255_v37, %v249_v43 }
 0x2a9   :  { %v276_v46 = vadd.f32 %v272_v42, %v263_v44  ;;  %v275_v47 = vadd.f32 %v268_v41, %v262_v45 }
 0x2ab   :  { %v4303_v48 = vmul.f32 -1.442695, %v276_v46  ;;  %v4302_v49 = vmul.f32 -1.442695, %v275_v47 }
 0x2ad   :  { %5538 = vpow2.f32 %v4303_v48 }
 0x2ae   :  { %5540 = vpow2.f32 %v4302_v49  ;;  %v4970_v49 = vld [vmem:[#allocation5 + $0x84] ss:$16 sps:$4 sm:$0xff]  }
 0x2b7   :  { %v5539_v50 = vpop.eup %5538 }
 0x2b8   :  { %v5541_v51 = vpop.eup %5540  ;;  %v284_v52 = vadd.f32 1.0, %v5539_v50  ;;  %v4973_v50 = vld [vmem:[#allocation5 + $0x8c] ss:$16 sps:$4 sm:$0xff]  }
 0x2b9   :  { %v283_v53 = vadd.f32 1.0, %v5541_v51  ;;  %v4968_v51 = vld [vmem:[#allocation5 + $0x80] ss:$16 sps:$4 sm:$0xff]  }
 0x2ba   :  { %5542 = vrcp.f32 %v284_v52  ;;  %v4971_v52 = vld [vmem:[#allocation5 + $0x88] ss:$16 sps:$4 sm:$0xff]  }
 0x2bb   :  { %5544 = vrcp.f32 %v283_v53  ;;  %v4976_v53 = vld [vmem:[#allocation5 + $0xa4] ss:$16 sps:$4 sm:$0xff]  }
 0x2c4   :  { %v5543_v35 = vpop.eup %5542 }
 0x2c5   :  { %v5545_v54 = vpop.eup %5544  ;;  %v290_v55 = vmul.f32 %v5543_v35, %v276_v46  ;;  %v4974_v35 = vld [vmem:[#allocation5 + $0xa0] ss:$16 sps:$4 sm:$0xff]  }
 0x2c6   :  { %v289_v56 = vmul.f32 %v5545_v54, %v275_v47  ;;  %v4977_v54 = vld [vmem:[#allocation5 + $0xa8] ss:$16 sps:$4 sm:$0xff]  }
 0x2c7   :  { %v293_v57 = vpack.c.bf16 %v290_v55, %v290_v55  ;;  %v4979_v55 = vld [vmem:[#allocation5 + $0xac] ss:$16 sps:$4 sm:$0xff]  }
 0x2c8   :  { %v292_v34 = vpack.c.bf16 %v289_v56, %v289_v56  ;;  %v4982_v56 = vld [vmem:[#allocation5 + $0xc4] ss:$16 sps:$4 sm:$0xff]  }
 0x2c9   :  { %731 = vmatprep.mubr.bf16.mxu1 %v293_v57  ;;  %772 = vmatprep.mubr.bf16.mxu0 %v293_v57  ;;  %v4985_v57 = vld [vmem:[#allocation5 + $0xcc] ss:$16 sps:$4 sm:$0xff]  }
 0x2ca   :  { %732 = vmatmul.mubr.bf16.vlgmr.msra.gmra.mrb[0].mxu1 %v292_v34  ;;  %773 = vmatmul.mubr.bf16.vlgmr.msra.gmra.mrb[4].mxu0 %v292_v34  ;;  %v4980_v34 = vld [vmem:[#allocation5 + $0xc0] ss:$16 sps:$4 sm:$0xff]  }
 0x2cb   :  { %1683 = vmatpush1.bf16.msra.mxu1 %v4944_v18  ;;  %1765 = vmatpush1.bf16.msra.mxu0 %v4947_v20  ;;  %v5013_v18 = vld [vmem:[#allocation5 + $0x168] ss:$16 sps:$4 sm:$0xff]   ;;  %v5021_v20 = vld [vmem:[#allocation5 + $0x18c] ss:$16 sps:$4 sm:$0xff]  }
 0x2cc   :  { %1684 = vmatprep.subr.bf16.mxu1 %v4952_v22  ;;  %1766 = vmatprep.subr.bf16.mxu0 %v4955_v23  ;;  %v5019_v22 = vld [vmem:[#allocation5 + $0x188] ss:$16 sps:$4 sm:$0xff]   ;;  %v5024_v23 = vld [vmem:[#allocation5 + $0x1a4] ss:$16 sps:$4 sm:$0xff]  }
 0x2cf   :  { %1685 = vmatpush1.bf16.msra.mxu1 %v4950_v24  ;;  %1767 = vmatpush1.bf16.msra.mxu0 %v4953_v25  ;;  %v5027_v24 = vld [vmem:[#allocation5 + $0x1ac] ss:$16 sps:$4 sm:$0xff]   ;;  %v5022_v25 = vld [vmem:[#allocation5 + $0x1a0] ss:$16 sps:$4 sm:$0xff]  }
 0x2d0   :  { %1686 = vmatprep.subr.bf16.mxu1 %v4958_v26  ;;  %1768 = vmatprep.subr.bf16.mxu0 %v4961_v27  ;;  %v5025_v26 = vld [vmem:[#allocation5 + $0x1a8] ss:$16 sps:$4 sm:$0xff]   ;;  %v5030_v27 = vld [vmem:[#allocation5 + $0x1c4] ss:$16 sps:$4 sm:$0xff]  }
 0x2d3   :  { %1687 = vmatpush1.bf16.msra.mxu1 %v4956_v28  ;;  %1769 = vmatpush1.bf16.msra.mxu0 %v4959_v29  ;;  %v5033_v28 = vld [vmem:[#allocation5 + $0x1cc] ss:$16 sps:$4 sm:$0xff]   ;;  %v5028_v29 = vld [vmem:[#allocation5 + $0x1c0] ss:$16 sps:$4 sm:$0xff]  }
 0x2d4   :  { %1688 = vmatprep.subr.bf16.mxu1 %v4964_v30  ;;  %1770 = vmatprep.subr.bf16.mxu0 %v4967_v31  ;;  %v5031_v30 = vld [vmem:[#allocation5 + $0x1c8] ss:$16 sps:$4 sm:$0xff]   ;;  %v5036_v31 = vld [vmem:[#allocation5 + $0x1e4] ss:$16 sps:$4 sm:$0xff]  }
 0x2d7   :  { %1689 = vmatpush1.bf16.msra.mxu1 %v4962_v32  ;;  %1771 = vmatpush1.bf16.msra.mxu0 %v4965_v33  ;;  %v5039_v32 = vld [vmem:[#allocation5 + $0x1ec] ss:$16 sps:$4 sm:$0xff]   ;;  %v5034_v33 = vld [vmem:[#allocation5 + $0x1e0] ss:$16 sps:$4 sm:$0xff]  }
 0x2d8   :  { %1690 = vmatprep.subr.bf16.mxu1 %v4970_v49  ;;  %1772 = vmatprep.subr.bf16.mxu0 %v4973_v50 }
 0x2db   :  { %1691 = vmatpush1.bf16.msra.mxu1 %v4968_v51  ;;  %1773 = vmatpush1.bf16.msra.mxu0 %v4971_v52 }
 0x2dc   :  { %1692 = vmatprep.subr.bf16.mxu1 %v4976_v53  ;;  %1774 = vmatprep.subr.bf16.mxu0 %v4979_v55 }
 0x2df   :  { %1693 = vmatpush1.bf16.msra.mxu1 %v4974_v35  ;;  %1775 = vmatpush1.bf16.msra.mxu0 %v4977_v54 }
 0x2e0   :  { %1694 = vmatprep.subr.bf16.mxu1 %v4982_v56  ;;  %1776 = vmatprep.subr.bf16.mxu0 %v4985_v57 }
 0x2e3   :  { %1695 = vmatpush1.bf16.msra.mxu1 %v4980_v34  ;;  %1777 = vmatpush1.bf16.msra.mxu0 %v4983_v58 }
 0x39d   :  { %v733_v63 = vpop.f32.mrb[0].mxu1  ;;  %v774_v1 = vpop.f32.mrb[4].mxu0 }
 0x39e   :  { %v734_v2 = vadd.f32 %v733_v63, %v362_v60  ;;  %v735_v3 = vpop.f32.mrb[1].mxu1  ;;  %v776_v4 = vpop.f32.mrb[5].mxu0  ;;  %v775_v14 = vadd.f32 %v774_v1, %v370_v0  ;;  %v4988_v60 = vld [vmem:[#allocation5 + $0xe4] ss:$16 sps:$4 sm:$0xff]   ;;  %v4986_v63 = vld [vmem:[#allocation5 + $0xe0] ss:$16 sps:$4 sm:$0xff]  }
 0x39f   :  { %v736_v5 = vadd.f32 %v735_v3, %v366_v61  ;;  %v737_v9 = vpop.f32.mrb[2].mxu1  ;;  %v778_v11 = vpop.f32.mrb[6].mxu0  ;;  %v777_v16 = vadd.f32 %v776_v4, %v374_v6  ;;  %v4991_v61 = vld [vmem:[#allocation5 + $0xec] ss:$16 sps:$4 sm:$0xff]   ;;  %v4989_v0 = vld [vmem:[#allocation5 + $0xe8] ss:$16 sps:$4 sm:$0xff]   ;;  %1696 = vmatprep.subr.bf16.mxu1 %v4988_v60 }
 0x3a0   :  { %v738_v12 = vpop.f32.mrb[3].mxu1  ;;  %v779_v13 = vpop.f32.mrb[7].mxu0  ;;  %1778 = vmatprep.subr.bf16.mxu0 %v4991_v61  ;;  %v4994_v1 = vld [vmem:[#allocation5 + $0x104] ss:$16 sps:$4 sm:$0xff]   ;;  %1697 = vmatpush1.bf16.msra.mxu1 %v4986_v63  ;;  %v4992_v3 = vld [vmem:[#allocation5 + $0x100] ss:$16 sps:$4 sm:$0xff]  }
 0x3a1   :  { %v783_v15 = vadd.f32 %v736_v5, %v734_v2  ;;  %1779 = vmatpush1.bf16.msra.mxu0 %v4989_v0  ;;  %v4995_v4 = vld [vmem:[#allocation5 + $0x108] ss:$16 sps:$4 sm:$0xff]   ;;  %1698 = vmatprep.subr.bf16.mxu1 %v4994_v1  ;;  %v5003_v6 = vld [vmem:[#allocation5 + $0x12c] ss:$16 sps:$4 sm:$0xff]   ;;  %v4998_v9 = vld [vmem:[#allocation5 + $0x120] ss:$16 sps:$4 sm:$0xff]  }
 0x3a2   :  { %v5001_v11 = vld [vmem:[#allocation5 + $0x128] ss:$16 sps:$4 sm:$0xff]   ;;  %v5006_v12 = vld [vmem:[#allocation5 + $0x144] ss:$16 sps:$4 sm:$0xff]   ;;  %v5009_v13 = vld [vmem:[#allocation5 + $0x14c] ss:$16 sps:$4 sm:$0xff]  }
 0x3a3   :  { %v784_v17 = vadd.f32 %v783_v15, %v775_v14  ;;  %v5007_v15 = vld [vmem:[#allocation5 + $0x148] ss:$16 sps:$4 sm:$0xff]  }
 0x3a4   :  { %1699 = vmatpush1.bf16.msra.mxu1 %v4992_v3 }
 0x3a5   :  { %v785_v7 = vadd.f32 %v784_v17, %v777_v16  ;;  %v5015_v17 = vld [vmem:[#allocation5 + $0x16c] ss:$16 sps:$4 sm:$0xff]  }
 0x3a7   :  { %786 = vadd.xlane.f32.xlu1 %v785_v7  ;;  %v5010_v7 = vld [vmem:[#allocation5 + $0x160] ss:$16 sps:$4 sm:$0xff]  }
 0x434   :  { %v787_v36 = vpop.xlane.xlu1 %786 }
 0x435   :  { %v789_v37 = vmul.f32 0.001953125, %v787_v36  ;;  %v5037_v36 = vld [vmem:[#allocation5 + $0x1e8] ss:$16 sps:$4 sm:$0xff]  }
 0x437   :  { %v6034_v38 = vsub.f32 %v734_v2, %v789_v37  ;;  %v6036_v39 = vsub.f32 %v736_v5, %v789_v37  ;;  %v6038_v40 = vsub.f32 %v775_v14, %v789_v37  ;;  %v6040_v41 = vsub.f32 %v777_v16, %v789_v37  ;;  %v4997_v2 = vld [vmem:[#allocation5 + $0x10c] ss:$16 sps:$4 sm:$0xff]   ;;  %v5000_v5 = vld [vmem:[#allocation5 + $0x124] ss:$16 sps:$4 sm:$0xff]   ;;  %v5004_v14 = vld [vmem:[#allocation5 + $0x140] ss:$16 sps:$4 sm:$0xff]  }
 0x438   :  { %1780 = vmatprep.subr.bf16.mxu0 %v4997_v2  ;;  %1700 = vmatprep.subr.bf16.mxu1 %v5000_v5  ;;  %v5012_v16 = vld [vmem:[#allocation5 + $0x164] ss:$16 sps:$4 sm:$0xff]  }
 0x439   :  { %v794_v42 = vmul.f32 %v6034_v38, %v6034_v38  ;;  %v795_v43 = vmul.f32 %v6036_v39, %v6036_v39  ;;  %v796_v44 = vmul.f32 %v6038_v40, %v6038_v40  ;;  %v797_v46 = vmul.f32 %v6040_v41, %v6040_v41  ;;  %1781 = vmatpush1.bf16.msra.mxu0 %v4995_v4  ;;  %v5042_v37 = vld [vmem:[#allocation5 + $0x204] ss:$16 sps:$4 sm:$0xff]  }
 0x43a   :  { %1782 = vmatprep.subr.bf16.mxu0 %v5003_v6  ;;  %1701 = vmatpush1.bf16.msra.mxu1 %v4998_v9 }
 0x43b   :  { %v798_v45 = vadd.f32 %v795_v43, %v794_v42  ;;  %1702 = vmatprep.subr.bf16.mxu1 %v5006_v12  ;;  %v5045_v42 = vld [vmem:[#allocation5 + $0x20c] ss:$16 sps:$4 sm:$0xff]  }
 0x43d   :  { %v799_v47 = vadd.f32 %v798_v45, %v796_v44  ;;  %1783 = vmatpush1.bf16.msra.mxu0 %v5001_v11 }
 0x43e   :  { %1784 = vmatprep.subr.bf16.mxu0 %v5009_v13  ;;  %1703 = vmatpush1.bf16.msra.mxu1 %v5004_v14 }
 0x43f   :  { %v800_v48 = vadd.f32 %v799_v47, %v797_v46  ;;  %1704 = vmatprep.subr.bf16.mxu1 %v5012_v16  ;;  %v781_v46 = vld [vmem:[#allocation13 + $0xa] sm:$0xf]  ;;  %v782_v47 = vld [vmem:[#allocation13 + $0xe] sm:$0xf] }
 0x440   :  { %v814_v49 = vrot.slane %v781_v46, %v6003_v8  ;;  %v826_v50 = vrot.slane %v781_v46, %v6030_v62  ;;  %v822_v51 = vrot.slane %v781_v46, %v6025_v59  ;;  %v843_v53 = vrot.slane %v782_v47, %v6006_v10 }
 0x441   :  { %801 = vadd.xlane.f32.xlu1 %v800_v48  ;;  %1785 = vmatpush1.bf16.msra.mxu0 %v5007_v15  ;;  %v818_v48 = vrot.slane %v781_v46, %v6006_v10  ;;  %v839_v35 = vrot.slane %v782_v47, %v6003_v8  ;;  %v851_v54 = vrot.slane %v782_v47, %v6030_v62  ;;  %v5075_v46 = vld [vmem:[#allocation5 + $0x2ac] ss:$16 sps:$4 sm:$0xff]  }
 0x442   :  { %1786 = vmatprep.subr.bf16.mxu0 %v5015_v17  ;;  %1705 = vmatpush1.bf16.msra.mxu1 %v5010_v7  ;;  %v847_v55 = vrot.slane %v782_v47, %v6025_v59  ;;  %v5070_v47 = vld [vmem:[#allocation5 + $0x2a0] ss:$16 sps:$4 sm:$0xff]  }
 0x443   :  { %1706 = vmatprep.subr.bf16.mxu1 %v5018_v19  ;;  %v5043_v19 = vld [vmem:[#allocation5 + $0x208] ss:$16 sps:$4 sm:$0xff]  }
 0x445   :  { %1787 = vmatpush1.bf16.msra.mxu0 %v5013_v18  ;;  %v5040_v18 = vld [vmem:[#allocation5 + $0x200] ss:$16 sps:$4 sm:$0xff]  }
 0x446   :  { %1788 = vmatprep.subr.bf16.mxu0 %v5021_v20  ;;  %1707 = vmatpush1.bf16.msra.mxu1 %v5016_v21 }
 0x447   :  { %1708 = vmatprep.subr.bf16.mxu1 %v5024_v23  ;;  %v5051_v23 = vld [vmem:[#allocation5 + $0x22c] ss:$16 sps:$4 sm:$0xff]  }
 0x449   :  { %1789 = vmatpush1.bf16.msra.mxu0 %v5019_v22  ;;  %v5048_v22 = vld [vmem:[#allocation5 + $0x224] ss:$16 sps:$4 sm:$0xff]  }
 0x44a   :  { %1790 = vmatprep.subr.bf16.mxu0 %v5027_v24  ;;  %1709 = vmatpush1.bf16.msra.mxu1 %v5022_v25  ;;  %v5046_v25 = vld [vmem:[#allocation5 + $0x220] ss:$16 sps:$4 sm:$0xff]  }
 0x44b   :  { %1710 = vmatprep.subr.bf16.mxu1 %v5030_v27  ;;  %v5054_v27 = vld [vmem:[#allocation5 + $0x244] ss:$16 sps:$4 sm:$0xff]  }
 0x44d   :  { %1791 = vmatpush1.bf16.msra.mxu0 %v5025_v26  ;;  %v5049_v26 = vld [vmem:[#allocation5 + $0x228] ss:$16 sps:$4 sm:$0xff]  }
 0x44e   :  { %1792 = vmatprep.subr.bf16.mxu0 %v5033_v28  ;;  %1711 = vmatpush1.bf16.msra.mxu1 %v5028_v29  ;;  %v5057_v28 = vld [vmem:[#allocation5 + $0x24c] ss:$16 sps:$4 sm:$0xff]   ;;  %v5052_v29 = vld [vmem:[#allocation5 + $0x240] ss:$16 sps:$4 sm:$0xff]  }
 0x44f   :  { %1712 = vmatprep.subr.bf16.mxu1 %v5036_v31  ;;  %v5060_v31 = vld [vmem:[#allocation5 + $0x264] ss:$16 sps:$4 sm:$0xff]  }
 0x451   :  { %1793 = vmatpush1.bf16.msra.mxu0 %v5031_v30  ;;  %v5055_v30 = vld [vmem:[#allocation5 + $0x248] ss:$16 sps:$4 sm:$0xff]  }
 0x452   :  { %1794 = vmatprep.subr.bf16.mxu0 %v5039_v32  ;;  %1713 = vmatpush1.bf16.msra.mxu1 %v5034_v33  ;;  %v5063_v32 = vld [vmem:[#allocation5 + $0x26c] ss:$16 sps:$4 sm:$0xff]   ;;  %v5058_v33 = vld [vmem:[#allocation5 + $0x260] ss:$16 sps:$4 sm:$0xff]  }
 0x453   :  { %1723 = vmatprep.subr.bf16.mxu1 %v5042_v37  ;;  %v5066_v37 = vld [vmem:[#allocation5 + $0x284] ss:$16 sps:$4 sm:$0xff]  }
 0x455   :  { %1795 = vmatpush1.bf16.msra.mxu0 %v5037_v36  ;;  %v5061_v36 = vld [vmem:[#allocation5 + $0x268] ss:$16 sps:$4 sm:$0xff]  }
 0x456   :  { %1805 = vmatprep.subr.bf16.mxu0 %v5045_v42  ;;  %v5069_v42 = vld [vmem:[#allocation5 + $0x28c] ss:$16 sps:$4 sm:$0xff]  }
 0x4ce   :  { %v802_v43 = vpop.xlane.xlu1 %801 }
 0x4cf   :  { %v803_v44 = vmul.f32 0.001953125, %v802_v43  ;;  %v5064_v43 = vld [vmem:[#allocation5 + $0x280] ss:$16 sps:$4 sm:$0xff]  }
 0x4d1   :  { %v804_v45 = vadd.f32 1e-05, %v803_v44  ;;  %v5067_v44 = vld [vmem:[#allocation5 + $0x288] ss:$16 sps:$4 sm:$0xff]  }
 0x4d3   :  { %5546 = vrsqrt.f32 %v804_v45  ;;  %v5072_v45 = vld [vmem:[#allocation5 + $0x2a4] ss:$16 sps:$4 sm:$0xff]  }
 0x4dd   :  { %v5547_v52 = vpop.eup %5546 }
 0x4de   :  { %v807_v56 = vmul.f32 %v5547_v52, %v6036_v39  ;;  %v806_v57 = vmul.f32 %v5547_v52, %v6034_v38  ;;  %v809_v34 = vmul.f32 %v5547_v52, %v6040_v41  ;;  %v808_v58 = vmul.f32 %v5547_v52, %v6038_v40  ;;  %v5079_v52 = vld [vmem:[#allocation5 + $0x2c8] ss:$16 sps:$4 sm:$0xff]  }
 0x4e0   :  { %v832_v60 = vmul.f32 %v818_v48, %v807_v56  ;;  %v831_v61 = vmul.f32 %v814_v49, %v806_v57  ;;  %v834_v63 = vmul.f32 %v826_v50, %v809_v34  ;;  %v833_v0 = vmul.f32 %v822_v51, %v808_v58  ;;  %v5073_v48 = vld [vmem:[#allocation5 + $0x2a8] ss:$16 sps:$4 sm:$0xff]   ;;  %v5078_v49 = vld [vmem:[#allocation5 + $0x2c4] ss:$16 sps:$4 sm:$0xff]   ;;  %v5081_v50 = vld [vmem:[#allocation5 + $0x2cc] ss:$16 sps:$4 sm:$0xff]  }
 0x4e1   :  { %v5076_v51 = vld [vmem:[#allocation5 + $0x2c0] ss:$16 sps:$4 sm:$0xff]   ;;  %v5085_v56 = vld [vmem:[#allocation5 + $0x2e8] ss:$16 sps:$4 sm:$0xff]   ;;  %v5090_v57 = vld [vmem:[#allocation5 + $0x304] ss:$16 sps:$4 sm:$0xff]  }
 0x4e2   :  { %v857_v1 = vadd.f32 %v843_v53, %v832_v60  ;;  %v856_v2 = vadd.f32 %v839_v35, %v831_v61  ;;  %v859_v3 = vadd.f32 %v851_v54, %v834_v63  ;;  %v6062_v4 = vadd.f32 %v847_v55, %v833_v0  ;;  %v5084_v53 = vld [vmem:[#allocation5 + $0x2e4] ss:$16 sps:$4 sm:$0xff]   ;;  %v5087_v35 = vld [vmem:[#allocation5 + $0x2ec] ss:$16 sps:$4 sm:$0xff]   ;;  %v5082_v55 = vld [vmem:[#allocation5 + $0x2e0] ss:$16 sps:$4 sm:$0xff]  }
 0x4e3   :  { %v5093_v34 = vld [vmem:[#allocation5 + $0x30c] ss:$16 sps:$4 sm:$0xff]   ;;  %v5088_v58 = vld [vmem:[#allocation5 + $0x300] ss:$16 sps:$4 sm:$0xff]   ;;  %v5091_v60 = vld [vmem:[#allocation5 + $0x308] ss:$16 sps:$4 sm:$0xff]  }
 0x4e4   :  { %v4369_v5 = vmul.f32 -1.442695, %v857_v1  ;;  %v4368_v6 = vmul.f32 -1.442695, %v856_v2  ;;  %v4371_v9 = vmul.f32 -1.442695, %v859_v3 }
 0x4e5   :  { %v4370_v54 = vmul.f32 -1.442695, %v6062_v4  ;;  %v5096_v61 = vld [vmem:[#allocation5 + $0x324] ss:$16 sps:$4 sm:$0xff]   ;;  %v5099_v63 = vld [vmem:[#allocation5 + $0x32c] ss:$16 sps:$4 sm:$0xff]  }
 0x4e6   :  { %5548 = vpow2.f32 %v4369_v5  ;;  %v5094_v0 = vld [vmem:[#allocation5 + $0x320] ss:$16 sps:$4 sm:$0xff]  }
 0x4e7   :  { %5550 = vpow2.f32 %v4368_v6  ;;  %v5100_v5 = vld [vmem:[#allocation5 + $0x340] ss:$16 sps:$4 sm:$0xff]   ;;  %v5103_v6 = vld [vmem:[#allocation5 + $0x348] ss:$16 sps:$4 sm:$0xff]  }
 0x4e8   :  { %5552 = vpow2.f32 %v4371_v9 }
 0x4f0   :  { %v5549_v38 = vpop.eup %5548 }
 0x4f1   :  { %v5551_v39 = vpop.eup %5550  ;;  %v873_v41 = vadd.f32 1.0, %v5549_v38  ;;  %v5108_v38 = vld [vmem:[#allocation5 + $0x364] ss:$16 sps:$4 sm:$0xff]  }
 0x4f2   :  { %v5553_v11 = vpop.eup %5552  ;;  %v872_v40 = vadd.f32 1.0, %v5551_v39  ;;  %v5111_v39 = vld [vmem:[#allocation5 + $0x36c] ss:$16 sps:$4 sm:$0xff]  }
 0x4f3   :  { %5554 = vrcp.f32 %v873_v41  ;;  %v875_v12 = vadd.f32 1.0, %v5553_v11  ;;  %v5106_v41 = vld [vmem:[#allocation5 + $0x360] ss:$16 sps:$4 sm:$0xff]   ;;  %v5109_v11 = vld [vmem:[#allocation5 + $0x368] ss:$16 sps:$4 sm:$0xff]  }
 0x4f4   :  { %5556 = vrcp.f32 %v872_v40 }
 0x4f5   :  { %5558 = vrcp.f32 %v875_v12  ;;  %v5114_v12 = vld [vmem:[#allocation5 + $0x384] ss:$16 sps:$4 sm:$0xff]  }
 0x4f6   :  { %5560 = vpow2.f32 %v4370_v54 }
 0x4fd   :  { %v5555_v13 = vpop.eup %5554 }
 0x4fe   :  { %v5557_v14 = vpop.eup %5556  ;;  %v6064_v15 = vmul.f32 %v5555_v13, %v857_v1  ;;  %v5097_v1 = vld [vmem:[#allocation5 + $0x328] ss:$16 sps:$4 sm:$0xff]   ;;  %v5117_v13 = vld [vmem:[#allocation5 + $0x38c] ss:$16 sps:$4 sm:$0xff]  }
 0x4ff   :  { %v5559_v16 = vpop.eup %5558  ;;  %v6066_v17 = vmul.f32 %v5557_v14, %v856_v2  ;;  %v5102_v2 = vld [vmem:[#allocation5 + $0x344] ss:$16 sps:$4 sm:$0xff]   ;;  %v5112_v14 = vld [vmem:[#allocation5 + $0x380] ss:$16 sps:$4 sm:$0xff]  }
 0x500   :  { %v890_v7 = vpack.c.bf16 %v6064_v15, %v6064_v15  ;;  %v6070_v20 = vmul.f32 %v5559_v16, %v859_v3  ;;  %v5105_v3 = vld [vmem:[#allocation5 + $0x34c] ss:$16 sps:$4 sm:$0xff]   ;;  %v5561_v9 = vpop.eup %5560  ;;  %v5115_v16 = vld [vmem:[#allocation5 + $0x388] ss:$16 sps:$4 sm:$0xff]  }
 0x501   :  { %v889_v21 = vpack.c.bf16 %v6066_v17, %v6066_v17  ;;  %v874_v40 = vadd.f32 1.0, %v5561_v9  ;;  %v5156_v9 = vld [vmem:[#allocation7 + $0x64] ss:$16 sps:$4 sm:$0xff]  }
 0x502   :  { %1714 = vmatprep.mubr.bf16.mxu1 %v890_v7  ;;  %1796 = vmatprep.mubr.bf16.mxu0 %v890_v7  ;;  %v892_v24 = vpack.c.bf16 %v6070_v20, %v6070_v20  ;;  %v5120_v7 = vld [vmem:[#allocation5 + $0x3a4] ss:$16 sps:$4 sm:$0xff]  }
 0x503   :  { %1715 = vmatmul.mubr.bf16.vlgmr.msra.gmra.mrb[4].mxu1 %v889_v21  ;;  %1797 = vmatmul.mubr.bf16.vlgmr.msra.gmra.mrb[8].mxu0 %v889_v21  ;;  %5562 = vrcp.f32 %v874_v40  ;;  %v5121_v21 = vld [vmem:[#allocation5 + $0x3a8] ss:$16 sps:$4 sm:$0xff]   ;;  %v5165_v40 = vld [vmem:[#allocation7 + $0x8c] ss:$16 sps:$4 sm:$0xff]  }
 0x504   :  { %1724 = vmatpush1.bf16.msra.mxu1 %v5040_v18  ;;  %1806 = vmatpush1.bf16.msra.mxu0 %v5043_v19  ;;  %v5123_v18 = vld [vmem:[#allocation5 + $0x3ac] ss:$16 sps:$4 sm:$0xff]   ;;  %v5118_v19 = vld [vmem:[#allocation5 + $0x3a0] ss:$16 sps:$4 sm:$0xff]  }
 0x505   :  { %1755 = vmatprep.mubr.bf16.mxu1 %v892_v24  ;;  %1837 = vmatprep.mubr.bf16.mxu0 %v892_v24  ;;  %v5124_v24 = vld [vmem:[#allocation5 + $0x3c0] ss:$16 sps:$4 sm:$0xff]  }
 0x506   :  { %1725 = vmatprep.subr.bf16.mxu1 %v5048_v22  ;;  %1807 = vmatprep.subr.bf16.mxu0 %v5051_v23  ;;  %v5126_v22 = vld [vmem:[#allocation5 + $0x3c4] ss:$16 sps:$4 sm:$0xff]   ;;  %v5129_v23 = vld [vmem:[#allocation5 + $0x3cc] ss:$16 sps:$4 sm:$0xff]  }
 0x508   :  { %1726 = vmatpush1.bf16.msra.mxu1 %v5046_v25  ;;  %1808 = vmatpush1.bf16.msra.mxu0 %v5049_v26  ;;  %v5127_v25 = vld [vmem:[#allocation5 + $0x3c8] ss:$16 sps:$4 sm:$0xff]   ;;  %v5132_v26 = vld [vmem:[#allocation5 + $0x3e4] ss:$16 sps:$4 sm:$0xff]  }
 0x509   :  { %1727 = vmatprep.subr.bf16.mxu1 %v5054_v27  ;;  %1809 = vmatprep.subr.bf16.mxu0 %v5057_v28  ;;  %v5135_v27 = vld [vmem:[#allocation5 + $0x3ec] ss:$16 sps:$4 sm:$0xff]  }
 0x50c   :  { %1728 = vmatpush1.bf16.msra.mxu1 %v5052_v29  ;;  %1810 = vmatpush1.bf16.msra.mxu0 %v5055_v30  ;;  %v5130_v29 = vld [vmem:[#allocation5 + $0x3e0] ss:$16 sps:$4 sm:$0xff]   ;;  %v5133_v30 = vld [vmem:[#allocation5 + $0x3e8] ss:$16 sps:$4 sm:$0xff]  }
 0x50d   :  { %1729 = vmatprep.subr.bf16.mxu1 %v5060_v31  ;;  %1811 = vmatprep.subr.bf16.mxu0 %v5063_v32  ;;  %v5563_v28 = vpop.eup %5562 }
 0x50e   :  { %v6078_v31 = vmul.f32 %v5563_v28, %v6062_v4  ;;  %v5186_v28 = vld [vmem:[#allocation7 + $0x104] ss:$16 sps:$4 sm:$0xff]  }
 0x510   :  { %1730 = vmatpush1.bf16.msra.mxu1 %v5058_v33  ;;  %1812 = vmatpush1.bf16.msra.mxu0 %v5061_v36  ;;  %v891_v32 = vpack.c.bf16 %v6078_v31, %v6078_v31  ;;  %v888_v33 = vld [vmem:[#allocation13 + $0x12] sm:$0xf] }
 0x511   :  { %1731 = vmatprep.subr.bf16.mxu1 %v5066_v37  ;;  %1813 = vmatprep.subr.bf16.mxu0 %v5069_v42  ;;  %v1025_v36 = vrot.slane %v888_v33, %v6003_v8  ;;  %v1029_v37 = vrot.slane %v888_v33, %v6006_v10 }
 0x514   :  { %1732 = vmatpush1.bf16.msra.mxu1 %v5064_v43  ;;  %1814 = vmatpush1.bf16.msra.mxu0 %v5067_v44  ;;  %v1033_v43 = vrot.slane %v888_v33, %v6025_v59 }
 0x515   :  { %1733 = vmatprep.subr.bf16.mxu1 %v5072_v45  ;;  %1815 = vmatprep.subr.bf16.mxu0 %v5075_v46 }
 0x518   :  { %1734 = vmatpush1.bf16.msra.mxu1 %v5070_v47  ;;  %1816 = vmatpush1.bf16.msra.mxu0 %v5073_v48  ;;  %v1037_v48 = vrot.slane %v888_v33, %v6030_v62  ;;  %v5192_v33 = vld [vmem:[#allocation7 + $0x124] ss:$16 sps:$4 sm:$0xff]  }
 0x519   :  { %1735 = vmatprep.subr.bf16.mxu1 %v5078_v49  ;;  %1817 = vmatprep.subr.bf16.mxu0 %v5081_v50 }
 0x51c   :  { %1736 = vmatpush1.bf16.msra.mxu1 %v5076_v51  ;;  %1818 = vmatpush1.bf16.msra.mxu0 %v5079_v52 }
 0x51d   :  { %1737 = vmatprep.subr.bf16.mxu1 %v5084_v53  ;;  %1819 = vmatprep.subr.bf16.mxu0 %v5087_v35 }
 0x520   :  { %1738 = vmatpush1.bf16.msra.mxu1 %v5082_v55  ;;  %1820 = vmatpush1.bf16.msra.mxu0 %v5085_v56 }
 0x521   :  { %1739 = vmatprep.subr.bf16.mxu1 %v5090_v57  ;;  %1821 = vmatprep.subr.bf16.mxu0 %v5093_v34  ;;  %v5136_v57 = vld [vmem:[#allocation7] ss:$16 sps:$4 sm:$0xff]   ;;  %v5138_v34 = vld [vmem:[#allocation7 + $0x4] ss:$16 sps:$4 sm:$0xff]  }
 0x524   :  { %1740 = vmatpush1.bf16.msra.mxu1 %v5088_v58  ;;  %1822 = vmatpush1.bf16.msra.mxu0 %v5091_v60  ;;  %v5139_v58 = vld [vmem:[#allocation7 + $0x8] ss:$16 sps:$4 sm:$0xff]   ;;  %v5141_v60 = vld [vmem:[#allocation7 + $0xc] ss:$16 sps:$4 sm:$0xff]  }
 0x525   :  { %1741 = vmatprep.subr.bf16.mxu1 %v5096_v61  ;;  %1823 = vmatprep.subr.bf16.mxu0 %v5099_v63  ;;  %v5144_v61 = vld [vmem:[#allocation7 + $0x24] ss:$16 sps:$4 sm:$0xff]   ;;  %v5147_v63 = vld [vmem:[#allocation7 + $0x2c] ss:$16 sps:$4 sm:$0xff]  }
 0x528   :  { %1742 = vmatpush1.bf16.msra.mxu1 %v5094_v0  ;;  %1824 = vmatpush1.bf16.msra.mxu0 %v5097_v1  ;;  %v5142_v0 = vld [vmem:[#allocation7 + $0x20] ss:$16 sps:$4 sm:$0xff]   ;;  %v5145_v1 = vld [vmem:[#allocation7 + $0x28] ss:$16 sps:$4 sm:$0xff]  }
 0x529   :  { %1743 = vmatprep.subr.bf16.mxu1 %v5102_v2  ;;  %1825 = vmatprep.subr.bf16.mxu0 %v5105_v3  ;;  %v5150_v2 = vld [vmem:[#allocation7 + $0x44] ss:$16 sps:$4 sm:$0xff]   ;;  %v5153_v3 = vld [vmem:[#allocation7 + $0x4c] ss:$16 sps:$4 sm:$0xff]  }
 0x52c   :  { %1744 = vmatpush1.bf16.msra.mxu1 %v5100_v5  ;;  %1826 = vmatpush1.bf16.msra.mxu0 %v5103_v6  ;;  %v5148_v5 = vld [vmem:[#allocation7 + $0x40] ss:$16 sps:$4 sm:$0xff]   ;;  %v5151_v6 = vld [vmem:[#allocation7 + $0x48] ss:$16 sps:$4 sm:$0xff]  }
 0x52d   :  { %1745 = vmatprep.subr.bf16.mxu1 %v5108_v38  ;;  %1827 = vmatprep.subr.bf16.mxu0 %v5111_v39  ;;  %v5159_v38 = vld [vmem:[#allocation7 + $0x6c] ss:$16 sps:$4 sm:$0xff]   ;;  %v5154_v39 = vld [vmem:[#allocation7 + $0x60] ss:$16 sps:$4 sm:$0xff]  }
 0x530   :  { %1746 = vmatpush1.bf16.msra.mxu1 %v5106_v41  ;;  %1828 = vmatpush1.bf16.msra.mxu0 %v5109_v11  ;;  %v5157_v41 = vld [vmem:[#allocation7 + $0x68] ss:$16 sps:$4 sm:$0xff]   ;;  %v5162_v11 = vld [vmem:[#allocation7 + $0x84] ss:$16 sps:$4 sm:$0xff]  }
 0x531   :  { %1747 = vmatprep.subr.bf16.mxu1 %v5114_v12  ;;  %1829 = vmatprep.subr.bf16.mxu0 %v5117_v13  ;;  %v5160_v12 = vld [vmem:[#allocation7 + $0x80] ss:$16 sps:$4 sm:$0xff]   ;;  %v5163_v13 = vld [vmem:[#allocation7 + $0x88] ss:$16 sps:$4 sm:$0xff]  }
 0x534   :  { %1748 = vmatpush1.bf16.msra.mxu1 %v5112_v14  ;;  %1830 = vmatpush1.bf16.msra.mxu0 %v5115_v16  ;;  %v5168_v14 = vld [vmem:[#allocation7 + $0xa4] ss:$16 sps:$4 sm:$0xff]   ;;  %v5171_v16 = vld [vmem:[#allocation7 + $0xac] ss:$16 sps:$4 sm:$0xff]  }
 0x535   :  { %1749 = vmatprep.subr.bf16.mxu1 %v5120_v7  ;;  %1831 = vmatprep.subr.bf16.mxu0 %v5123_v18  ;;  %v5166_v7 = vld [vmem:[#allocation7 + $0xa0] ss:$16 sps:$4 sm:$0xff]   ;;  %v5169_v18 = vld [vmem:[#allocation7 + $0xa8] ss:$16 sps:$4 sm:$0xff]  }
 0x538   :  { %1750 = vmatpush1.bf16.msra.mxu1 %v5118_v19  ;;  %1832 = vmatpush1.bf16.msra.mxu0 %v5121_v21  ;;  %v5174_v19 = vld [vmem:[#allocation7 + $0xc4] ss:$16 sps:$4 sm:$0xff]   ;;  %v5177_v21 = vld [vmem:[#allocation7 + $0xcc] ss:$16 sps:$4 sm:$0xff]  }
 0x539   :  { %1751 = vmatprep.subr.bf16.mxu1 %v5126_v22  ;;  %1833 = vmatprep.subr.bf16.mxu0 %v5129_v23  ;;  %v5172_v22 = vld [vmem:[#allocation7 + $0xc0] ss:$16 sps:$4 sm:$0xff]   ;;  %v5175_v23 = vld [vmem:[#allocation7 + $0xc8] ss:$16 sps:$4 sm:$0xff]  }
 0x53c   :  { %1752 = vmatpush1.bf16.msra.mxu1 %v5124_v24  ;;  %1834 = vmatpush1.bf16.msra.mxu0 %v5127_v25  ;;  %v5180_v24 = vld [vmem:[#allocation7 + $0xe4] ss:$16 sps:$4 sm:$0xff]   ;;  %v5183_v25 = vld [vmem:[#allocation7 + $0xec] ss:$16 sps:$4 sm:$0xff]  }
 0x53d   :  { %1753 = vmatprep.subr.bf16.mxu1 %v5132_v26  ;;  %1835 = vmatprep.subr.bf16.mxu0 %v5135_v27  ;;  %v5178_v26 = vld [vmem:[#allocation7 + $0xe0] ss:$16 sps:$4 sm:$0xff]   ;;  %v5181_v27 = vld [vmem:[#allocation7 + $0xe8] ss:$16 sps:$4 sm:$0xff]  }
 0x540   :  { %1754 = vmatpush1.bf16.msra.mxu1 %v5130_v29  ;;  %1836 = vmatpush1.bf16.msra.mxu0 %v5133_v30  ;;  %v5189_v29 = vld [vmem:[#allocation7 + $0x10c] ss:$16 sps:$4 sm:$0xff]   ;;  %v5184_v30 = vld [vmem:[#allocation7 + $0x100] ss:$16 sps:$4 sm:$0xff]  }
 0x541   :  { %2730 = vmatprep.subr.bf16.mxu1 %v5138_v34  ;;  %2812 = vmatprep.subr.bf16.mxu0 %v5141_v60  ;;  %v5204_v34 = vld [vmem:[#allocation7 + $0x164] ss:$16 sps:$4 sm:$0xff]   ;;  %v5205_v60 = vld [vmem:[#allocation7 + $0x168] ss:$16 sps:$4 sm:$0xff]  }
 0x543   :  { %1756 = vmatmul.mubr.bf16.vlgmr.msra.gmra.mrb[4].mxu1 %v891_v32  ;;  %1838 = vmatmul.mubr.bf16.vlgmr.msra.gmra.mrb[8].mxu0 %v891_v32  ;;  %v5187_v32 = vld [vmem:[#allocation7 + $0x108] ss:$16 sps:$4 sm:$0xff]  }
 0x544   :  { %2731 = vmatpush1.bf16.msra.mxu1 %v5136_v57  ;;  %2813 = vmatpush1.bf16.msra.mxu0 %v5139_v58  ;;  %v5199_v57 = vld [vmem:[#allocation7 + $0x148] ss:$16 sps:$4 sm:$0xff]   ;;  %v5202_v58 = vld [vmem:[#allocation7 + $0x160] ss:$16 sps:$4 sm:$0xff]  }
 0x545   :  { %2732 = vmatprep.subr.bf16.mxu1 %v5144_v61  ;;  %2814 = vmatprep.subr.bf16.mxu0 %v5147_v63  ;;  %v5207_v61 = vld [vmem:[#allocation7 + $0x16c] ss:$16 sps:$4 sm:$0xff]   ;;  %v5210_v63 = vld [vmem:[#allocation7 + $0x184] ss:$16 sps:$4 sm:$0xff]  }
 0x548   :  { %2733 = vmatpush1.bf16.msra.mxu1 %v5142_v0  ;;  %2815 = vmatpush1.bf16.msra.mxu0 %v5145_v1  ;;  %v5213_v0 = vld [vmem:[#allocation7 + $0x18c] ss:$16 sps:$4 sm:$0xff]   ;;  %v5208_v1 = vld [vmem:[#allocation7 + $0x180] ss:$16 sps:$4 sm:$0xff]  }
 0x549   :  { %2734 = vmatprep.subr.bf16.mxu1 %v5150_v2  ;;  %2816 = vmatprep.subr.bf16.mxu0 %v5153_v3  ;;  %v5211_v2 = vld [vmem:[#allocation7 + $0x188] ss:$16 sps:$4 sm:$0xff]   ;;  %v5216_v3 = vld [vmem:[#allocation7 + $0x1a4] ss:$16 sps:$4 sm:$0xff]  }
 0x54c   :  { %2735 = vmatpush1.bf16.msra.mxu1 %v5148_v5  ;;  %2817 = vmatpush1.bf16.msra.mxu0 %v5151_v6  ;;  %v5219_v5 = vld [vmem:[#allocation7 + $0x1ac] ss:$16 sps:$4 sm:$0xff]   ;;  %v5214_v6 = vld [vmem:[#allocation7 + $0x1a0] ss:$16 sps:$4 sm:$0xff]  }
 0x54d   :  { %2736 = vmatprep.subr.bf16.mxu1 %v5156_v9  ;;  %2818 = vmatprep.subr.bf16.mxu0 %v5159_v38  ;;  %v5217_v9 = vld [vmem:[#allocation7 + $0x1a8] ss:$16 sps:$4 sm:$0xff]   ;;  %v5222_v38 = vld [vmem:[#allocation7 + $0x1c4] ss:$16 sps:$4 sm:$0xff]  }
 0x550   :  { %2737 = vmatpush1.bf16.msra.mxu1 %v5154_v39  ;;  %2819 = vmatpush1.bf16.msra.mxu0 %v5157_v41  ;;  %v5225_v39 = vld [vmem:[#allocation7 + $0x1cc] ss:$16 sps:$4 sm:$0xff]   ;;  %v5220_v41 = vld [vmem:[#allocation7 + $0x1c0] ss:$16 sps:$4 sm:$0xff]  }
 0x551   :  { %2738 = vmatprep.subr.bf16.mxu1 %v5162_v11  ;;  %2820 = vmatprep.subr.bf16.mxu0 %v5165_v40  ;;  %v5223_v11 = vld [vmem:[#allocation7 + $0x1c8] ss:$16 sps:$4 sm:$0xff]   ;;  %v5228_v40 = vld [vmem:[#allocation7 + $0x1e4] ss:$16 sps:$4 sm:$0xff]  }
 0x554   :  { %2739 = vmatpush1.bf16.msra.mxu1 %v5160_v12  ;;  %2821 = vmatpush1.bf16.msra.mxu0 %v5163_v13  ;;  %v5231_v12 = vld [vmem:[#allocation7 + $0x1ec] ss:$16 sps:$4 sm:$0xff]   ;;  %v5226_v13 = vld [vmem:[#allocation7 + $0x1e0] ss:$16 sps:$4 sm:$0xff]  }
 0x555   :  { %2740 = vmatprep.subr.bf16.mxu1 %v5168_v14  ;;  %2822 = vmatprep.subr.bf16.mxu0 %v5171_v16  ;;  %v5229_v14 = vld [vmem:[#allocation7 + $0x1e8] ss:$16 sps:$4 sm:$0xff]   ;;  %v5234_v16 = vld [vmem:[#allocation7 + $0x204] ss:$16 sps:$4 sm:$0xff]  }
 0x558   :  { %2741 = vmatpush1.bf16.msra.mxu1 %v5166_v7  ;;  %2823 = vmatpush1.bf16.msra.mxu0 %v5169_v18  ;;  %v5237_v7 = vld [vmem:[#allocation7 + $0x20c] ss:$16 sps:$4 sm:$0xff]  }
 0x559   :  { %2742 = vmatprep.subr.bf16.mxu1 %v5174_v19  ;;  %2824 = vmatprep.subr.bf16.mxu0 %v5177_v21 }
 0x55c   :  { %2743 = vmatpush1.bf16.msra.mxu1 %v5172_v22  ;;  %2825 = vmatpush1.bf16.msra.mxu0 %v5175_v23  ;;  %v1846_v22 = vld [vmem:[#allocation13 + $0x16] sm:$0xf]  ;;  %v1847_v23 = vld [vmem:[#allocation13 + $0x1a] sm:$0xf] }
 0x55d   :  { %2744 = vmatprep.subr.bf16.mxu1 %v5180_v24  ;;  %2826 = vmatprep.subr.bf16.mxu0 %v5183_v25  ;;  %v1882_v24 = vrot.slane %v1846_v22, %v6006_v10  ;;  %v1878_v25 = vrot.slane %v1846_v22, %v6003_v8 }
 0x560   :  { %2745 = vmatpush1.bf16.msra.mxu1 %v5178_v26  ;;  %2827 = vmatpush1.bf16.msra.mxu0 %v5181_v27  ;;  %v1890_v26 = vrot.slane %v1846_v22, %v6030_v62  ;;  %v1886_v27 = vrot.slane %v1846_v22, %v6025_v59  ;;  %v5268_v22 = vld [vmem:[#allocation7 + $0x2c0] ss:$16 sps:$4 sm:$0xff]  }
 0x561   :  { %2746 = vmatprep.subr.bf16.mxu1 %v5186_v28  ;;  %2828 = vmatprep.subr.bf16.mxu0 %v5189_v29  ;;  %v1907_v29 = vrot.slane %v1847_v23, %v6006_v10 }
 0x564   :  { %2747 = vmatpush1.bf16.msra.mxu1 %v5184_v30  ;;  %2829 = vmatpush1.bf16.msra.mxu0 %v5187_v32  ;;  %v1903_v30 = vrot.slane %v1847_v23, %v6003_v8  ;;  %v1915_v32 = vrot.slane %v1847_v23, %v6030_v62 }
 0x565   :  { %2748 = vmatprep.subr.bf16.mxu1 %v5192_v33  ;;  %v1911_v33 = vrot.slane %v1847_v23, %v6025_v59  ;;  %v5271_v23 = vld [vmem:[#allocation7 + $0x2c8] ss:$16 sps:$4 sm:$0xff]  }
 0x616   :  { %v1757_v42 = vpop.f32.mrb[4].mxu1  ;;  %v1839_v44 = vpop.f32.mrb[8].mxu0 }
 0x617   :  { %v6085_v45 = vadd.f32 %v1757_v42, %v1025_v36  ;;  %v1759_v4 = vpop.f32.mrb[5].mxu1  ;;  %v1841_v46 = vpop.f32.mrb[9].mxu0  ;;  %v6090_v53 = vadd.f32 %v1839_v44, %v1033_v43  ;;  %v5195_v36 = vld [vmem:[#allocation7 + $0x12c] ss:$16 sps:$4 sm:$0xff]   ;;  %v5193_v42 = vld [vmem:[#allocation7 + $0x128] ss:$16 sps:$4 sm:$0xff]  }
 0x618   :  { %v6087_v47 = vadd.f32 %v1759_v4, %v1029_v37  ;;  %v1761_v49 = vpop.f32.mrb[6].mxu1  ;;  %v1843_v50 = vpop.f32.mrb[10].mxu0  ;;  %v6094_v54 = vadd.f32 %v1841_v46, %v1037_v48  ;;  %v5190_v37 = vld [vmem:[#allocation7 + $0x120] ss:$16 sps:$4 sm:$0xff]   ;;  %2830 = vmatprep.subr.bf16.mxu0 %v5195_v36 }
 0x619   :  { %v1762_v51 = vpop.f32.mrb[7].mxu1  ;;  %v1844_v52 = vpop.f32.mrb[11].mxu0  ;;  %2749 = vmatpush1.bf16.msra.mxu1 %v5190_v37  ;;  %2831 = vmatpush1.bf16.msra.mxu0 %v5193_v42 }
 0x61a   :  { %v1848_v35 = vadd.f32 %v6087_v47, %v6085_v45 }
 0x61c   :  { %v1849_v55 = vadd.f32 %v6090_v53, %v1848_v35 }
 0x61e   :  { %v1850_v56 = vadd.f32 %v6094_v54, %v1849_v55 }
 0x620   :  { %1851 = vadd.xlane.f32.xlu0 %v1850_v56  ;;  %v5201_v56 = vld [vmem:[#allocation7 + $0x14c] ss:$16 sps:$4 sm:$0xff]  }
 0x621   :  { %2832 = vmatprep.subr.bf16.mxu0 %v5201_v56 }
 0x622   :  { %2833 = vmatpush1.bf16.msra.mxu0 %v5199_v57  ;;  %v5232_v57 = vld [vmem:[#allocation7 + $0x200] ss:$16 sps:$4 sm:$0xff]  }
 0x623   :  { %2834 = vmatprep.subr.bf16.mxu0 %v5207_v61  ;;  %v5243_v61 = vld [vmem:[#allocation7 + $0x22c] ss:$16 sps:$4 sm:$0xff]  }
 0x626   :  { %2835 = vmatpush1.bf16.msra.mxu0 %v5205_v60  ;;  %v5240_v60 = vld [vmem:[#allocation7 + $0x224] ss:$16 sps:$4 sm:$0xff]  }
 0x627   :  { %2836 = vmatprep.subr.bf16.mxu0 %v5213_v0  ;;  %v5238_v0 = vld [vmem:[#allocation7 + $0x220] ss:$16 sps:$4 sm:$0xff]  }
 0x62a   :  { %2837 = vmatpush1.bf16.msra.mxu0 %v5211_v2  ;;  %v5246_v2 = vld [vmem:[#allocation7 + $0x244] ss:$16 sps:$4 sm:$0xff]  }
 0x62b   :  { %2838 = vmatprep.subr.bf16.mxu0 %v5219_v5  ;;  %v5244_v5 = vld [vmem:[#allocation7 + $0x240] ss:$16 sps:$4 sm:$0xff]  }
 0x62e   :  { %2839 = vmatpush1.bf16.msra.mxu0 %v5217_v9  ;;  %v5252_v9 = vld [vmem:[#allocation7 + $0x264] ss:$16 sps:$4 sm:$0xff]  }
 0x62f   :  { %2840 = vmatprep.subr.bf16.mxu0 %v5225_v39  ;;  %v5250_v39 = vld [vmem:[#allocation7 + $0x260] ss:$16 sps:$4 sm:$0xff]  }
 0x632   :  { %2841 = vmatpush1.bf16.msra.mxu0 %v5223_v11  ;;  %v5258_v11 = vld [vmem:[#allocation7 + $0x284] ss:$16 sps:$4 sm:$0xff]  }
 0x633   :  { %2842 = vmatprep.subr.bf16.mxu0 %v5231_v12  ;;  %v5256_v12 = vld [vmem:[#allocation7 + $0x280] ss:$16 sps:$4 sm:$0xff]  }
 0x636   :  { %2843 = vmatpush1.bf16.msra.mxu0 %v5229_v14  ;;  %v5264_v14 = vld [vmem:[#allocation7 + $0x2a4] ss:$16 sps:$4 sm:$0xff]  }
 0x637   :  { %2853 = vmatprep.subr.bf16.mxu0 %v5237_v7  ;;  %v5262_v7 = vld [vmem:[#allocation7 + $0x2a0] ss:$16 sps:$4 sm:$0xff]  }
 0x6ad   :  { %v1852_v43 = vpop.xlane.xlu0 %1851 }
 0x6ae   :  { %v1853_v44 = vmul.f32 0.001953125, %v1852_v43 }
 0x6b0   :  { %v6099_v4 = vsub.f32 %v6085_v45, %v1853_v44  ;;  %v6102_v46 = vsub.f32 %v6087_v47, %v1853_v44  ;;  %v6105_v48 = vsub.f32 %v6090_v53, %v1853_v44  ;;  %v6108_v49 = vsub.f32 %v6094_v54, %v1853_v44  ;;  %v5198_v53 = vld [vmem:[#allocation7 + $0x144] ss:$16 sps:$4 sm:$0xff]   ;;  %v5196_v54 = vld [vmem:[#allocation7 + $0x140] ss:$16 sps:$4 sm:$0xff]  }
 0x6b1   :  { %2750 = vmatprep.subr.bf16.mxu1 %v5198_v53 }
 0x6b2   :  { %v1858_v50 = vmul.f32 %v6099_v4, %v6099_v4  ;;  %v1859_v51 = vmul.f32 %v6102_v46, %v6102_v46  ;;  %v1860_v52 = vmul.f32 %v6105_v48, %v6105_v48  ;;  %v1861_v47 = vmul.f32 %v6108_v49, %v6108_v49  ;;  %2751 = vmatpush1.bf16.msra.mxu1 %v5196_v54 }
 0x6b3   :  { %2752 = vmatprep.subr.bf16.mxu1 %v5204_v34 }
 0x6b4   :  { %v1862_v45 = vadd.f32 %v1859_v51, %v1858_v50 }
 0x6b6   :  { %v1863_v35 = vadd.f32 %v1862_v45, %v1860_v52  ;;  %2753 = vmatpush1.bf16.msra.mxu1 %v5202_v58 }
 0x6b7   :  { %2754 = vmatprep.subr.bf16.mxu1 %v5210_v63 }
 0x6b8   :  { %v1864_v55 = vadd.f32 %v1863_v35, %v1861_v47 }
 0x6ba   :  { %1865 = vadd.xlane.f32.xlu1 %v1864_v55  ;;  %2755 = vmatpush1.bf16.msra.mxu1 %v5208_v1  ;;  %v5241_v1 = vld [vmem:[#allocation7 + $0x228] ss:$16 sps:$4 sm:$0xff]  }
 0x6bb   :  { %2756 = vmatprep.subr.bf16.mxu1 %v5216_v3  ;;  %v5249_v3 = vld [vmem:[#allocation7 + $0x24c] ss:$16 sps:$4 sm:$0xff]  }
 0x6be   :  { %2757 = vmatpush1.bf16.msra.mxu1 %v5214_v6  ;;  %v5247_v6 = vld [vmem:[#allocation7 + $0x248] ss:$16 sps:$4 sm:$0xff]  }
 0x6bf   :  { %2758 = vmatprep.subr.bf16.mxu1 %v5222_v38  ;;  %v5255_v38 = vld [vmem:[#allocation7 + $0x26c] ss:$16 sps:$4 sm:$0xff]  }
 0x6c2   :  { %2759 = vmatpush1.bf16.msra.mxu1 %v5220_v41  ;;  %v5253_v41 = vld [vmem:[#allocation7 + $0x268] ss:$16 sps:$4 sm:$0xff]  }
 0x6c3   :  { %2760 = vmatprep.subr.bf16.mxu1 %v5228_v40  ;;  %v5261_v40 = vld [vmem:[#allocation7 + $0x28c] ss:$16 sps:$4 sm:$0xff]  }
 0x6c6   :  { %2761 = vmatpush1.bf16.msra.mxu1 %v5226_v13  ;;  %v5259_v13 = vld [vmem:[#allocation7 + $0x288] ss:$16 sps:$4 sm:$0xff]  }
 0x6c7   :  { %2771 = vmatprep.subr.bf16.mxu1 %v5234_v16  ;;  %v5267_v16 = vld [vmem:[#allocation7 + $0x2ac] ss:$16 sps:$4 sm:$0xff]  }
 0x747   :  { %v1866_v18 = vpop.xlane.xlu1 %1865 }
 0x748   :  { %v1867_v19 = vmul.f32 0.001953125, %v1866_v18  ;;  %v5265_v18 = vld [vmem:[#allocation7 + $0x2a8] ss:$16 sps:$4 sm:$0xff]  }
 0x74a   :  { %v1868_v21 = vadd.f32 1e-05, %v1867_v19  ;;  %v5270_v19 = vld [vmem:[#allocation7 + $0x2c4] ss:$16 sps:$4 sm:$0xff]  }
 0x74c   :  { %5564 = vrsqrt.f32 %v1868_v21  ;;  %v5273_v21 = vld [vmem:[#allocation7 + $0x2cc] ss:$16 sps:$4 sm:$0xff]  }
 0x756   :  { %v5565_v28 = vpop.eup %5564 }
 0x757   :  { %v1871_v36 = vmul.f32 %v5565_v28, %v6102_v46  ;;  %v1870_v37 = vmul.f32 %v5565_v28, %v6099_v4  ;;  %v1873_v42 = vmul.f32 %v5565_v28, %v6108_v49  ;;  %v1872_v43 = vmul.f32 %v5565_v28, %v6105_v48  ;;  %v5235_v48 = vld [vmem:[#allocation7 + $0x208] ss:$16 sps:$4 sm:$0xff]   ;;  %v5282_v28 = vld [vmem:[#allocation7 + $0x304] ss:$16 sps:$4 sm:$0xff]  }
 0x759   :  { %v1896_v44 = vmul.f32 %v1882_v24, %v1871_v36  ;;  %v1895_v50 = vmul.f32 %v1878_v25, %v1870_v37  ;;  %v1898_v51 = vmul.f32 %v1890_v26, %v1873_v42  ;;  %v1897_v52 = vmul.f32 %v1886_v27, %v1872_v43  ;;  %v5276_v24 = vld [vmem:[#allocation7 + $0x2e4] ss:$16 sps:$4 sm:$0xff]   ;;  %v5279_v25 = vld [vmem:[#allocation7 + $0x2ec] ss:$16 sps:$4 sm:$0xff]   ;;  %v5274_v26 = vld [vmem:[#allocation7 + $0x2e0] ss:$16 sps:$4 sm:$0xff]  }
 0x75a   :  { %v5277_v27 = vld [vmem:[#allocation7 + $0x2e8] ss:$16 sps:$4 sm:$0xff]   ;;  %v5291_v36 = vld [vmem:[#allocation7 + $0x32c] ss:$16 sps:$4 sm:$0xff]   ;;  %v5286_v37 = vld [vmem:[#allocation7 + $0x320] ss:$16 sps:$4 sm:$0xff]  }
 0x75b   :  { %v1921_v45 = vadd.f32 %v1907_v29, %v1896_v44  ;;  %v1920_v47 = vadd.f32 %v1903_v30, %v1895_v50  ;;  %v1923_v35 = vadd.f32 %v1915_v32, %v1898_v51  ;;  %v6130_v55 = vadd.f32 %v1911_v33, %v1897_v52  ;;  %v5285_v29 = vld [vmem:[#allocation7 + $0x30c] ss:$16 sps:$4 sm:$0xff]   ;;  %v5280_v30 = vld [vmem:[#allocation7 + $0x300] ss:$16 sps:$4 sm:$0xff]   ;;  %v5283_v32 = vld [vmem:[#allocation7 + $0x308] ss:$16 sps:$4 sm:$0xff]  }
 0x75c   :  { %v5288_v33 = vld [vmem:[#allocation7 + $0x324] ss:$16 sps:$4 sm:$0xff]   ;;  %v5289_v42 = vld [vmem:[#allocation7 + $0x328] ss:$16 sps:$4 sm:$0xff]   ;;  %v5297_v44 = vld [vmem:[#allocation7 + $0x34c] ss:$16 sps:$4 sm:$0xff]  }
 0x75d   :  { %vm1925_vm1 = vcmp.ge.f32.partialorder %v1921_v45, 0.0  ;;  %v1929_v53 = vmul.f32 0.01, %v1921_v45  ;;  %vm1924_vm2 = vcmp.ge.f32.partialorder %v1920_v47, 0.0  ;;  %v1928_v56 = vmul.f32 0.01, %v1920_v47 }
 0x75e   :  { %vm1927_vm3 = vcmp.ge.f32.partialorder %v1923_v35, 0.0  ;;  %v1931_v46 = vmul.f32 0.01, %v1923_v35  ;;  %v5294_v43 = vld [vmem:[#allocation7 + $0x344] ss:$16 sps:$4 sm:$0xff]   ;;  %vm1926_vm4 = vcmp.ge.f32.partialorder %v6130_v55, 0.0 }
 0x75f   :  { %v1933_v4 = vsel %vm1925_vm1, %v1921_v45, %v1929_v53  ;;  %v1932_v54 = vsel %vm1924_vm2, %v1920_v47, %v1928_v56  ;;  %v5292_v50 = vld [vmem:[#allocation7 + $0x340] ss:$16 sps:$4 sm:$0xff]   ;;  %v5295_v51 = vld [vmem:[#allocation7 + $0x348] ss:$16 sps:$4 sm:$0xff]   ;;  %v5300_v52 = vld [vmem:[#allocation7 + $0x364] ss:$16 sps:$4 sm:$0xff]  }
 0x760   :  { %v1938_v49 = vpack.c.bf16 %v1933_v4, %v1933_v4  ;;  %v1937_v34 = vpack.c.bf16 %v1932_v54, %v1932_v54  ;;  %v1935_v58 = vsel %vm1927_vm3, %v1923_v35, %v1931_v46  ;;  %v5303_v45 = vld [vmem:[#allocation7 + $0x36c] ss:$16 sps:$4 sm:$0xff]   ;;  %v5298_v47 = vld [vmem:[#allocation7 + $0x360] ss:$16 sps:$4 sm:$0xff]   ;;  %v5301_v35 = vld [vmem:[#allocation7 + $0x368] ss:$16 sps:$4 sm:$0xff]  }
 0x761   :  { %v1940_v63 = vpack.c.bf16 %v1935_v58, %v1935_v58  ;;  %v5306_v53 = vld [vmem:[#allocation7 + $0x384] ss:$16 sps:$4 sm:$0xff]   ;;  %v5309_v56 = vld [vmem:[#allocation7 + $0x38c] ss:$16 sps:$4 sm:$0xff]   ;;  %v5304_v46 = vld [vmem:[#allocation7 + $0x380] ss:$16 sps:$4 sm:$0xff]  }
 0x762   :  { %2762 = vmatprep.mubr.bf16.mxu1 %v1938_v49  ;;  %2844 = vmatprep.mubr.bf16.mxu0 %v1938_v49  ;;  %v5307_v4 = vld [vmem:[#allocation7 + $0x388] ss:$16 sps:$4 sm:$0xff]   ;;  %v5312_v54 = vld [vmem:[#allocation7 + $0x3a4] ss:$16 sps:$4 sm:$0xff]   ;;  %v5315_v49 = vld [vmem:[#allocation7 + $0x3ac] ss:$16 sps:$4 sm:$0xff]  }
 0x763   :  { %2763 = vmatmul.mubr.bf16.vlgmr.msra.gmra.mrb[8].mxu1 %v1937_v34  ;;  %2845 = vmatmul.mubr.bf16.vlgmr.msra.gmra.mrb[12].mxu0 %v1937_v34  ;;  %v5318_v34 = vld [vmem:[#allocation7 + $0x3c4] ss:$16 sps:$4 sm:$0xff]   ;;  %v5321_v58 = vld [vmem:[#allocation7 + $0x3cc] ss:$16 sps:$4 sm:$0xff]  }
 0x764   :  { %2772 = vmatpush1.bf16.msra.mxu1 %v5232_v57  ;;  %2854 = vmatpush1.bf16.msra.mxu0 %v5235_v48  ;;  %v5310_v57 = vld [vmem:[#allocation7 + $0x3a0] ss:$16 sps:$4 sm:$0xff]   ;;  %v5313_v48 = vld [vmem:[#allocation7 + $0x3a8] ss:$16 sps:$4 sm:$0xff]  }
 0x765   :  { %2803 = vmatprep.mubr.bf16.mxu1 %v1940_v63  ;;  %2885 = vmatprep.mubr.bf16.mxu0 %v1940_v63  ;;  %v5324_v63 = vld [vmem:[#allocation7 + $0x3e4] ss:$16 sps:$4 sm:$0xff]  }
 0x766   :  { %2773 = vmatprep.subr.bf16.mxu1 %v5240_v60  ;;  %2855 = vmatprep.subr.bf16.mxu0 %v5243_v61  ;;  %v5316_v60 = vld [vmem:[#allocation7 + $0x3c0] ss:$16 sps:$4 sm:$0xff]   ;;  %v5319_v61 = vld [vmem:[#allocation7 + $0x3c8] ss:$16 sps:$4 sm:$0xff]  }
 0x768   :  { %2774 = vmatpush1.bf16.msra.mxu1 %v5238_v0  ;;  %2856 = vmatpush1.bf16.msra.mxu0 %v5241_v1  ;;  %v5327_v0 = vld [vmem:[#allocation7 + $0x3ec] ss:$16 sps:$4 sm:$0xff]   ;;  %v1930_v1 = vmul.f32 0.01, %v6130_v55 }
 0x769   :  { %2775 = vmatprep.subr.bf16.mxu1 %v5246_v2  ;;  %2857 = vmatprep.subr.bf16.mxu0 %v5249_v3  ;;  %v5322_v2 = vld [vmem:[#allocation7 + $0x3e0] ss:$16 sps:$4 sm:$0xff]   ;;  %v5325_v3 = vld [vmem:[#allocation7 + $0x3e8] ss:$16 sps:$4 sm:$0xff]  }
 0x76c   :  { %2776 = vmatpush1.bf16.msra.mxu1 %v5244_v5  ;;  %2858 = vmatpush1.bf16.msra.mxu0 %v5247_v6  ;;  %v1934_v5 = vsel %vm1926_vm4, %v6130_v55, %v1930_v1 }
 0x76d   :  { %2777 = vmatprep.subr.bf16.mxu1 %v5252_v9  ;;  %2859 = vmatprep.subr.bf16.mxu0 %v5255_v38  ;;  %v1939_v6 = vpack.c.bf16 %v1934_v5, %v1934_v5  ;;  %v1936_v9 = vld [vmem:[#allocation13 + $0x1e] sm:$0xf] }
 0x76e   :  { %v2073_v38 = vrot.slane %v1936_v9, %v6003_v8  ;;  %v2085_v55 = vrot.slane %v1936_v9, %v6030_v62  ;;  %v5358_v5 = vld [vmem:[#allocation8 + $0xa0] ss:$8 sps:$4 sm:$0xff]  }
 0x770   :  { %2778 = vmatpush1.bf16.msra.mxu1 %v5250_v39  ;;  %2860 = vmatpush1.bf16.msra.mxu0 %v5253_v41  ;;  %v2077_v39 = vrot.slane %v1936_v9, %v6006_v10 }
 0x771   :  { %2779 = vmatprep.subr.bf16.mxu1 %v5258_v11  ;;  %2861 = vmatprep.subr.bf16.mxu0 %v5261_v40  ;;  %v2081_v11 = vrot.slane %v1936_v9, %v6025_v59  ;;  %v5363_v9 = vld [vmem:[#allocation8 + $0xb4] ss:$8 sps:$4 sm:$0xff]  }
 0x774   :  { %2780 = vmatpush1.bf16.msra.mxu1 %v5256_v12  ;;  %2862 = vmatpush1.bf16.msra.mxu0 %v5259_v13 }
 0x775   :  { %2781 = vmatprep.subr.bf16.mxu1 %v5264_v14  ;;  %2863 = vmatprep.subr.bf16.mxu0 %v5267_v16 }
 0x778   :  { %2782 = vmatpush1.bf16.msra.mxu1 %v5262_v7  ;;  %2864 = vmatpush1.bf16.msra.mxu0 %v5265_v18 }
 0x779   :  { %2783 = vmatprep.subr.bf16.mxu1 %v5270_v19  ;;  %2865 = vmatprep.subr.bf16.mxu0 %v5273_v21 }
 0x77c   :  { %2784 = vmatpush1.bf16.msra.mxu1 %v5268_v22  ;;  %2866 = vmatpush1.bf16.msra.mxu0 %v5271_v23 }
 0x77d   :  { %2785 = vmatprep.subr.bf16.mxu1 %v5276_v24  ;;  %2867 = vmatprep.subr.bf16.mxu0 %v5279_v25 }
 0x780   :  { %2786 = vmatpush1.bf16.msra.mxu1 %v5274_v26  ;;  %2868 = vmatpush1.bf16.msra.mxu0 %v5277_v27  ;;  %v5328_v27 = vld [vmem:[#allocation8] ss:$8 sps:$4 sm:$0xff]  }
 0x781   :  { %2787 = vmatprep.subr.bf16.mxu1 %v5282_v28  ;;  %2869 = vmatprep.subr.bf16.mxu0 %v5285_v29  ;;  %v5330_v28 = vld [vmem:[#allocation8 + $0x4] ss:$8 sps:$4 sm:$0xff]   ;;  %v5333_v29 = vld [vmem:[#allocation8 + $0x14] ss:$8 sps:$4 sm:$0xff]  }
 0x784   :  { %2788 = vmatpush1.bf16.msra.mxu1 %v5280_v30  ;;  %2870 = vmatpush1.bf16.msra.mxu0 %v5283_v32  ;;  %v5331_v30 = vld [vmem:[#allocation8 + $0x10] ss:$8 sps:$4 sm:$0xff]   ;;  %v5336_v32 = vld [vmem:[#allocation8 + $0x24] ss:$8 sps:$4 sm:$0xff]  }
 0x785   :  { %2789 = vmatprep.subr.bf16.mxu1 %v5288_v33  ;;  %2871 = vmatprep.subr.bf16.mxu0 %v5291_v36  ;;  %v5334_v33 = vld [vmem:[#allocation8 + $0x20] ss:$8 sps:$4 sm:$0xff]   ;;  %v5339_v36 = vld [vmem:[#allocation8 + $0x34] ss:$8 sps:$4 sm:$0xff]  }
 0x788   :  { %2790 = vmatpush1.bf16.msra.mxu1 %v5286_v37  ;;  %2872 = vmatpush1.bf16.msra.mxu0 %v5289_v42  ;;  %v5337_v37 = vld [vmem:[#allocation8 + $0x30] ss:$8 sps:$4 sm:$0xff]   ;;  %v5342_v42 = vld [vmem:[#allocation8 + $0x44] ss:$8 sps:$4 sm:$0xff]  }
 0x789   :  { %2791 = vmatprep.subr.bf16.mxu1 %v5294_v43  ;;  %2873 = vmatprep.subr.bf16.mxu0 %v5297_v44  ;;  %v5340_v43 = vld [vmem:[#allocation8 + $0x40] ss:$8 sps:$4 sm:$0xff]   ;;  %v5345_v44 = vld [vmem:[#allocation8 + $0x54] ss:$8 sps:$4 sm:$0xff]  }
 0x78c   :  { %2792 = vmatpush1.bf16.msra.mxu1 %v5292_v50  ;;  %2874 = vmatpush1.bf16.msra.mxu0 %v5295_v51  ;;  %v5343_v50 = vld [vmem:[#allocation8 + $0x50] ss:$8 sps:$4 sm:$0xff]   ;;  %v5348_v51 = vld [vmem:[#allocation8 + $0x64] ss:$8 sps:$4 sm:$0xff]  }
 0x78d   :  { %2793 = vmatprep.subr.bf16.mxu1 %v5300_v52  ;;  %2875 = vmatprep.subr.bf16.mxu0 %v5303_v45  ;;  %v5346_v52 = vld [vmem:[#allocation8 + $0x60] ss:$8 sps:$4 sm:$0xff]   ;;  %v5351_v45 = vld [vmem:[#allocation8 + $0x74] ss:$8 sps:$4 sm:$0xff]  }
 0x790   :  { %2794 = vmatpush1.bf16.msra.mxu1 %v5298_v47  ;;  %2876 = vmatpush1.bf16.msra.mxu0 %v5301_v35  ;;  %v5349_v47 = vld [vmem:[#allocation8 + $0x70] ss:$8 sps:$4 sm:$0xff]   ;;  %v5354_v35 = vld [vmem:[#allocation8 + $0x84] ss:$8 sps:$4 sm:$0xff]  }
 0x791   :  { %2795 = vmatprep.subr.bf16.mxu1 %v5306_v53  ;;  %2877 = vmatprep.subr.bf16.mxu0 %v5309_v56  ;;  %v5352_v53 = vld [vmem:[#allocation8 + $0x80] ss:$8 sps:$4 sm:$0xff]   ;;  %v5357_v56 = vld [vmem:[#allocation8 + $0x94] ss:$8 sps:$4 sm:$0xff]  }
 0x794   :  { %2796 = vmatpush1.bf16.msra.mxu1 %v5304_v46  ;;  %2878 = vmatpush1.bf16.msra.mxu0 %v5307_v4  ;;  %v5355_v46 = vld [vmem:[#allocation8 + $0x90] ss:$8 sps:$4 sm:$0xff]  }
 0x795   :  { %2797 = vmatprep.subr.bf16.mxu1 %v5312_v54  ;;  %2879 = vmatprep.subr.bf16.mxu0 %v5315_v49 }
 0x798   :  { %2798 = vmatpush1.bf16.msra.mxu1 %v5310_v57  ;;  %2880 = vmatpush1.bf16.msra.mxu0 %v5313_v48 }
 0x799   :  { %2799 = vmatprep.subr.bf16.mxu1 %v5318_v34  ;;  %2881 = vmatprep.subr.bf16.mxu0 %v5321_v58 }
 0x79c   :  { %2800 = vmatpush1.bf16.msra.mxu1 %v5316_v60  ;;  %2882 = vmatpush1.bf16.msra.mxu0 %v5319_v61 }
 0x79d   :  { %2801 = vmatprep.subr.bf16.mxu1 %v5324_v63  ;;  %2883 = vmatprep.subr.bf16.mxu0 %v5327_v0 }
 0x7a0   :  { %2802 = vmatpush1.bf16.msra.mxu1 %v5322_v2  ;;  %2884 = vmatpush1.bf16.msra.mxu0 %v5325_v3  ;;  %v5360_v3 = vld [vmem:[#allocation8 + $0xa4] ss:$8 sps:$4 sm:$0xff]  }
 0x7a1   :  { %3376 = vmatprep.subr.bf16.mxu1 %v5330_v28 }
 0x7a3   :  { %2804 = vmatmul.mubr.bf16.vlgmr.msra.gmra.mrb[8].mxu1 %v1939_v6  ;;  %2886 = vmatmul.mubr.bf16.vlgmr.msra.gmra.mrb[12].mxu0 %v1939_v6  ;;  %v5361_v6 = vld [vmem:[#allocation8 + $0xb0] ss:$8 sps:$4 sm:$0xff]  }
 0x7a4   :  { %3377 = vmatpush1.bf16.msra.mxu1 %v5328_v27 }
 0x7a5   :  { %3378 = vmatprep.subr.bf16.mxu1 %v5333_v29 }
 0x7a8   :  { %3379 = vmatpush1.bf16.msra.mxu1 %v5331_v30 }
 0x7a9   :  { %3380 = vmatprep.subr.bf16.mxu1 %v5336_v32 }
 0x7ac   :  { %3381 = vmatpush1.bf16.msra.mxu1 %v5334_v33 }
 0x7ad   :  { %3382 = vmatprep.subr.bf16.mxu1 %v5339_v36 }
 0x7b0   :  { %3383 = vmatpush1.bf16.msra.mxu1 %v5337_v37 }
 0x7b1   :  { %3384 = vmatprep.subr.bf16.mxu1 %v5342_v42 }
 0x7b4   :  { %3385 = vmatpush1.bf16.msra.mxu1 %v5340_v43 }
 0x7b5   :  { %3386 = vmatprep.subr.bf16.mxu1 %v5345_v44 }
 0x7b8   :  { %3387 = vmatpush1.bf16.msra.mxu1 %v5343_v50 }
 0x7b9   :  { %3388 = vmatprep.subr.bf16.mxu1 %v5348_v51 }
 0x7bc   :  { %3389 = vmatpush1.bf16.msra.mxu1 %v5346_v52 }
 0x7bd   :  { %3390 = vmatprep.subr.bf16.mxu1 %v5351_v45 }
 0x7c0   :  { %3391 = vmatpush1.bf16.msra.mxu1 %v5349_v47 }
 0x7c1   :  { %3392 = vmatprep.subr.bf16.mxu1 %v5354_v35 }
 0x7c4   :  { %3393 = vmatpush1.bf16.msra.mxu1 %v5352_v53 }
 0x7c5   :  { %3394 = vmatprep.subr.bf16.mxu1 %v5357_v56  ;;  %v5376_v56 = vld [vmem:[#allocation8 + $0x100] ss:$8 sps:$4 sm:$0xff]  }
 0x7c8   :  { %3395 = vmatpush1.bf16.msra.mxu1 %v5355_v46 }
 0x7c9   :  { %3396 = vmatprep.subr.bf16.mxu1 %v5360_v3  ;;  %v5400_v3 = vld [vmem:[#allocation8 + $0x180] ss:$8 sps:$4 sm:$0xff]  }
 0x7cc   :  { %3397 = vmatpush1.bf16.msra.mxu1 %v5358_v5  ;;  %v5405_v5 = vld [vmem:[#allocation8 + $0x194] ss:$8 sps:$4 sm:$0xff]  }
 0x7cd   :  { %3398 = vmatprep.subr.bf16.mxu1 %v5363_v9  ;;  %v5408_v9 = vld [vmem:[#allocation8 + $0x1a4] ss:$8 sps:$4 sm:$0xff]  }
 0x7d0   :  { %3399 = vmatpush1.bf16.msra.mxu1 %v5361_v6  ;;  %v5403_v6 = vld [vmem:[#allocation8 + $0x190] ss:$8 sps:$4 sm:$0xff]  }
 0x876   :  { %v2805_v41 = vpop.f32.mrb[8].mxu1  ;;  %v2887_v40 = vpop.f32.mrb[12].mxu0 }
 0x877   :  { %v4801_v12 = vadd.f32 %v2805_v41, %v2073_v38  ;;  %v2807_v13 = vpop.f32.mrb[9].mxu1  ;;  %v2889_v14 = vpop.f32.mrb[13].mxu0  ;;  %v4803_v22 = vadd.f32 %v2887_v40, %v2081_v11  ;;  %v5366_v38 = vld [vmem:[#allocation8 + $0xc4] ss:$8 sps:$4 sm:$0xff]   ;;  %v5369_v41 = vld [vmem:[#allocation8 + $0xd4] ss:$8 sps:$4 sm:$0xff]  }
 0x878   :  { %v4802_v16 = vadd.f32 %v2807_v13, %v2077_v39  ;;  %v2809_v7 = vpop.f32.mrb[10].mxu1  ;;  %v2891_v18 = vpop.f32.mrb[14].mxu0  ;;  %v4804_v24 = vadd.f32 %v2889_v14, %v2085_v55  ;;  %v5364_v39 = vld [vmem:[#allocation8 + $0xc0] ss:$8 sps:$4 sm:$0xff]   ;;  %3400 = vmatprep.subr.bf16.mxu1 %v5366_v38  ;;  %v5367_v11 = vld [vmem:[#allocation8 + $0xd0] ss:$8 sps:$4 sm:$0xff]  }
 0x879   :  { %v2810_v19 = vpop.f32.mrb[11].mxu1  ;;  %v2892_v21 = vpop.f32.mrb[15].mxu0  ;;  %3401 = vmatpush1.bf16.msra.mxu1 %v5364_v39  ;;  %v5372_v40 = vld [vmem:[#allocation8 + $0xe4] ss:$8 sps:$4 sm:$0xff]   ;;  %v5375_v13 = vld [vmem:[#allocation8 + $0xf4] ss:$8 sps:$4 sm:$0xff]  }
 0x87a   :  { %v2896_v23 = vadd.f32 %v4802_v16, %v4801_v12  ;;  %3402 = vmatprep.subr.bf16.mxu1 %v5369_v41  ;;  %v5373_v14 = vld [vmem:[#allocation8 + $0xf0] ss:$8 sps:$4 sm:$0xff]   ;;  %v2894_v19 = vld [vmem:[#allocation13 + $0x22] sm:$0xf]  ;;  %v2895_v21 = vld [vmem:[#allocation13 + $0x26] sm:$0xf] }
 0x87b   :  { %v2955_v27 = vrot.slane %v2895_v21, %v6006_v10  ;;  %v2951_v28 = vrot.slane %v2895_v21, %v6003_v8  ;;  %v2963_v29 = vrot.slane %v2895_v21, %v6030_v62  ;;  %v2959_v30 = vrot.slane %v2895_v21, %v6025_v59  ;;  %v5406_v38 = vld [vmem:[#allocation8 + $0x1a0] ss:$8 sps:$4 sm:$0xff]   ;;  %v5411_v39 = vld [vmem:[#allocation8 + $0x1b4] ss:$8 sps:$4 sm:$0xff]   ;;  %v5409_v41 = vld [vmem:[#allocation8 + $0x1b0] ss:$8 sps:$4 sm:$0xff]  }
 0x87c   :  { %v2897_v25 = vadd.f32 %v4803_v22, %v2896_v23  ;;  %v2926_v23 = vrot.slane %v2894_v19, %v6003_v8  ;;  %v2976_v21 = vld [vmem:[#allocation13 + $0x2a] sm:$0x3] }
 0x87d   :  { %3403 = vmatpush1.bf16.msra.mxu1 %v5367_v11  ;;  %v5414_v11 = vld [vmem:[#allocation8 + $0x1c4] ss:$8 sps:$4 sm:$0xff]  }
 0x87e   :  { %v2898_v26 = vadd.f32 %v4804_v24, %v2897_v25  ;;  %3404 = vmatprep.subr.bf16.mxu1 %v5372_v40  ;;  %v2934_v25 = vrot.slane %v2894_v19, %v6025_v59  ;;  %v5412_v40 = vld [vmem:[#allocation8 + $0x1c0] ss:$8 sps:$4 sm:$0xff]  }
 0x880   :  { %2899 = vadd.xlane.f32.xlu0 %v2898_v26 }
 0x90d   :  { %v2900_v4 = vpop.xlane.xlu0 %2899 }
 0x90e   :  { %v2901_v54 = vmul.f32 0.001953125, %v2900_v4  ;;  %v5381_v4 = vld [vmem:[#allocation8 + $0x114] ss:$8 sps:$4 sm:$0xff]  }
 0x910   :  { %v2902_v49 = vsub.f32 %v4801_v12, %v2901_v54  ;;  %v2903_v57 = vsub.f32 %v4802_v16, %v2901_v54  ;;  %v2904_v48 = vsub.f32 %v4803_v22, %v2901_v54  ;;  %v2905_v34 = vsub.f32 %v4804_v24, %v2901_v54  ;;  %v5370_v12 = vld [vmem:[#allocation8 + $0xe0] ss:$8 sps:$4 sm:$0xff]   ;;  %v5378_v16 = vld [vmem:[#allocation8 + $0x104] ss:$8 sps:$4 sm:$0xff]  }
 0x911   :  { %3405 = vmatpush1.bf16.msra.mxu1 %v5370_v12  ;;  %v2930_v22 = vrot.slane %v2894_v19, %v6006_v10  ;;  %v2938_v24 = vrot.slane %v2894_v19, %v6030_v62  ;;  %v5417_v12 = vld [vmem:[#allocation8 + $0x1d4] ss:$8 sps:$4 sm:$0xff]  }
 0x912   :  { %v2906_v58 = vmul.f32 %v2902_v49, %v2902_v49  ;;  %v2907_v60 = vmul.f32 %v2903_v57, %v2903_v57  ;;  %v2908_v61 = vmul.f32 %v2904_v48, %v2904_v48  ;;  %v2909_v0 = vmul.f32 %v2905_v34, %v2905_v34  ;;  %3406 = vmatprep.subr.bf16.mxu1 %v5375_v13  ;;  %v5415_v13 = vld [vmem:[#allocation8 + $0x1d0] ss:$8 sps:$4 sm:$0xff]  }
 0x914   :  { %v2910_v63 = vadd.f32 %v2907_v60, %v2906_v58  ;;  %v5393_v58 = vld [vmem:[#allocation8 + $0x154] ss:$8 sps:$4 sm:$0xff]   ;;  %v5391_v60 = vld [vmem:[#allocation8 + $0x150] ss:$8 sps:$4 sm:$0xff]  }
 0x915   :  { %3407 = vmatpush1.bf16.msra.mxu1 %v5373_v14  ;;  %v5420_v14 = vld [vmem:[#allocation8 + $0x1e4] ss:$8 sps:$4 sm:$0xff]  }
 0x916   :  { %v2911_v1 = vadd.f32 %v2910_v63, %v2908_v61  ;;  %3417 = vmatprep.subr.bf16.mxu1 %v5378_v16  ;;  %v5396_v61 = vld [vmem:[#allocation8 + $0x164] ss:$8 sps:$4 sm:$0xff]   ;;  %v5394_v63 = vld [vmem:[#allocation8 + $0x160] ss:$8 sps:$4 sm:$0xff]  }
 0x917   :  { %v5418_v16 = vld [vmem:[#allocation8 + $0x1e0] ss:$8 sps:$4 sm:$0xff]  }
 0x918   :  { %v2912_v2 = vadd.f32 %v2911_v1, %v2909_v0  ;;  %v5399_v0 = vld [vmem:[#allocation8 + $0x174] ss:$8 sps:$4 sm:$0xff]   ;;  %v5397_v1 = vld [vmem:[#allocation8 + $0x170] ss:$8 sps:$4 sm:$0xff]  }
 0x91a   :  { %2913 = vadd.xlane.f32.xlu1 %v2912_v2  ;;  %v5402_v2 = vld [vmem:[#allocation8 + $0x184] ss:$8 sps:$4 sm:$0xff]  }
 0x9a7   :  { %v2914_v55 = vpop.xlane.xlu1 %2913 }
 0x9a8   :  { %v2915_v7 = vmul.f32 0.001953125, %v2914_v55  ;;  %v5423_v55 = vld [vmem:[#allocation8 + $0x1f4] ss:$8 sps:$4 sm:$0xff]  }
 0x9aa   :  { %v2916_v18 = vadd.f32 1e-05, %v2915_v7  ;;  %v5421_v7 = vld [vmem:[#allocation8 + $0x1f0] ss:$8 sps:$4 sm:$0xff]  }
 0x9ac   :  { %5566 = vrsqrt.f32 %v2916_v18 }
 0x9b6   :  { %v5567_v26 = vpop.eup %5566 }
 0x9b7   :  { %v2919_v32 = vmul.f32 %v5567_v26, %v2903_v57  ;;  %v2918_v33 = vmul.f32 %v5567_v26, %v2902_v49  ;;  %v2921_v36 = vmul.f32 %v5567_v26, %v2905_v34  ;;  %v2920_v37 = vmul.f32 %v5567_v26, %v2904_v48  ;;  %v5379_v49 = vld [vmem:[#allocation8 + $0x110] ss:$8 sps:$4 sm:$0xff]   ;;  %v5384_v57 = vld [vmem:[#allocation8 + $0x124] ss:$8 sps:$4 sm:$0xff]   ;;  %v5382_v48 = vld [vmem:[#allocation8 + $0x120] ss:$8 sps:$4 sm:$0xff]  }
 0x9b8   :  { %v5388_v34 = vld [vmem:[#allocation8 + $0x140] ss:$8 sps:$4 sm:$0xff]  }
 0x9b9   :  { %v2944_v42 = vmul.f32 %v2930_v22, %v2919_v32  ;;  %v2943_v43 = vmul.f32 %v2926_v23, %v2918_v33  ;;  %v2946_v44 = vmul.f32 %v2938_v24, %v2921_v36  ;;  %v2945_v50 = vmul.f32 %v2934_v25, %v2920_v37  ;;  %v5424_v32 = vld [vmem:[#allocation10] ss:$8 sps:$4 sm:$0xff]   ;;  %v5426_v33 = vld [vmem:[#allocation10 + $0x4] ss:$8 sps:$4 sm:$0xff]   ;;  %v5429_v36 = vld [vmem:[#allocation10 + $0x14] ss:$8 sps:$4 sm:$0xff]  }
 0x9ba   :  { %v3049_v22 = vrot.slane %v2976_v21, %v6003_v8  ;;  %v3053_v23 = vrot.slane %v2976_v21, %v6006_v10  ;;  %3722 = vmatprep.subr.bf16.mxu0 %v5426_v33  ;;  %v5432_v37 = vld [vmem:[#allocation10 + $0x24] ss:$8 sps:$4 sm:$0xff]  }
 0x9bb   :  { %v2969_v51 = vadd.f32 %v2955_v27, %v2944_v42  ;;  %v2968_v52 = vadd.f32 %v2951_v28, %v2943_v43  ;;  %v2971_v45 = vadd.f32 %v2963_v29, %v2946_v44  ;;  %v6147_v47 = vadd.f32 %v2959_v30, %v2945_v50  ;;  %3723 = vmatpush1.bf16.msra.mxu0 %v5424_v32  ;;  %v5430_v42 = vld [vmem:[#allocation10 + $0x20] ss:$8 sps:$4 sm:$0xff]  }
 0x9bc   :  { %3724 = vmatprep.subr.bf16.mxu0 %v5429_v36 }
 0x9bd   :  { %v2973_v35 = vadd.f32 %v2969_v51, %v6064_v15  ;;  %v2972_v53 = vadd.f32 %v2968_v52, %v6066_v17  ;;  %v2975_v62 = vadd.f32 %v2971_v45, %v6070_v20  ;;  %v5387_v15 = vld [vmem:[#allocation8 + $0x134] ss:$8 sps:$4 sm:$0xff]   ;;  %v5385_v17 = vld [vmem:[#allocation8 + $0x130] ss:$8 sps:$4 sm:$0xff]   ;;  %v5390_v20 = vld [vmem:[#allocation8 + $0x144] ss:$8 sps:$4 sm:$0xff]   ;;  %v2974_v18 = vadd.f32 %v6147_v47, %v6078_v31 }
 0x9be   :  { %v5427_v31 = vld [vmem:[#allocation10 + $0x10] ss:$8 sps:$4 sm:$0xff]  }
 0x9bf   :  { %v2978_v59 = vpack.c.bf16 %v2973_v35, %v2973_v35  ;;  %v2977_v46 = vpack.c.bf16 %v2972_v53, %v2972_v53  ;;  %v2980_v54 = vpack.c.bf16 %v2975_v62, %v2975_v62  ;;  %v2979_v19 = vpack.c.bf16 %v2974_v18, %v2974_v18  ;;  %3725 = vmatpush1.bf16.msra.mxu0 %v5427_v31  ;;  %v5435_v35 = vld [vmem:[#allocation10 + $0x34] ss:$8 sps:$4 sm:$0xff]   ;;  %v5433_v53 = vld [vmem:[#allocation10 + $0x30] ss:$8 sps:$4 sm:$0xff]   ;;  %v5438_v62 = vld [vmem:[#allocation10 + $0x44] ss:$8 sps:$4 sm:$0xff]  }
 0x9c0   :  { %3726 = vmatprep.subr.bf16.mxu0 %v5432_v37 }
 0x9c1   :  { %3408 = vmatprep.mubr.bf16.mxu1 %v2978_v59  ;;  %v5436_v59 = vld [vmem:[#allocation10 + $0x40] ss:$8 sps:$4 sm:$0xff]  }
 0x9c2   :  { %3409 = vmatmul.mubr.bf16.vlgmr.msra.gmra.mrb[12].mxu1 %v2977_v46  ;;  %v5439_v46 = vld [vmem:[#allocation10 + $0x50] ss:$8 sps:$4 sm:$0xff]  }
 0x9c3   :  { %3418 = vmatpush1.bf16.msra.mxu1 %v5376_v56  ;;  %3449 = vmatprep.mubr.bf16.mxu1 %v2980_v54  ;;  %v5441_v56 = vld [vmem:[#allocation10 + $0x54] ss:$8 sps:$4 sm:$0xff]   ;;  %v5442_v54 = vld [vmem:[#allocation10 + $0x60] ss:$8 sps:$4 sm:$0xff]  }
 0x9c4   :  { %3419 = vmatprep.subr.bf16.mxu1 %v5381_v4  ;;  %3727 = vmatpush1.bf16.msra.mxu0 %v5430_v42  ;;  %v5444_v4 = vld [vmem:[#allocation10 + $0x64] ss:$8 sps:$4 sm:$0xff]   ;;  %v3516_v42 = vld [vmem:[#allocation13 + $0x30] sm:$0x3] }
 0x9c5   :  { %3728 = vmatprep.subr.bf16.mxu0 %v5435_v35 }
 0x9c7   :  { %3420 = vmatpush1.bf16.msra.mxu1 %v5379_v49  ;;  %v5447_v49 = vld [vmem:[#allocation10 + $0x74] ss:$8 sps:$4 sm:$0xff]  }
 0x9c8   :  { %3421 = vmatprep.subr.bf16.mxu1 %v5384_v57  ;;  %3729 = vmatpush1.bf16.msra.mxu0 %v5433_v53  ;;  %v5445_v57 = vld [vmem:[#allocation10 + $0x70] ss:$8 sps:$4 sm:$0xff]  }
 0x9c9   :  { %3730 = vmatprep.subr.bf16.mxu0 %v5438_v62  ;;  %v5472_v62 = vld [vmem:[#allocation11] ss:$8 sps:$4 sm:$0xff]  }
 0x9cb   :  { %3422 = vmatpush1.bf16.msra.mxu1 %v5382_v48  ;;  %v5450_v48 = vld [vmem:[#allocation10 + $0x84] ss:$8 sps:$4 sm:$0xff]  }
 0x9cc   :  { %3423 = vmatprep.subr.bf16.mxu1 %v5387_v15  ;;  %3731 = vmatpush1.bf16.msra.mxu0 %v5436_v59  ;;  %v5448_v15 = vld [vmem:[#allocation10 + $0x80] ss:$8 sps:$4 sm:$0xff]   ;;  %v5474_v59 = vld [vmem:[#allocation11 + $0x4] ss:$8 sps:$4 sm:$0xff]  }
 0x9cd   :  { %3732 = vmatprep.subr.bf16.mxu0 %v5441_v56  ;;  %v5477_v56 = vld [vmem:[#allocation11 + $0x14] ss:$8 sps:$4 sm:$0xff]  }
 0x9cf   :  { %3424 = vmatpush1.bf16.msra.mxu1 %v5385_v17  ;;  %v5453_v17 = vld [vmem:[#allocation10 + $0x94] ss:$8 sps:$4 sm:$0xff]  }
 0x9d0   :  { %3425 = vmatprep.subr.bf16.mxu1 %v5390_v20  ;;  %3733 = vmatpush1.bf16.msra.mxu0 %v5439_v46  ;;  %v5451_v20 = vld [vmem:[#allocation10 + $0x90] ss:$8 sps:$4 sm:$0xff]  }
 0x9d1   :  { %3734 = vmatprep.subr.bf16.mxu0 %v5444_v4  ;;  %v5475_v46 = vld [vmem:[#allocation11 + $0x10] ss:$8 sps:$4 sm:$0xff]   ;;  %v5480_v4 = vld [vmem:[#allocation11 + $0x24] ss:$8 sps:$4 sm:$0xff]  }
 0x9d3   :  { %3426 = vmatpush1.bf16.msra.mxu1 %v5388_v34  ;;  %v5456_v34 = vld [vmem:[#allocation10 + $0xa4] ss:$8 sps:$4 sm:$0xff]  }
 0x9d4   :  { %3427 = vmatprep.subr.bf16.mxu1 %v5393_v58  ;;  %3735 = vmatpush1.bf16.msra.mxu0 %v5442_v54  ;;  %v5454_v58 = vld [vmem:[#allocation10 + $0xa0] ss:$8 sps:$4 sm:$0xff]  }
 0x9d5   :  { %3736 = vmatprep.subr.bf16.mxu0 %v5447_v49  ;;  %v5478_v54 = vld [vmem:[#allocation11 + $0x20] ss:$8 sps:$4 sm:$0xff]   ;;  %v5483_v49 = vld [vmem:[#allocation11 + $0x34] ss:$8 sps:$4 sm:$0xff]  }
 0x9d7   :  { %3428 = vmatpush1.bf16.msra.mxu1 %v5391_v60  ;;  %v5459_v60 = vld [vmem:[#allocation10 + $0xb4] ss:$8 sps:$4 sm:$0xff]  }
 0x9d8   :  { %3429 = vmatprep.subr.bf16.mxu1 %v5396_v61  ;;  %3737 = vmatpush1.bf16.msra.mxu0 %v5445_v57  ;;  %v5457_v61 = vld [vmem:[#allocation10 + $0xb0] ss:$8 sps:$4 sm:$0xff]  }
 0x9d9   :  { %3738 = vmatprep.subr.bf16.mxu0 %v5450_v48  ;;  %v5481_v57 = vld [vmem:[#allocation11 + $0x30] ss:$8 sps:$4 sm:$0xff]   ;;  %v5486_v48 = vld [vmem:[#allocation11 + $0x44] ss:$8 sps:$4 sm:$0xff]  }
 0x9db   :  { %3430 = vmatpush1.bf16.msra.mxu1 %v5394_v63  ;;  %v5462_v63 = vld [vmem:[#allocation10 + $0xc4] ss:$8 sps:$4 sm:$0xff]  }
 0x9dc   :  { %3431 = vmatprep.subr.bf16.mxu1 %v5399_v0  ;;  %3739 = vmatpush1.bf16.msra.mxu0 %v5448_v15  ;;  %v5460_v0 = vld [vmem:[#allocation10 + $0xc0] ss:$8 sps:$4 sm:$0xff]  }
 0x9dd   :  { %3740 = vmatprep.subr.bf16.mxu0 %v5453_v17  ;;  %v5484_v15 = vld [vmem:[#allocation11 + $0x40] ss:$8 sps:$4 sm:$0xff]   ;;  %v5489_v17 = vld [vmem:[#allocation11 + $0x54] ss:$8 sps:$4 sm:$0xff]  }
 0x9df   :  { %3432 = vmatpush1.bf16.msra.mxu1 %v5397_v1  ;;  %v5465_v1 = vld [vmem:[#allocation10 + $0xd4] ss:$8 sps:$4 sm:$0xff]  }
 0x9e0   :  { %3433 = vmatprep.subr.bf16.mxu1 %v5402_v2  ;;  %3741 = vmatpush1.bf16.msra.mxu0 %v5451_v20  ;;  %v5463_v2 = vld [vmem:[#allocation10 + $0xd0] ss:$8 sps:$4 sm:$0xff]  }
 0x9e1   :  { %3742 = vmatprep.subr.bf16.mxu0 %v5456_v34  ;;  %v5487_v20 = vld [vmem:[#allocation11 + $0x50] ss:$8 sps:$4 sm:$0xff]   ;;  %v5492_v34 = vld [vmem:[#allocation11 + $0x64] ss:$8 sps:$4 sm:$0xff]  }
 0x9e3   :  { %3434 = vmatpush1.bf16.msra.mxu1 %v5400_v3  ;;  %v5468_v3 = vld [vmem:[#allocation10 + $0xe4] ss:$8 sps:$4 sm:$0xff]  }
 0x9e4   :  { %3435 = vmatprep.subr.bf16.mxu1 %v5405_v5  ;;  %3743 = vmatpush1.bf16.msra.mxu0 %v5454_v58  ;;  %v5466_v5 = vld [vmem:[#allocation10 + $0xe0] ss:$8 sps:$4 sm:$0xff]  }
 0x9e5   :  { %3744 = vmatprep.subr.bf16.mxu0 %v5459_v60  ;;  %v5490_v58 = vld [vmem:[#allocation11 + $0x60] ss:$8 sps:$4 sm:$0xff]   ;;  %v5495_v60 = vld [vmem:[#allocation11 + $0x74] ss:$8 sps:$4 sm:$0xff]  }
 0x9e7   :  { %3436 = vmatpush1.bf16.msra.mxu1 %v5403_v6  ;;  %v5471_v6 = vld [vmem:[#allocation10 + $0xf4] ss:$8 sps:$4 sm:$0xff]  }
 0x9e8   :  { %3437 = vmatprep.subr.bf16.mxu1 %v5408_v9  ;;  %3745 = vmatpush1.bf16.msra.mxu0 %v5457_v61  ;;  %v5469_v9 = vld [vmem:[#allocation10 + $0xf0] ss:$8 sps:$4 sm:$0xff]  }
 0x9e9   :  { %3746 = vmatprep.subr.bf16.mxu0 %v5462_v63  ;;  %v5493_v61 = vld [vmem:[#allocation11 + $0x70] ss:$8 sps:$4 sm:$0xff]   ;;  %v5498_v63 = vld [vmem:[#allocation11 + $0x84] ss:$8 sps:$4 sm:$0xff]  }
 0x9eb   :  { %3438 = vmatpush1.bf16.msra.mxu1 %v5406_v38 }
 0x9ec   :  { %3439 = vmatprep.subr.bf16.mxu1 %v5411_v39  ;;  %3747 = vmatpush1.bf16.msra.mxu0 %v5460_v0  ;;  %v5496_v0 = vld [vmem:[#allocation11 + $0x80] ss:$8 sps:$4 sm:$0xff]  }
 0x9ed   :  { %3748 = vmatprep.subr.bf16.mxu0 %v5465_v1  ;;  %v5501_v1 = vld [vmem:[#allocation11 + $0x94] ss:$8 sps:$4 sm:$0xff]  }
 0x9ef   :  { %3440 = vmatpush1.bf16.msra.mxu1 %v5409_v41 }
 0x9f0   :  { %3441 = vmatprep.subr.bf16.mxu1 %v5414_v11  ;;  %3749 = vmatpush1.bf16.msra.mxu0 %v5463_v2  ;;  %v3458_v11 = vld [vmem:[#allocation13 + $0x2c] sm:$0x3]  ;;  %v5499_v2 = vld [vmem:[#allocation11 + $0x90] ss:$8 sps:$4 sm:$0xff]  }
 0x9f1   :  { %3750 = vmatprep.subr.bf16.mxu0 %v5468_v3 }
 0x9f3   :  { %3442 = vmatpush1.bf16.msra.mxu1 %v5412_v40  ;;  %v3459_v40 = vld [vmem:[#allocation13 + $0x2e] sm:$0x3] }
 0x9f4   :  { %3443 = vmatprep.subr.bf16.mxu1 %v5417_v12  ;;  %3751 = vmatpush1.bf16.msra.mxu0 %v5466_v5  ;;  %v3480_v12 = vrot.slane %v3458_v11, %v6003_v8  ;;  %v3497_v18 = vrot.slane %v3459_v40, %v6006_v10 }
 0x9f5   :  { %3752 = vmatprep.subr.bf16.mxu0 %v5471_v6 }
 0x9f7   :  { %3444 = vmatpush1.bf16.msra.mxu1 %v5415_v13  ;;  %v3484_v13 = vrot.slane %v3458_v11, %v6006_v10  ;;  %v5504_v11 = vld [vmem:[#allocation11 + $0xa4] ss:$8 sps:$4 sm:$0xff]  }
 0x9f8   :  { %3445 = vmatprep.subr.bf16.mxu1 %v5420_v14  ;;  %3753 = vmatpush1.bf16.msra.mxu0 %v5469_v9 }
 0x9f9   :  { %4019 = vmatprep.subr.bf16.mxu0 %v5474_v59  ;;  %v3813_v59 = vld [vmem:[#allocation13 + $0x36] sm:$0x3] }
 0x9fb   :  { %3446 = vmatpush1.bf16.msra.mxu1 %v5418_v16 }
 0x9fc   :  { %3447 = vmatprep.subr.bf16.mxu1 %v5423_v55 }
 0x9ff   :  { %3448 = vmatpush1.bf16.msra.mxu1 %v5421_v7  ;;  %v3493_v7 = vrot.slane %v3459_v40, %v6003_v8  ;;  %v5502_v40 = vld [vmem:[#allocation11 + $0xa0] ss:$8 sps:$4 sm:$0xff]  }
 0xa02   :  { %3450 = vmatmul.mubr.bf16.vlgmr.msra.gmra.mrb[12].mxu1 %v2979_v19 }
 0xad5   :  { %v3451_v24 = vpop.f32.mrb[12].mxu1 }
 0xad6   :  { %v4805_v25 = vadd.f32 %v3451_v24, %v3049_v22  ;;  %v3453_v26 = vpop.f32.mrb[13].mxu1 }
 0xad7   :  { %v4806_v27 = vadd.f32 %v3453_v26, %v3053_v23  ;;  %v3455_v28 = vpop.f32.mrb[14].mxu1 }
 0xad8   :  { %v3456_v29 = vpop.f32.mrb[15].mxu1 }
 0xad9   :  { %v3460_v30 = vadd.f32 %v4806_v27, %v4805_v25 }
 0xadb   :  { %3461 = vadd.xlane.f32.xlu0 %v3460_v30 }
 0xb68   :  { %v3462_v43 = vpop.xlane.xlu0 %3461 }
 0xb69   :  { %v3463_v44 = vmul.f32 0.00390625, %v3462_v43  ;;  %v3555_v43 = vrot.slane %v3516_v42, %v6003_v8 }
 0xb6b   :  { %v6156_v50 = vsub.f32 %v4805_v25, %v3463_v44  ;;  %v6158_v51 = vsub.f32 %v4806_v27, %v3463_v44  ;;  %v3559_v44 = vrot.slane %v3516_v42, %v6006_v10 }
 0xb6d   :  { %v3466_v52 = vmul.f32 %v6156_v50, %v6156_v50  ;;  %v3467_v45 = vmul.f32 %v6158_v51, %v6158_v51 }
 0xb6f   :  { %v3468_v47 = vadd.f32 %v3467_v45, %v3466_v52 }
 0xb71   :  { %3469 = vadd.xlane.f32.xlu1 %v3468_v47 }
 0xbfe   :  { %v3470_v38 = vpop.xlane.xlu1 %3469 }
 0xbff   :  { %v3471_v39 = vmul.f32 0.00390625, %v3470_v38 }
 0xc01   :  { %v3472_v41 = vadd.f32 1e-05, %v3471_v39 }
 0xc03   :  { %5568 = vrsqrt.f32 %v3472_v41 }
 0xc0d   :  { %v5569_v14 = vpop.eup %5568 }
 0xc0e   :  { %v3474_v16 = vmul.f32 %v5569_v14, %v6156_v50  ;;  %v3475_v55 = vmul.f32 %v5569_v14, %v6158_v51  ;;  %v5510_v14 = vld [vmem:[#allocation11 + $0xc4] ss:$8 sps:$4 sm:$0xff]  }
 0xc10   :  { %v3488_v19 = vmul.f32 %v3484_v13, %v3475_v55  ;;  %v3487_v21 = vmul.f32 %v3480_v12, %v3474_v16  ;;  %v5507_v12 = vld [vmem:[#allocation11 + $0xb4] ss:$8 sps:$4 sm:$0xff]   ;;  %v5505_v13 = vld [vmem:[#allocation11 + $0xb0] ss:$8 sps:$4 sm:$0xff]   ;;  %v5508_v16 = vld [vmem:[#allocation11 + $0xc0] ss:$8 sps:$4 sm:$0xff]  }
 0xc11   :  { %v5513_v55 = vld [vmem:[#allocation11 + $0xd4] ss:$8 sps:$4 sm:$0xff]  }
 0xc12   :  { %v3501_v22 = vadd.f32 %v3497_v18, %v3488_v19  ;;  %v3500_v23 = vadd.f32 %v3493_v7, %v3487_v21  ;;  %v5511_v7 = vld [vmem:[#allocation11 + $0xd0] ss:$8 sps:$4 sm:$0xff]   ;;  %v5516_v18 = vld [vmem:[#allocation11 + $0xe4] ss:$8 sps:$4 sm:$0xff]   ;;  %v5514_v19 = vld [vmem:[#allocation11 + $0xe0] ss:$8 sps:$4 sm:$0xff]  }
 0xc13   :  { %v5519_v21 = vld [vmem:[#allocation11 + $0xf4] ss:$8 sps:$4 sm:$0xff]  }
 0xc14   :  { %v4693_v24 = vmul.f32 -1.442695, %v3501_v22  ;;  %v4692_v25 = vmul.f32 -1.442695, %v3500_v23 }
 0xc16   :  { %5570 = vpow2.f32 %v4693_v24 }
 0xc17   :  { %5572 = vpow2.f32 %v4692_v25 }
 0xc20   :  { %v5571_v26 = vpop.eup %5570 }
 0xc21   :  { %v5573_v27 = vpop.eup %5572  ;;  %v3509_v28 = vadd.f32 1.0, %v5571_v26  ;;  %v3763_v26 = vld [vmem:[#allocation13 + $0x32] sm:$0x3] }
 0xc22   :  { %v3508_v29 = vadd.f32 1.0, %v5573_v27  ;;  %v3764_v27 = vld [vmem:[#allocation13 + $0x34] sm:$0x3] }
 0xc23   :  { %5574 = vrcp.f32 %v3509_v28  ;;  %v3785_v28 = vrot.slane %v3763_v26, %v6003_v8  ;;  %v3802_v42 = vrot.slane %v3764_v27, %v6006_v10 }
 0xc24   :  { %5576 = vrcp.f32 %v3508_v29  ;;  %v3789_v29 = vrot.slane %v3763_v26, %v6006_v10 }
 0xc2d   :  { %v5575_v30 = vpop.eup %5574 }
 0xc2e   :  { %v5577_v32 = vpop.eup %5576  ;;  %v6170_v33 = vmul.f32 %v5575_v30, %v3501_v22  ;;  %v5517_v22 = vld [vmem:[#allocation11 + $0xf0] ss:$8 sps:$4 sm:$0xff]  }
 0xc2f   :  { %v6172_v36 = vmul.f32 %v5577_v32, %v3500_v23 }
 0xc30   :  { %v3518_v31 = vpack.c.bf16 %v6170_v33, %v6170_v33 }
 0xc31   :  { %v3517_v37 = vpack.c.bf16 %v6172_v36, %v6172_v36 }
 0xc32   :  { %3754 = vmatprep.mubr.bf16.mxu0 %v3518_v31 }
 0xc33   :  { %3755 = vmatmul.mubr.bf16.vlgmr.msra.gmra.mrb[16].mxu0 %v3517_v37  ;;  %v3798_v37 = vrot.slane %v3764_v27, %v6003_v8 }
 0xc34   :  { %4020 = vmatpush1.bf16.msra.mxu0 %v5472_v62 }
 0xc35   :  { %4021 = vmatprep.subr.bf16.mxu0 %v5477_v56  ;;  %v3852_v56 = vrot.slane %v3813_v59, %v6003_v8 }
 0xc38   :  { %4022 = vmatpush1.bf16.msra.mxu0 %v5475_v46  ;;  %v3856_v46 = vrot.slane %v3813_v59, %v6006_v10 }
 0xc39   :  { %4023 = vmatprep.subr.bf16.mxu0 %v5480_v4 }
 0xc3c   :  { %4024 = vmatpush1.bf16.msra.mxu0 %v5478_v54 }
 0xc3d   :  { %4025 = vmatprep.subr.bf16.mxu0 %v5483_v49 }
 0xc40   :  { %4026 = vmatpush1.bf16.msra.mxu0 %v5481_v57 }
 0xc41   :  { %4027 = vmatprep.subr.bf16.mxu0 %v5486_v48 }
 0xc44   :  { %4028 = vmatpush1.bf16.msra.mxu0 %v5484_v15 }
 0xc45   :  { %4029 = vmatprep.subr.bf16.mxu0 %v5489_v17 }
 0xc48   :  { %4030 = vmatpush1.bf16.msra.mxu0 %v5487_v20  ;;  %v5520_v20 = vld [vmem:[#allocation14 + $0x40] sm:$0xff]  }
 0xc49   :  { %4031 = vmatprep.subr.bf16.mxu0 %v5492_v34  ;;  %v5521_v34 = vld [vmem:[#allocation14] sm:$0xff]   ;;  %4775 = vmatprep.subr.bf16.mxu1 %v5520_v20 }
 0xc4a   :  { %4776 = vmatpush3.bf16.msra.mxu1 %v5521_v34 }
 0xc4c   :  { %4032 = vmatpush1.bf16.msra.mxu0 %v5490_v58  ;;  %v5522_v58 = vld [vmem:[#allocation14 + $0x48] sm:$0xff]  }
 0xc4d   :  { %4033 = vmatprep.subr.bf16.mxu0 %v5495_v60  ;;  %v5523_v60 = vld [vmem:[#allocation14 + $0x8] sm:$0xff]   ;;  %4777 = vmatprep.subr.bf16.mxu1 %v5522_v58 }
 0xc4e   :  { %4778 = vmatpush3.bf16.msra.mxu1 %v5523_v60 }
 0xc50   :  { %4034 = vmatpush1.bf16.msra.mxu0 %v5493_v61 }
 0xc51   :  { %4035 = vmatprep.subr.bf16.mxu0 %v5498_v63 }
 0xc54   :  { %4036 = vmatpush1.bf16.msra.mxu0 %v5496_v0 }
 0xc55   :  { %4037 = vmatprep.subr.bf16.mxu0 %v5501_v1 }
 0xc58   :  { %4038 = vmatpush1.bf16.msra.mxu0 %v5499_v2 }
 0xc59   :  { %4039 = vmatprep.subr.bf16.mxu0 %v5504_v11  ;;  %v5529_v11 = vld [vmem:[#allocation14 + $0x20] sm:$0xff]  }
 0xc5c   :  { %4040 = vmatpush1.bf16.msra.mxu0 %v5502_v40  ;;  %v5530_v40 = vld [vmem:[#allocation14 + $0x68] sm:$0xff]  }
 0xc5d   :  { %4041 = vmatprep.subr.bf16.mxu0 %v5507_v12  ;;  %v5531_v12 = vld [vmem:[#allocation14 + $0x28] sm:$0xff]  }
 0xc60   :  { %4042 = vmatpush1.bf16.msra.mxu0 %v5505_v13  ;;  %v5532_v13 = vld [vmem:[#allocation14 + $0x70] sm:$0xff]  }
 0xc61   :  { %4043 = vmatprep.subr.bf16.mxu0 %v5510_v14  ;;  %v5533_v14 = vld [vmem:[#allocation14 + $0x30] sm:$0xff]  }
 0xc64   :  { %4044 = vmatpush1.bf16.msra.mxu0 %v5508_v16  ;;  %v5534_v16 = vld [vmem:[#allocation14 + $0x78] sm:$0xff]  }
 0xc65   :  { %4045 = vmatprep.subr.bf16.mxu0 %v5513_v55  ;;  %v5535_v55 = vld [vmem:[#allocation14 + $0x38] sm:$0xff]  }
 0xc68   :  { %4046 = vmatpush1.bf16.msra.mxu0 %v5511_v7 }
 0xc69   :  { %4047 = vmatprep.subr.bf16.mxu0 %v5516_v18 }
 0xc6c   :  { %4048 = vmatpush1.bf16.msra.mxu0 %v5514_v19 }
 0xc6d   :  { %4049 = vmatprep.subr.bf16.mxu0 %v5519_v21  ;;  %v4060_v21 = vld [vmem:[#allocation13 + $0x38] sm:$0x3] }
 0xc70   :  { %4050 = vmatpush1.bf16.msra.mxu0 %v5517_v22  ;;  %v4061_v22 = vld [vmem:[#allocation13 + $0x3a] sm:$0x3] }
 0xd06   :  { %v3756_v50 = vpop.f32.mrb[16].mxu0 }
 0xd07   :  { %v3757_v51 = vadd.f32 %v3756_v50, %v3555_v43  ;;  %v3758_v52 = vpop.f32.mrb[17].mxu0 }
 0xd08   :  { %v3759_v45 = vadd.f32 %v3758_v52, %v3559_v44  ;;  %v3760_v47 = vpop.f32.mrb[18].mxu0 }
 0xd09   :  { %v3761_v35 = vpop.f32.mrb[19].mxu0 }
 0xd0a   :  { %v3765_v53 = vadd.f32 %v3759_v45, %v3757_v51 }
 0xd0c   :  { %3766 = vadd.xlane.f32.xlu0 %v3765_v53 }
 0xd99   :  { %v3767_v3 = vpop.xlane.xlu0 %3766 }
 0xd9a   :  { %v3768_v5 = vmul.f32 0.00390625, %v3767_v3 }
 0xd9c   :  { %v3769_v6 = vsub.f32 %v3757_v51, %v3768_v5  ;;  %v3770_v9 = vsub.f32 %v3759_v45, %v3768_v5 }
 0xd9e   :  { %v3771_v38 = vmul.f32 %v3769_v6, %v3769_v6  ;;  %v3772_v39 = vmul.f32 %v3770_v9, %v3770_v9 }
 0xda0   :  { %v3773_v41 = vadd.f32 %v3772_v39, %v3771_v38  ;;  %v5526_v38 = vld [vmem:[#allocation14 + $0x58] sm:$0xff]  }
 0xda1   :  { %v5527_v39 = vld [vmem:[#allocation14 + $0x18] sm:$0xff]  }
 0xda2   :  { %3774 = vadd.xlane.f32.xlu1 %v3773_v41  ;;  %v5528_v41 = vld [vmem:[#allocation14 + $0x60] sm:$0xff]  }
 0xe2f   :  { %v3775_v23 = vpop.xlane.xlu1 %3774 }
 0xe30   :  { %v3776_v24 = vmul.f32 0.00390625, %v3775_v23  ;;  %v4082_v23 = vrot.slane %v4060_v21, %v6003_v8 }
 0xe32   :  { %v3777_v25 = vadd.f32 1e-05, %v3776_v24  ;;  %v4086_v24 = vrot.slane %v4060_v21, %v6006_v10 }
 0xe34   :  { %5578 = vrsqrt.f32 %v3777_v25 }
 0xe3e   :  { %v5579_v30 = vpop.eup %5578 }
 0xe3f   :  { %v3779_v32 = vmul.f32 %v5579_v30, %v3769_v6  ;;  %v3780_v31 = vmul.f32 %v5579_v30, %v3770_v9  ;;  %v5524_v6 = vld [vmem:[#allocation14 + $0x50] sm:$0xff]  }
 0xe40   :  { %v5525_v9 = vld [vmem:[#allocation14 + $0x10] sm:$0xff]   ;;  %4779 = vmatprep.subr.bf16.mxu1 %v5524_v6 }
 0xe41   :  { %v3793_v43 = vmul.f32 %v3789_v29, %v3780_v31  ;;  %v3792_v44 = vmul.f32 %v3785_v28, %v3779_v32  ;;  %4780 = vmatpush3.bf16.msra.mxu1 %v5525_v9  ;;  %v4095_v28 = vrot.slane %v4061_v22, %v6003_v8  ;;  %v4099_v29 = vrot.slane %v4061_v22, %v6006_v10 }
 0xe42   :  { %4781 = vmatprep.subr.bf16.mxu1 %v5526_v38 }
 0xe43   :  { %v3806_v50 = vadd.f32 %v3802_v42, %v3793_v43  ;;  %v3805_v51 = vadd.f32 %v3798_v37, %v3792_v44 }
 0xe45   :  { %vm3808_vm5 = vcmp.ge.f32.partialorder %v3806_v50, 0.0  ;;  %v3810_v52 = vmul.f32 0.01, %v3806_v50  ;;  %vm3807_vm6 = vcmp.ge.f32.partialorder %v3805_v51, 0.0  ;;  %v3809_v45 = vmul.f32 0.01, %v3805_v51  ;;  %4782 = vmatpush3.bf16.msra.mxu1 %v5527_v39 }
 0xe46   :  { %4783 = vmatprep.subr.bf16.mxu1 %v5528_v41 }
 0xe47   :  { %v3812_v47 = vsel %vm3808_vm5, %v3806_v50, %v3810_v52  ;;  %v3811_v35 = vsel %vm3807_vm6, %v3805_v51, %v3809_v45  ;;  %v4758_v52 = vld [vmem:[%s6208_s10] ss:$0 sm:$0xff] }
 0xe48   :  { %v3815_v53 = vpack.c.bf16 %v3812_v47, %v3812_v47  ;;  %v3814_v62 = vpack.c.bf16 %v3811_v35, %v3811_v35 }
 0xe49   :  { %4784 = vmatpush3.bf16.msra.mxu1 %v5529_v11 }
 0xe4a   :  { %4051 = vmatprep.mubr.bf16.mxu0 %v3815_v53  ;;  %4785 = vmatprep.subr.bf16.mxu1 %v5530_v40 }
 0xe4b   :  { %4052 = vmatmul.mubr.bf16.vlgmr.msra.gmra.mrb[20].mxu0 %v3814_v62 }
 0xe4d   :  { %4786 = vmatpush3.bf16.msra.mxu1 %v5531_v12 }
 0xe4e   :  { %4787 = vmatprep.subr.bf16.mxu1 %v5532_v13 }
 0xe51   :  { %4788 = vmatpush3.bf16.msra.mxu1 %v5533_v14 }
 0xe52   :  { %4789 = vmatprep.subr.bf16.mxu1 %v5534_v16 }
 0xe55   :  { %4790 = vmatpush3.bf16.msra.mxu1 %v5535_v55 }
 0xf1e   :  { %v4053_v4 = vpop.f32.mrb[20].mxu0 }
 0xf1f   :  { %v4054_v54 = vadd.f32 %v4053_v4, %v3852_v56  ;;  %v4055_v49 = vpop.f32.mrb[21].mxu0 }
 0xf20   :  { %v4056_v57 = vadd.f32 %v4055_v49, %v3856_v46  ;;  %v4057_v48 = vpop.f32.mrb[22].mxu0 }
 0xf21   :  { %v4058_v15 = vpop.f32.mrb[23].mxu0 }
 0xf22   :  { %v4062_v17 = vadd.f32 %v4056_v57, %v4054_v54 }
 0xf24   :  { %4063 = vadd.xlane.f32.xlu0 %v4062_v17 }
 0xfb1   :  { %v4064_v61 = vpop.xlane.xlu0 %4063 }
 0xfb2   :  { %v4065_v63 = vmul.f32 0.00390625, %v4064_v61 }
 0xfb4   :  { %v4066_v0 = vsub.f32 %v4054_v54, %v4065_v63  ;;  %v4067_v1 = vsub.f32 %v4056_v57, %v4065_v63 }
 0xfb6   :  { %v4068_v2 = vmul.f32 %v4066_v0, %v4066_v0  ;;  %v4069_v3 = vmul.f32 %v4067_v1, %v4067_v1 }
 0xfb8   :  { %v4070_v5 = vadd.f32 %v4069_v3, %v4068_v2 }
 0xfba   :  { %4071 = vadd.xlane.f32.xlu1 %v4070_v5 }
0x1047   :  { %v4072_v7 = vpop.xlane.xlu1 %4071 }
0x1048   :  { %v4073_v18 = vmul.f32 0.00390625, %v4072_v7 }
0x104a   :  { %v4074_v19 = vadd.f32 1e-05, %v4073_v18 }
0x104c   :  { %5580 = vrsqrt.f32 %v4074_v19 }
0x1056   :  { %v5581_v25 = vpop.eup %5580 }
0x1057   :  { %v4076_v26 = vmul.f32 %v5581_v25, %v4066_v0  ;;  %v4077_v27 = vmul.f32 %v5581_v25, %v4067_v1 }
0x1059   :  { %v4090_v30 = vmul.f32 %v4086_v24, %v4077_v27  ;;  %v4089_v32 = vmul.f32 %v4082_v23, %v4076_v26 }
0x105b   :  { %v4103_v31 = vadd.f32 %v4099_v29, %v4090_v30  ;;  %v4102_v37 = vadd.f32 %v4095_v28, %v4089_v32 }
0x105d   :  { %v4105_v42 = vadd.f32 %v4103_v31, %v6170_v33  ;;  %v4104_v43 = vadd.f32 %v4102_v37, %v6172_v36 }
0x105f   :  { %v4111_v44 = vpack.c.bf16 %v4105_v42, %v4105_v42  ;;  %v4110_v50 = vpack.c.bf16 %v4104_v43, %v4104_v43 }
0x1061   :  { %4279 = vmatprep.mubr.bf16.mxu1 %v4111_v44 }
0x1062   :  { %4280 = vmatmul.mubr.bf16.vlgmr.msra.gmra.mrb[16].mxu1 %v4110_v50 }
0x1135   :  { %v4791_v51 = vpop.f32.mrb[16].mxu1 }
0x1136   :  { %v4792_v8 = vpop.f32.mrb[17].mxu1 }
0x1137   :  { %v4793_v45 = vadd.f32 %v4792_v8, %v4791_v51  ;;  %v4794_v10 = vpop.f32.mrb[18].mxu1 }
0x1138   :  { %v4795_v47 = vpop.f32.mrb[19].mxu1 }
0x1139   :  { %v4282_v35 = vadd.f32 %v4793_v45, %v4758_v52 }
0x113b   :  { %4287 = vst [vmem:[%s6209_s11] sm:$0xff] %v4282_v35 }
0x113c   :  { %4292 = vsyncpa [#allocation4], 1 }
0x113d   :  { %4293 = vsyncpa [#allocation6], 1 }
0x113e   :  { %4294 = vsyncpa [#allocation9], 1 }
0x113f   :  { %4295 = vsyncpa [#allocation12], 1 }
0x1140   :  { %4296 = vsyncpa [#allocation15], 1 }

</bundles_post_ra>
